<compile_context>
chip_gen: v5e
topology: v5e:2x2
jax: 0.10.0
libtpu: 0.0.40
codegen_flags: <defaults>
</compile_context>

<pallas_src>
import jax
import jax.numpy as jnp
from jax.experimental import pallas as pl
from jax.experimental.pallas import tpu as pltpu

NUM_SAMPLE = 8          # n  (== batch size; `num_sample` in the torch source)
BOTTLENECK = 2          # bottleneck_size
IN_FEATURES = 784       # 28 * 28
PADDED_IN = 896         # 7 * 128 — lane-dense padded feature width
Z_SLAB_LANES = 128      # lane-dense packed z / z_recon output width


def _adscnet_kernel(
    x_ref,                                     # (N, 896) bf16
    w1, b1, w2, b2, w3, b3,                    # encoder fc1/fc2/fc3 (weights bf16)
    wms, bms,                                  # fused mean|std head (64,4) bf16 / (1,4) f32
    eps_ref, coef_ref,                         # VAE noise, SelfExpression coef (f32)
    dw1, db1, dw2, db2,                        # decoder d_fc1/d_fc2 (weights bf16)
    dw3_hbm, db3, dw4_hbm, db4,                # d_fc3/d_fc4 weights live in HBM (pl.ANY)
    xrec_ref, zz_ref,                          # outputs
    dw3_buf, dw4_buf, dma_sem,                 # scratch: manual prefetch buffers + sems
):
    f32 = jnp.float32
    bf16 = jnp.bfloat16

    # ---- manual prefetch of the two big decoder weights (~1 MB) ------------
    # Started first so the DMA overlaps with the encoder matmul chain.
    cp3 = pltpu.make_async_copy(dw3_hbm, dw3_buf, dma_sem.at[0])
    cp4 = pltpu.make_async_copy(dw4_hbm, dw4_buf, dma_sem.at[1])
    cp3.start()
    cp4.start()

    # ---- encoder: bf16 MXU inputs, f32 accumulation, f32 elementwise -------
    x = x_ref[...]                                              # bf16 (N, 896)
    h = jnp.maximum(jnp.dot(x, w1[...], preferred_element_type=f32) + b1[...], 0.0)
    h = jnp.maximum(jnp.dot(h.astype(bf16), w2[...], preferred_element_type=f32) + b2[...], 0.0)
    h = jnp.maximum(jnp.dot(h.astype(bf16), w3[...], preferred_element_type=f32) + b3[...], 0.0)

    # fused mean/std head: one (N,64)@(64,4) matmul, slice columns
    head = jnp.dot(h.astype(bf16), wms[...], preferred_element_type=f32) + bms[...]
    mu = head[:, :BOTTLENECK]
    logvar = head[:, BOTTLENECK:]

    # ---- reparameterization sample (f32 elementwise; exp goes to the EUP) --
    # TODO(synk): eps is a fixed-key host-side normal draw (torch.randn_like is
    # nondeterministic); could be generated in-kernel via pltpu.prng_* if
    # host-reproducibility were not needed.
    z = mu + eps_ref[...] * jnp.exp(0.5 * logvar)

    # ---- self expression: z_recon = C @ z — one tiny MXU pass --------------
    z_recon = jnp.dot(coef_ref[...], z, preferred_element_type=f32)

    # ---- pack z / z_recon into one lane-dense (2N, 128) output slab --------
    zz_ref[...] = jnp.zeros((2 * NUM_SAMPLE, Z_SLAB_LANES), f32)
    zz_ref[:, :BOTTLENECK] = jnp.concatenate([z, z_recon], axis=0)

    # ---- decoder ------------------------------------------------------------
    d = jnp.maximum(
        jnp.dot(z_recon.astype(bf16), dw1[...], preferred_element_type=f32) + db1[...], 0.0)
    d = jnp.maximum(
        jnp.dot(d.astype(bf16), dw2[...], preferred_element_type=f32) + db2[...], 0.0)
    cp3.wait()
    d = jnp.maximum(
        jnp.dot(d.astype(bf16), dw3_buf[...], preferred_element_type=f32) + db3[...], 0.0)
    cp4.wait()
    d = jnp.dot(d.astype(bf16), dw4_buf[...], preferred_element_type=f32) + db4[...]
    xrec_ref[...] = jax.nn.sigmoid(d)                           # (N, 896) lane-dense store


def _pad_and_cast_input(x2d):
    """(N,784) f32 -> (N,896) bf16, zero padded (zeros are exact in bf16)."""
    xpad = jnp.pad(x2d, ((0, 0), (0, PADDED_IN - IN_FEATURES)))
    return xpad.astype(jnp.bfloat16)


@jax.jit
def adscnet_forward(x, kp, eps):
    """x: (N, 1, 28, 28) float32. Returns (x_recon, z, z_recon)."""
    n = x.shape[0]
    x2d = x.reshape(n, -1)                      # == torch x.view(-1, 784)
    xpad = _pad_and_cast_input(x2d)

    operands = (
        xpad,
        kp["w1"], kp["b1"], kp["w2"], kp["b2"], kp["w3"], kp["b3"],
        kp["wms"], kp["bms"],
        eps, kp["coef"],
        kp["dw1"], kp["db1"], kp["dw2"], kp["db2"],
        kp["dw3"], kp["db3"], kp["dw4"], kp["db4"],
    )

    vmem = pl.BlockSpec(memory_space=pltpu.MemorySpace.VMEM)
    hbm = pl.BlockSpec(memory_space=pl.ANY)     # dw3 / dw4: manual DMA in-kernel
    in_specs = [vmem] * 15 + [hbm, vmem, hbm, vmem]

    out_shape = (
        jax.ShapeDtypeStruct((n, PADDED_IN), jnp.float32),          # x_recon (padded)
        jax.ShapeDtypeStruct((2 * n, Z_SLAB_LANES), jnp.float32),   # packed z | z_recon
    )

    xr_pad, zz = pl.pallas_call(
        _adscnet_kernel,
        out_shape=out_shape,
        in_specs=in_specs,
        out_specs=(vmem, vmem),
        scratch_shapes=[
            pltpu.VMEM((128, 512), jnp.bfloat16),        # dw3 prefetch buffer
            pltpu.VMEM((512, PADDED_IN), jnp.bfloat16),  # dw4 prefetch buffer
            pltpu.SemaphoreType.DMA((2,)),
        ],
        compiler_params=pltpu.CompilerParams(vmem_limit_bytes=16 << 20),
    )(*operands)

    x_recon = xr_pad[:, :IN_FEATURES]
    z = zz[:n, :BOTTLENECK]
    z_recon = zz[n:, :BOTTLENECK]
    return x_recon, z, z_recon


def _prepare_params(p):
    """Pad/fuse/cast the f32 parameters into the kernel operand layout."""
    bf16 = jnp.bfloat16
    pad = PADDED_IN - IN_FEATURES
    w1p = jnp.pad(p["w1"], ((0, pad), (0, 0))).astype(bf16)        # (896, 512) bf16
    dw4p = jnp.pad(p["dw4"], ((0, 0), (0, pad))).astype(bf16)      # (512, 896) bf16
    db4p = jnp.pad(p["db4"], ((0, 0), (0, pad)))                   # (1, 896) f32
    return {
        "w1": w1p, "b1": p["b1"],
        "w2": p["w2"].astype(bf16), "b2": p["b2"],
        "w3": p["w3"].astype(bf16), "b3": p["b3"],
        "wms": jnp.concatenate([p["wm"], p["ws"]], axis=1).astype(bf16),   # (64, 4)
        "bms": jnp.concatenate([p["bm"], p["bs"]], axis=1),                # (1, 4)
        "coef": p["coef"],
        "dw1": p["dw1"].astype(bf16), "db1": p["db1"],
        "dw2": p["dw2"].astype(bf16), "db2": p["db2"],
        "dw3": p["dw3"].astype(bf16), "db3": p["db3"],
        "dw4": dw4p, "db4": db4p,
    }


def _reference_matched(x, kp, eps):
    """Pure-JAX reference using the identical bf16/padding scheme (tight check)."""
    f32, bf16 = jnp.float32, jnp.bfloat16
    n = x.shape[0]
    xpad = _pad_and_cast_input(x.reshape(n, -1))
    h = jax.nn.relu(jnp.dot(xpad, kp["w1"], preferred_element_type=f32) + kp["b1"])
    h = jax.nn.relu(jnp.dot(h.astype(bf16), kp["w2"], preferred_element_type=f32) + kp["b2"])
    h = jax.nn.relu(jnp.dot(h.astype(bf16), kp["w3"], preferred_element_type=f32) + kp["b3"])
    head = jnp.dot(h.astype(bf16), kp["wms"], preferred_element_type=f32) + kp["bms"]
    mu, logvar = head[:, :BOTTLENECK], head[:, BOTTLENECK:]
    z = mu + eps * jnp.exp(0.5 * logvar)
    z_recon = jnp.dot(kp["coef"], z, preferred_element_type=f32)
    d = jax.nn.relu(jnp.dot(z_recon.astype(bf16), kp["dw1"], preferred_element_type=f32) + kp["db1"])
    d = jax.nn.relu(jnp.dot(d.astype(bf16), kp["dw2"], preferred_element_type=f32) + kp["db2"])
    d = jax.nn.relu(jnp.dot(d.astype(bf16), kp["dw3"], preferred_element_type=f32) + kp["db3"])
    d = jnp.dot(d.astype(bf16), kp["dw4"], preferred_element_type=f32) + kp["db4"]
    x_recon = jax.nn.sigmoid(d)
    return x_recon[:, :IN_FEATURES], z, z_recon


def _reference_f32(x, params, eps):
    """Original full-f32 semantics (loose sanity check of the bf16 scheme)."""
    n = x.shape[0]
    h = x.reshape(n, -1)
    h = jax.nn.relu(h @ params["w1"] + params["b1"])
    h = jax.nn.relu(h @ params["w2"] + params["b2"])
    h = jax.nn.relu(h @ params["w3"] + params["b3"])
    mu = h @ params["wm"] + params["bm"]
    logvar = h @ params["ws"] + params["bs"]
    z = mu + eps * jnp.exp(0.5 * logvar)
    z_recon = params["coef"] @ z
    d = jax.nn.relu(z_recon @ params["dw1"] + params["db1"])
    d = jax.nn.relu(d @ params["dw2"] + params["db2"])
    d = jax.nn.relu(d @ params["dw3"] + params["db3"])
    x_recon = jax.nn.sigmoid(d @ params["dw4"] + params["db4"])
    return x_recon, z, z_recon


def _init_params(key):
    """Deterministic synthetic parameters (shapes match the torch __init__)."""
    dims_enc = [(784, 512), (512, 128), (128, 64)]
    dims_dec = [(BOTTLENECK, 64), (64, 128), (128, 512), (512, 784)]
    params = {}

    def linear(key, fan_in, fan_out):
        kw, kb = jax.random.split(key)
        scale = 1.0 / jnp.sqrt(jnp.float32(fan_in))
        # weights stored pre-transposed: (in, out)
        w = jax.random.uniform(kw, (fan_in, fan_out), jnp.float32, -scale, scale)
        b = jax.random.uniform(kb, (1, fan_out), jnp.float32, -scale, scale)
        return w, b

    keys = jax.random.split(key, 9)
    params["w1"], params["b1"] = linear(keys[0], *dims_enc[0])
    params["w2"], params["b2"] = linear(keys[1], *dims_enc[1])
    params["w3"], params["b3"] = linear(keys[2], *dims_enc[2])
    params["wm"], params["bm"] = linear(keys[3], 64, BOTTLENECK)
    params["ws"], params["bs"] = linear(keys[4], 64, BOTTLENECK)
    params["dw1"], params["db1"] = linear(keys[5], *dims_dec[0])
    params["dw2"], params["db2"] = linear(keys[6], *dims_dec[1])
    params["dw3"], params["db3"] = linear(keys[7], *dims_dec[2])
    params["dw4"], params["db4"] = linear(keys[8], *dims_dec[3])
    # SelfExpression.Coefficient = 1e-8 * ones(n, n)
    params["coef"] = 1e-8 * jnp.ones((NUM_SAMPLE, NUM_SAMPLE), jnp.float32)
    return params


if __name__ == "__main__":
    root = jax.random.PRNGKey(0)
    k_param, k_x, k_eps = jax.random.split(root, 3)

    params = _init_params(k_param)
    kernel_params = _prepare_params(params)
    x = jax.random.uniform(k_x, (NUM_SAMPLE, 1, 28, 28), jnp.float32)
    eps = jax.random.normal(k_eps, (NUM_SAMPLE, BOTTLENECK), jnp.float32)

    x_recon, z, z_recon = adscnet_forward(x, kernel_params, eps)
    jax.block_until_ready((x_recon, z, z_recon))

    # Tight check against a reference using the identical bf16/padding scheme.
    xr_m, z_m, zr_m = _reference_matched(x, kernel_params, eps)
    assert jnp.allclose(x_recon, xr_m, atol=2e-3, rtol=2e-3)
    assert jnp.allclose(z, z_m, atol=2e-3, rtol=2e-3)
    assert jnp.allclose(z_recon, zr_m, atol=2e-3, rtol=2e-3)

    # Loose check against the original full-f32 semantics (bf16 weight error).
    xr_f, z_f, zr_f = _reference_f32(x, params, eps)
    assert jnp.allclose(x_recon, xr_f, atol=5e-2, rtol=5e-2)
    assert jnp.allclose(z, z_f, atol=5e-2, rtol=5e-2)
    assert jnp.allclose(z_recon, zr_f, atol=5e-2, rtol=5e-2)

    print("KERNEL_OK")
</pallas_src>

<mosaic_0001>
module attributes {stable_mosaic.version = 11 : i64} {
  func.func @_adscnet_kernel(%arg0: memref<8x896xbf16, #tpu.memory_space<vmem>>, %arg1: memref<896x512xbf16, #tpu.memory_space<vmem>>, %arg2: memref<1x512xf32, #tpu.memory_space<vmem>>, %arg3: memref<512x128xbf16, #tpu.memory_space<vmem>>, %arg4: memref<1x128xf32, #tpu.memory_space<vmem>>, %arg5: memref<128x64xbf16, #tpu.memory_space<vmem>>, %arg6: memref<1x64xf32, #tpu.memory_space<vmem>>, %arg7: memref<64x4xbf16, #tpu.memory_space<vmem>>, %arg8: memref<1x4xf32, #tpu.memory_space<vmem>>, %arg9: memref<8x2xf32, #tpu.memory_space<vmem>>, %arg10: memref<8x8xf32, #tpu.memory_space<vmem>>, %arg11: memref<2x64xbf16, #tpu.memory_space<vmem>>, %arg12: memref<1x64xf32, #tpu.memory_space<vmem>>, %arg13: memref<64x128xbf16, #tpu.memory_space<vmem>>, %arg14: memref<1x128xf32, #tpu.memory_space<vmem>>, %arg15: memref<128x512xbf16, #tpu.memory_space<any>>, %arg16: memref<1x512xf32, #tpu.memory_space<vmem>>, %arg17: memref<512x896xbf16, #tpu.memory_space<any>>, %arg18: memref<1x896xf32, #tpu.memory_space<vmem>>, %arg19: memref<8x896xf32, #tpu.memory_space<vmem>>, %arg20: memref<16x128xf32, #tpu.memory_space<vmem>>, %arg21: memref<128x512xbf16, #tpu.memory_space<vmem>>, %arg22: memref<512x896xbf16, #tpu.memory_space<vmem>>, %arg23: memref<2x!tpu.dma_semaphore, #tpu.memory_space<semaphore_mem>>) attributes {dimension_semantics = [], scalar_prefetch = 0 : i64, scratch_operands = 3 : i64, tpu.core_type = #tpu.core_type<tc>} {
    %c0_i32 = arith.constant 0 : i32
    %0 = tpu.memref_slice %arg23[%c0_i32] : memref<2x!tpu.dma_semaphore, #tpu.memory_space<semaphore_mem>> -> memref<1x!tpu.dma_semaphore, #tpu.memory_space<semaphore_mem>>
    %1 = tpu.memref_squeeze %0 : memref<1x!tpu.dma_semaphore, #tpu.memory_space<semaphore_mem>> -> memref<!tpu.dma_semaphore, #tpu.memory_space<semaphore_mem>>
    tpu.enqueue_dma source(%arg15 : memref<128x512xbf16, #tpu.memory_space<any>>) target(%arg21 : memref<128x512xbf16, #tpu.memory_space<vmem>>) target_semaphore(%1 : memref<!tpu.dma_semaphore, #tpu.memory_space<semaphore_mem>>)
    %c1_i32 = arith.constant 1 : i32
    %2 = tpu.memref_slice %arg23[%c1_i32] : memref<2x!tpu.dma_semaphore, #tpu.memory_space<semaphore_mem>> -> memref<1x!tpu.dma_semaphore, #tpu.memory_space<semaphore_mem>>
    %3 = tpu.memref_squeeze %2 : memref<1x!tpu.dma_semaphore, #tpu.memory_space<semaphore_mem>> -> memref<!tpu.dma_semaphore, #tpu.memory_space<semaphore_mem>>
    tpu.enqueue_dma source(%arg17 : memref<512x896xbf16, #tpu.memory_space<any>>) target(%arg22 : memref<512x896xbf16, #tpu.memory_space<vmem>>) target_semaphore(%3 : memref<!tpu.dma_semaphore, #tpu.memory_space<semaphore_mem>>)
    %c0 = arith.constant 0 : index
    %c0_0 = arith.constant 0 : index
    %4 = vector.load %arg0[%c0, %c0_0] : memref<8x896xbf16, #tpu.memory_space<vmem>>, vector<8x896xbf16>
    %c0_1 = arith.constant 0 : index
    %c0_2 = arith.constant 0 : index
    %5 = vector.load %arg1[%c0_1, %c0_2] : memref<896x512xbf16, #tpu.memory_space<vmem>>, vector<896x512xbf16>
    %cst = arith.constant dense<0.000000e+00> : vector<8x512xf32>
    %6 = tpu.matmul %4, %5, %cst {dimension_numbers = #tpu.dot_dimension_numbers<[1], [0], [0], [1], [0, 0, 1, 1], [], []>} : vector<8x896xbf16>, vector<896x512xbf16>, vector<8x512xf32> -> vector<8x512xf32>
    %c0_3 = arith.constant 0 : index
    %c0_4 = arith.constant 0 : index
    %7 = vector.load %arg2[%c0_3, %c0_4] : memref<1x512xf32, #tpu.memory_space<vmem>>, vector<1x512xf32>
    %8 = vector.broadcast %7 : vector<1x512xf32> to vector<8x512xf32>
    %9 = arith.addf %6, %8 : vector<8x512xf32>
    %cst_5 = arith.constant 0.000000e+00 : f32
    %10 = vector.broadcast %cst_5 : f32 to vector<8x512xf32>
    %11 = arith.maximumf %9, %10 : vector<8x512xf32>
    %12 = arith.truncf %11 : vector<8x512xf32> to vector<8x512xbf16>
    %c0_6 = arith.constant 0 : index
    %c0_7 = arith.constant 0 : index
    %13 = vector.load %arg3[%c0_6, %c0_7] : memref<512x128xbf16, #tpu.memory_space<vmem>>, vector<512x128xbf16>
    %cst_8 = arith.constant dense<0.000000e+00> : vector<8x128xf32>
    %14 = tpu.matmul %12, %13, %cst_8 {dimension_numbers = #tpu.dot_dimension_numbers<[1], [0], [0], [1], [0, 0, 1, 1], [], []>} : vector<8x512xbf16>, vector<512x128xbf16>, vector<8x128xf32> -> vector<8x128xf32>
    %c0_9 = arith.constant 0 : index
    %c0_10 = arith.constant 0 : index
    %15 = vector.load %arg4[%c0_9, %c0_10] : memref<1x128xf32, #tpu.memory_space<vmem>>, vector<1x128xf32>
    %16 = vector.broadcast %15 : vector<1x128xf32> to vector<8x128xf32>
    %17 = arith.addf %14, %16 : vector<8x128xf32>
    %cst_11 = arith.constant 0.000000e+00 : f32
    %18 = vector.broadcast %cst_11 : f32 to vector<8x128xf32>
    %19 = arith.maximumf %17, %18 : vector<8x128xf32>
    %20 = arith.truncf %19 : vector<8x128xf32> to vector<8x128xbf16>
    %c0_12 = arith.constant 0 : index
    %c0_13 = arith.constant 0 : index
    %21 = vector.load %arg5[%c0_12, %c0_13] : memref<128x64xbf16, #tpu.memory_space<vmem>>, vector<128x64xbf16>
    %cst_14 = arith.constant dense<0.000000e+00> : vector<8x64xf32>
    %22 = tpu.matmul %20, %21, %cst_14 {dimension_numbers = #tpu.dot_dimension_numbers<[1], [0], [0], [1], [0, 0, 1, 1], [], []>} : vector<8x128xbf16>, vector<128x64xbf16>, vector<8x64xf32> -> vector<8x64xf32>
    %c0_15 = arith.constant 0 : index
    %c0_16 = arith.constant 0 : index
    %23 = vector.load %arg6[%c0_15, %c0_16] : memref<1x64xf32, #tpu.memory_space<vmem>>, vector<1x64xf32>
    %24 = vector.broadcast %23 : vector<1x64xf32> to vector<8x64xf32>
    %25 = arith.addf %22, %24 : vector<8x64xf32>
    %cst_17 = arith.constant 0.000000e+00 : f32
    %26 = vector.broadcast %cst_17 : f32 to vector<8x64xf32>
    %27 = arith.maximumf %25, %26 : vector<8x64xf32>
    %28 = arith.truncf %27 : vector<8x64xf32> to vector<8x64xbf16>
    %c0_18 = arith.constant 0 : index
    %c0_19 = arith.constant 0 : index
    %29 = vector.load %arg7[%c0_18, %c0_19] : memref<64x4xbf16, #tpu.memory_space<vmem>>, vector<64x4xbf16>
    %cst_20 = arith.constant dense<0.000000e+00> : vector<8x4xf32>
    %30 = tpu.matmul %28, %29, %cst_20 {dimension_numbers = #tpu.dot_dimension_numbers<[1], [0], [0], [1], [0, 0, 1, 1], [], []>} : vector<8x64xbf16>, vector<64x4xbf16>, vector<8x4xf32> -> vector<8x4xf32>
    %c0_21 = arith.constant 0 : index
    %c0_22 = arith.constant 0 : index
    %31 = vector.load %arg8[%c0_21, %c0_22] : memref<1x4xf32, #tpu.memory_space<vmem>>, vector<1x4xf32>
    %32 = vector.broadcast %31 : vector<1x4xf32> to vector<8x4xf32>
    %33 = arith.addf %30, %32 : vector<8x4xf32>
    %34 = vector.extract_strided_slice %33 {offsets = [0, 0], sizes = [8, 2], strides = [1, 1]} : vector<8x4xf32> to vector<8x2xf32>
    %35 = vector.extract_strided_slice %33 {offsets = [0, 2], sizes = [8, 2], strides = [1, 1]} : vector<8x4xf32> to vector<8x2xf32>
    %c0_23 = arith.constant 0 : index
    %c0_24 = arith.constant 0 : index
    %36 = vector.load %arg9[%c0_23, %c0_24] : memref<8x2xf32, #tpu.memory_space<vmem>>, vector<8x2xf32>
    %cst_25 = arith.constant 5.000000e-01 : f32
    %37 = vector.broadcast %cst_25 : f32 to vector<8x2xf32>
    %38 = arith.mulf %37, %35 : vector<8x2xf32>
    %39 = math.exp %38 : vector<8x2xf32>
    %40 = arith.mulf %36, %39 : vector<8x2xf32>
    %41 = arith.addf %34, %40 : vector<8x2xf32>
    %c0_26 = arith.constant 0 : index
    %c0_27 = arith.constant 0 : index
    %42 = vector.load %arg10[%c0_26, %c0_27] : memref<8x8xf32, #tpu.memory_space<vmem>>, vector<8x8xf32>
    %cst_28 = arith.constant dense<0.000000e+00> : vector<8x2xf32>
    %43 = tpu.matmul %42, %41, %cst_28 {dimension_numbers = #tpu.dot_dimension_numbers<[1], [0], [0], [1], [0, 0, 1, 1], [], []>} : vector<8x8xf32>, vector<8x2xf32>, vector<8x2xf32> -> vector<8x2xf32>
    %cst_29 = arith.constant 0.000000e+00 : f32
    %44 = vector.broadcast %cst_29 : f32 to vector<16x128xf32>
    %c0_30 = arith.constant 0 : index
    %c0_31 = arith.constant 0 : index
    %45 = vector.load %arg20[%c0_30, %c0_31] : memref<16x128xf32, #tpu.memory_space<vmem>>, vector<16x128xf32>
    tpu.vector_store %arg20[%c0_30, %c0_31], %44 {strides = array<i32>} : memref<16x128xf32, #tpu.memory_space<vmem>>, vector<16x128xf32>,
    %46 = tpu.concatenate %41, %43 in 0 : vector<8x2xf32>, vector<8x2xf32> -> vector<16x2xf32>
    %c0_32 = arith.constant 0 : index
    %c0_33 = arith.constant 0 : index
    %47 = vector.load %arg20[%c0_32, %c0_33] : memref<16x128xf32, #tpu.memory_space<vmem>>, vector<16x2xf32>
    tpu.vector_store %arg20[%c0_32, %c0_33], %46 {strides = array<i32>} : memref<16x128xf32, #tpu.memory_space<vmem>>, vector<16x2xf32>,
    %48 = arith.truncf %43 : vector<8x2xf32> to vector<8x2xbf16>
    %c0_34 = arith.constant 0 : index
    %c0_35 = arith.constant 0 : index
    %49 = vector.load %arg11[%c0_34, %c0_35] : memref<2x64xbf16, #tpu.memory_space<vmem>>, vector<2x64xbf16>
    %cst_36 = arith.constant dense<0.000000e+00> : vector<8x64xf32>
    %50 = tpu.matmul %48, %49, %cst_36 {dimension_numbers = #tpu.dot_dimension_numbers<[1], [0], [0], [1], [0, 0, 1, 1], [], []>} : vector<8x2xbf16>, vector<2x64xbf16>, vector<8x64xf32> -> vector<8x64xf32>
    %c0_37 = arith.constant 0 : index
    %c0_38 = arith.constant 0 : index
    %51 = vector.load %arg12[%c0_37, %c0_38] : memref<1x64xf32, #tpu.memory_space<vmem>>, vector<1x64xf32>
    %52 = vector.broadcast %51 : vector<1x64xf32> to vector<8x64xf32>
    %53 = arith.addf %50, %52 : vector<8x64xf32>
    %cst_39 = arith.constant 0.000000e+00 : f32
    %54 = vector.broadcast %cst_39 : f32 to vector<8x64xf32>
    %55 = arith.maximumf %53, %54 : vector<8x64xf32>
    %56 = arith.truncf %55 : vector<8x64xf32> to vector<8x64xbf16>
    %c0_40 = arith.constant 0 : index
    %c0_41 = arith.constant 0 : index
    %57 = vector.load %arg13[%c0_40, %c0_41] : memref<64x128xbf16, #tpu.memory_space<vmem>>, vector<64x128xbf16>
    %cst_42 = arith.constant dense<0.000000e+00> : vector<8x128xf32>
    %58 = tpu.matmul %56, %57, %cst_42 {dimension_numbers = #tpu.dot_dimension_numbers<[1], [0], [0], [1], [0, 0, 1, 1], [], []>} : vector<8x64xbf16>, vector<64x128xbf16>, vector<8x128xf32> -> vector<8x128xf32>
    %c0_43 = arith.constant 0 : index
    %c0_44 = arith.constant 0 : index
    %59 = vector.load %arg14[%c0_43, %c0_44] : memref<1x128xf32, #tpu.memory_space<vmem>>, vector<1x128xf32>
    %60 = vector.broadcast %59 : vector<1x128xf32> to vector<8x128xf32>
    %61 = arith.addf %58, %60 : vector<8x128xf32>
    %cst_45 = arith.constant 0.000000e+00 : f32
    %62 = vector.broadcast %cst_45 : f32 to vector<8x128xf32>
    %63 = arith.maximumf %61, %62 : vector<8x128xf32>
    %c0_i32_46 = arith.constant 0 : i32
    %64 = tpu.memref_slice %arg23[%c0_i32_46] : memref<2x!tpu.dma_semaphore, #tpu.memory_space<semaphore_mem>> -> memref<1x!tpu.dma_semaphore, #tpu.memory_space<semaphore_mem>>
    %65 = tpu.memref_squeeze %64 : memref<1x!tpu.dma_semaphore, #tpu.memory_space<semaphore_mem>> -> memref<!tpu.dma_semaphore, #tpu.memory_space<semaphore_mem>>
    tpu.wait_dma2 semaphore(%65 : memref<!tpu.dma_semaphore, #tpu.memory_space<semaphore_mem>>) src(%arg15 : memref<128x512xbf16, #tpu.memory_space<any>>) dst(%arg21 : memref<128x512xbf16, #tpu.memory_space<vmem>>)
    %66 = arith.truncf %63 : vector<8x128xf32> to vector<8x128xbf16>
    %c0_47 = arith.constant 0 : index
    %c0_48 = arith.constant 0 : index
    %67 = vector.load %arg21[%c0_47, %c0_48] : memref<128x512xbf16, #tpu.memory_space<vmem>>, vector<128x512xbf16>
    %cst_49 = arith.constant dense<0.000000e+00> : vector<8x512xf32>
    %68 = tpu.matmul %66, %67, %cst_49 {dimension_numbers = #tpu.dot_dimension_numbers<[1], [0], [0], [1], [0, 0, 1, 1], [], []>} : vector<8x128xbf16>, vector<128x512xbf16>, vector<8x512xf32> -> vector<8x512xf32>
    %c0_50 = arith.constant 0 : index
    %c0_51 = arith.constant 0 : index
    %69 = vector.load %arg16[%c0_50, %c0_51] : memref<1x512xf32, #tpu.memory_space<vmem>>, vector<1x512xf32>
    %70 = vector.broadcast %69 : vector<1x512xf32> to vector<8x512xf32>
    %71 = arith.addf %68, %70 : vector<8x512xf32>
    %cst_52 = arith.constant 0.000000e+00 : f32
    %72 = vector.broadcast %cst_52 : f32 to vector<8x512xf32>
    %73 = arith.maximumf %71, %72 : vector<8x512xf32>
    %c1_i32_53 = arith.constant 1 : i32
    %74 = tpu.memref_slice %arg23[%c1_i32_53] : memref<2x!tpu.dma_semaphore, #tpu.memory_space<semaphore_mem>> -> memref<1x!tpu.dma_semaphore, #tpu.memory_space<semaphore_mem>>
    %75 = tpu.memref_squeeze %74 : memref<1x!tpu.dma_semaphore, #tpu.memory_space<semaphore_mem>> -> memref<!tpu.dma_semaphore, #tpu.memory_space<semaphore_mem>>
    tpu.wait_dma2 semaphore(%75 : memref<!tpu.dma_semaphore, #tpu.memory_space<semaphore_mem>>) src(%arg17 : memref<512x896xbf16, #tpu.memory_space<any>>) dst(%arg22 : memref<512x896xbf16, #tpu.memory_space<vmem>>)
    %76 = arith.truncf %73 : vector<8x512xf32> to vector<8x512xbf16>
    %c0_54 = arith.constant 0 : index
    %c0_55 = arith.constant 0 : index
    %77 = vector.load %arg22[%c0_54, %c0_55] : memref<512x896xbf16, #tpu.memory_space<vmem>>, vector<512x896xbf16>
    %cst_56 = arith.constant dense<0.000000e+00> : vector<8x896xf32>
    %78 = tpu.matmul %76, %77, %cst_56 {dimension_numbers = #tpu.dot_dimension_numbers<[1], [0], [0], [1], [0, 0, 1, 1], [], []>} : vector<8x512xbf16>, vector<512x896xbf16>, vector<8x896xf32> -> vector<8x896xf32>
    %c0_57 = arith.constant 0 : index
    %c0_58 = arith.constant 0 : index
    %79 = vector.load %arg18[%c0_57, %c0_58] : memref<1x896xf32, #tpu.memory_space<vmem>>, vector<1x896xf32>
    %80 = vector.broadcast %79 : vector<1x896xf32> to vector<8x896xf32>
    %81 = arith.addf %78, %80 : vector<8x896xf32>
    %82 = arith.negf %81 : vector<8x896xf32>
    %83 = math.exp %82 : vector<8x896xf32>
    %cst_59 = arith.constant 1.000000e+00 : f32
    %84 = vector.broadcast %cst_59 : f32 to vector<8x896xf32>
    %85 = arith.addf %84, %83 : vector<8x896xf32>
    %86 = arith.divf %84, %85 : vector<8x896xf32>
    %c0_60 = arith.constant 0 : index
    %c0_61 = arith.constant 0 : index
    %87 = vector.load %arg19[%c0_60, %c0_61] : memref<8x896xf32, #tpu.memory_space<vmem>>, vector<8x896xf32>
    tpu.vector_store %arg19[%c0_60, %c0_61], %86 {strides = array<i32>} : memref<8x896xf32, #tpu.memory_space<vmem>>, vector<8x896xf32>,
    return
  }
}

</mosaic_0001>

<bundles_post_ra>
// kernel: adscnet_forward.1
= control target key start
LH: loop header
LB: loop body
LE: loop exit
PB: predicated region body
PF: predicated region fallthrough
CT: control target
= control target key end

     0   :  { %s8093_s0 = inlined_call_operand.vmem [shape: bf16[8,896], index: 0, kind: input, shape index: {}]   ;;  %s8094_s1 = inlined_call_operand.hbm [shape: bf16[896,512], index: 1, kind: input, shape index: {}]   ;;  %s8095_s2 = inlined_call_operand.vmem [shape: f32[1,512], index: 2, kind: input, shape index: {}]   ;;  %s8096_s3 = inlined_call_operand.vmem [shape: bf16[512,128], index: 3, kind: input, shape index: {}]   ;;  %s8097_s4 = inlined_call_operand.vmem [shape: f32[1,128], index: 4, kind: input, shape index: {}]   ;;  %s8098_s5 = inlined_call_operand.vmem [shape: bf16[128,64], index: 5, kind: input, shape index: {}]   ;;  %s8099_s6 = inlined_call_operand.vmem [shape: f32[1,64], index: 6, kind: input, shape index: {}]   ;;  %s8100_s7 = inlined_call_operand.vmem [shape: bf16[64,4], index: 7, kind: input, shape index: {}]   ;;  %s8101_s8 = inlined_call_operand.vmem [shape: f32[1,4], index: 8, kind: input, shape index: {}]   ;;  %s8102_s9 = inlined_call_operand.vmem [shape: f32[8,2], index: 9, kind: input, shape index: {}]   ;;  %s8103_s10 = inlined_call_operand.vmem [shape: f32[8,8], index: 10, kind: input, shape index: {}]   ;;  %s8104_s11 = inlined_call_operand.vmem [shape: bf16[2,64], index: 11, kind: input, shape index: {}]   ;;  %s8105_s12 = inlined_call_operand.vmem [shape: f32[1,64], index: 12, kind: input, shape index: {}]   ;;  %s8106_s13 = inlined_call_operand.vmem [shape: bf16[64,128], index: 13, kind: input, shape index: {}]   ;;  %s8107_s14 = inlined_call_operand.vmem [shape: f32[1,128], index: 14, kind: input, shape index: {}]   ;;  %s8108_s15 = inlined_call_operand.vmem [shape: bf16[128,512], index: 15, kind: input, shape index: {}]   ;;  %s8109_s16 = inlined_call_operand.vmem [shape: f32[1,512], index: 16, kind: input, shape index: {}]   ;;  %s8110_s17 = inlined_call_operand.hbm [shape: bf16[512,896], index: 17, kind: input, shape index: {}]   ;;  %s8111_s18 = inlined_call_operand.vmem [shape: f32[1,896], index: 18, kind: input, shape index: {}]   ;;  %s8112_s19 = inlined_call_operand.hbm [shape: f32[8,896], index: 19, kind: output, shape index: {0}]   ;;  %s8113_s20 = inlined_call_operand.vmem [shape: f32[16,128], index: 20, kind: output, shape index: {1}]  }
   0x1   :  { %8116 = sst [smem:[#allocation18_spill]] %s8093_s0 }
   0x2   :  { %8117 = sst [smem:[#allocation19_spill]] %s8094_s1 }
   0x3   :  { %8118 = sst [smem:[#allocation20_spill]] %s8095_s2 }
   0x4   :  { %8119 = sst [smem:[#allocation21_spill]] %s8096_s3 }
   0x5   :  { %8120 = sst [smem:[#allocation22_spill]] %s8097_s4 }
   0x6   :  { %26 = vsyncpa [#allocation6], 0 }
   0x7   :  { %27 = vsyncpa [#allocation7], 0  ;;  %s8121_s23 = sld [smem:[#allocation19_spill]]  ;;  %s7510_s2 = smov [#allocation5]  }
   0x8   :  { %s36_s25 = sshll.u32 %s7510_s2, 4  ;;  %s7511_s3 = smov 256   ;;  %s37_s25 = int_to_ptr.vmem [resolvable:$true] %s36_s25 }
   0x9   :  { %s7512_s26 = smov 16  }
   0xd   :  { %s34_s24 = sshll.u32 %s8121_s23, 4  ;;  %s35_s24 = int_to_ptr.hbm [resolvable:$true] %s34_s24 }
   0xe   :  { %42 = dma.hbm_to_vmem [thread:$0]  %s35_s24, 28672, %s37_s25, [#allocation6], %s7511_s3, %s7511_s3, %s7512_s26  }
   0xf   :  { %7502 = dma.done.wait [#allocation6], 28672  }
  0x10   :  { %7503 = vsyncadd [#allocation6], 4294938624  ;;  %v88_v0 = vld [vmem:[%s8108_s15] sm:$0xff]  ;;  %v90_v1 = vld [vmem:[%s8108_s15 + $0x8] sm:$0xff]  ;;  %s8122_s0 = sld [smem:[#allocation18_spill]] }
  0x11   :  { %v92_v2 = vld [vmem:[%s8108_s15 + $0x10] sm:$0xff]  ;;  %89 = vst [vmem:[#allocation2] sm:$0xff] %v88_v0  ;;  %v94_v3 = vld [vmem:[%s8108_s15 + $0x18] sm:$0xff]  ;;  %v96_v4 = vld [vmem:[%s8108_s15 + $0x20] sm:$0xff] }
  0x12   :  { %91 = vst [vmem:[#allocation2 + $0x8] sm:$0xff] %v90_v1  ;;  %v98_v5 = vld [vmem:[%s8108_s15 + $0x28] sm:$0xff]  ;;  %v100_v6 = vld [vmem:[%s8108_s15 + $0x30] sm:$0xff]  ;;  %v102_v7 = vld [vmem:[%s8108_s15 + $0x38] sm:$0xff] }
  0x13   :  { %93 = vst [vmem:[#allocation2 + $0x10] sm:$0xff] %v92_v2  ;;  %v104_v8 = vld [vmem:[%s8108_s15 + $0x40] sm:$0xff]  ;;  %v106_v9 = vld [vmem:[%s8108_s15 + $0x48] sm:$0xff]  ;;  %v108_v10 = vld [vmem:[%s8108_s15 + $0x50] sm:$0xff] }
  0x14   :  { %95 = vst [vmem:[#allocation2 + $0x18] sm:$0xff] %v94_v3  ;;  %v110_v11 = vld [vmem:[%s8108_s15 + $0x58] sm:$0xff]  ;;  %v112_v12 = vld [vmem:[%s8108_s15 + $0x60] sm:$0xff]  ;;  %v114_v13 = vld [vmem:[%s8108_s15 + $0x68] sm:$0xff] }
  0x15   :  { %97 = vst [vmem:[#allocation2 + $0x20] sm:$0xff] %v96_v4  ;;  %v116_v14 = vld [vmem:[%s8108_s15 + $0x70] sm:$0xff]  ;;  %v118_v15 = vld [vmem:[%s8108_s15 + $0x78] sm:$0xff]  ;;  %v120_v16 = vld [vmem:[%s8108_s15 + $0x80] sm:$0xff] }
  0x16   :  { %99 = vst [vmem:[#allocation2 + $0x28] sm:$0xff] %v98_v5  ;;  %v122_v17 = vld [vmem:[%s8108_s15 + $0x88] sm:$0xff]  ;;  %v124_v18 = vld [vmem:[%s8108_s15 + $0x90] sm:$0xff]  ;;  %v126_v19 = vld [vmem:[%s8108_s15 + $0x98] sm:$0xff] }
  0x17   :  { %101 = vst [vmem:[#allocation2 + $0x30] sm:$0xff] %v100_v6  ;;  %v128_v20 = vld [vmem:[%s8108_s15 + $0xa0] sm:$0xff]  ;;  %v130_v21 = vld [vmem:[%s8108_s15 + $0xa8] sm:$0xff]  ;;  %v132_v22 = vld [vmem:[%s8108_s15 + $0xb0] sm:$0xff] }
  0x18   :  { %103 = vst [vmem:[#allocation2 + $0x38] sm:$0xff] %v102_v7  ;;  %v134_v23 = vld [vmem:[%s8108_s15 + $0xb8] sm:$0xff]  ;;  %v136_v24 = vld [vmem:[%s8108_s15 + $0xc0] sm:$0xff]  ;;  %v138_v25 = vld [vmem:[%s8108_s15 + $0xc8] sm:$0xff] }
  0x19   :  { %105 = vst [vmem:[#allocation2 + $0x40] sm:$0xff] %v104_v8  ;;  %v140_v26 = vld [vmem:[%s8108_s15 + $0xd0] sm:$0xff]  ;;  %v142_v27 = vld [vmem:[%s8108_s15 + $0xd8] sm:$0xff]  ;;  %v144_v28 = vld [vmem:[%s8108_s15 + $0xe0] sm:$0xff] }
  0x1a   :  { %107 = vst [vmem:[#allocation2 + $0x48] sm:$0xff] %v106_v9  ;;  %v146_v29 = vld [vmem:[%s8108_s15 + $0xe8] sm:$0xff]  ;;  %v148_v30 = vld [vmem:[%s8108_s15 + $0xf0] sm:$0xff]  ;;  %v150_v31 = vld [vmem:[%s8108_s15 + $0xf8] sm:$0xff] }
  0x1b   :  { %109 = vst [vmem:[#allocation2 + $0x50] sm:$0xff] %v108_v10  ;;  %v4849_v32 = vld [vmem:[#allocation5 + $0xe0] sm:$0xf]  ;;  %v6890_v33 = vld [vmem:[#allocation5 + $0xec] sm:$0xf0] }
  0x1c   :  { %111 = vst [vmem:[#allocation2 + $0x58] sm:$0xff] %v110_v11  ;;  %v4977_v34 = vld [vmem:[#allocation5 + $0x1e0] sm:$0xf]  ;;  %v4850_v35 = vor.u32 %v6890_v33, %v4849_v32  ;;  %v6922_v36 = vld [vmem:[#allocation5 + $0x1ec] sm:$0xf0] }
  0x1d   :  { %113 = vst [vmem:[#allocation2 + $0x60] sm:$0xff] %v112_v12  ;;  %v5105_v37 = vld [vmem:[#allocation5 + $0x2e0] sm:$0xf]  ;;  %v6954_v38 = vld [vmem:[#allocation5 + $0x2ec] sm:$0xf0]  ;;  %v4978_v39 = vor.u32 %v6922_v36, %v4977_v34 }
  0x1e   :  { %115 = vst [vmem:[#allocation2 + $0x68] sm:$0xff] %v114_v13  ;;  %v5106_v40 = vor.u32 %v6954_v38, %v5105_v37  ;;  %v5233_v41 = vld [vmem:[#allocation5 + $0x3e0] sm:$0xf]  ;;  %v6986_v42 = vld [vmem:[#allocation5 + $0x3ec] sm:$0xf0]  ;;  %1555 = vmatpush.bf16.msra.mxu0 %v4850_v35 }
  0x1f   :  { %117 = vst [vmem:[#allocation2 + $0x70] sm:$0xff] %v116_v14  ;;  %v4833_v43 = vld [vmem:[#allocation5 + $0xc0] sm:$0xf]  ;;  %v5234_v44 = vor.u32 %v6986_v42, %v5233_v41  ;;  %v6886_v45 = vld [vmem:[#allocation5 + $0xcc] sm:$0xf0]  ;;  %1568 = vmatpush.bf16.msra.mxu1 %v4978_v39 }
  0x20   :  { %119 = vst [vmem:[#allocation2 + $0x78] sm:$0xff] %v118_v15  ;;  %v4961_v46 = vld [vmem:[#allocation5 + $0x1c0] sm:$0xf]  ;;  %v6918_v47 = vld [vmem:[#allocation5 + $0x1cc] sm:$0xf0]  ;;  %1581 = vmatpush.bf16.msra.mxu2 %v5106_v40  ;;  %v4834_v48 = vor.u32 %v6886_v45, %v4833_v43 }
  0x21   :  { %121 = vst [vmem:[#allocation2 + $0x80] sm:$0xff] %v120_v16  ;;  %v4962_v49 = vor.u32 %v6918_v47, %v4961_v46  ;;  %v5089_v50 = vld [vmem:[#allocation5 + $0x2c0] sm:$0xf]  ;;  %v6950_v51 = vld [vmem:[#allocation5 + $0x2cc] sm:$0xf0]  ;;  %1594 = vmatpush.bf16.msra.mxu3 %v5234_v44 }
  0x22   :  { %123 = vst [vmem:[#allocation2 + $0x88] sm:$0xff] %v122_v17  ;;  %v5217_v52 = vld [vmem:[#allocation5 + $0x3c0] sm:$0xf]  ;;  %v5090_v53 = vor.u32 %v6950_v51, %v5089_v50  ;;  %v6982_v54 = vld [vmem:[#allocation5 + $0x3cc] sm:$0xf0]  ;;  %1556 = vmatpush.bf16.msra.mxu0 %v4834_v48 }
  0x23   :  { %125 = vst [vmem:[#allocation2 + $0x90] sm:$0xff] %v124_v18  ;;  %v4817_v55 = vld [vmem:[#allocation5 + $0xa0] sm:$0xf]  ;;  %v6882_v56 = vld [vmem:[#allocation5 + $0xac] sm:$0xf0]  ;;  %v5218_v57 = vor.u32 %v6982_v54, %v5217_v52  ;;  %1569 = vmatpush.bf16.msra.mxu1 %v4962_v49 }
  0x24   :  { %127 = vst [vmem:[#allocation2 + $0x98] sm:$0xff] %v126_v19  ;;  %v4945_v58 = vld [vmem:[#allocation5 + $0x1a0] sm:$0xf]  ;;  %v6914_v59 = vld [vmem:[#allocation5 + $0x1ac] sm:$0xf0]  ;;  %v4818_v61 = vor.u32 %v6882_v56, %v4817_v55  ;;  %1582 = vmatpush.bf16.msra.mxu2 %v5090_v53 }
  0x25   :  { %129 = vst [vmem:[#allocation2 + $0xa0] sm:$0xff] %v128_v20  ;;  %v5073_v60 = vld [vmem:[#allocation5 + $0x2a0] sm:$0xf]  ;;  %v6946_v62 = vld [vmem:[#allocation5 + $0x2ac] sm:$0xf0]  ;;  %v4946_v1 = vor.u32 %v6914_v59, %v4945_v58  ;;  %1595 = vmatpush.bf16.msra.mxu3 %v5218_v57 }
  0x26   :  { %131 = vst [vmem:[#allocation2 + $0xa8] sm:$0xff] %v130_v21  ;;  %v5201_v63 = vld [vmem:[#allocation5 + $0x3a0] sm:$0xf]  ;;  %v6978_v0 = vld [vmem:[#allocation5 + $0x3ac] sm:$0xf0]  ;;  %v5074_v2 = vor.u32 %v6946_v62, %v5073_v60  ;;  %1557 = vmatpush.bf16.msra.mxu0 %v4818_v61 }
  0x27   :  { %133 = vst [vmem:[#allocation2 + $0xb0] sm:$0xff] %v132_v22  ;;  %v4801_v3 = vld [vmem:[#allocation5 + $0x80] sm:$0xf]  ;;  %v6878_v4 = vld [vmem:[#allocation5 + $0x8c] sm:$0xf0]  ;;  %v5202_v6 = vor.u32 %v6978_v0, %v5201_v63  ;;  %1570 = vmatpush.bf16.msra.mxu1 %v4946_v1 }
  0x28   :  { %135 = vst [vmem:[#allocation2 + $0xb8] sm:$0xff] %v134_v23  ;;  %v4929_v5 = vld [vmem:[#allocation5 + $0x180] sm:$0xf]  ;;  %v6910_v7 = vld [vmem:[#allocation5 + $0x18c] sm:$0xf0]  ;;  %v4802_v12 = vor.u32 %v6878_v4, %v4801_v3  ;;  %1583 = vmatpush.bf16.msra.mxu2 %v5074_v2 }
  0x29   :  { %137 = vst [vmem:[#allocation2 + $0xc0] sm:$0xff] %v136_v24  ;;  %v5057_v8 = vld [vmem:[#allocation5 + $0x280] sm:$0xf]  ;;  %v6942_v9 = vld [vmem:[#allocation5 + $0x28c] sm:$0xf0]  ;;  %v4930_v13 = vor.u32 %v6910_v7, %v4929_v5  ;;  %1596 = vmatpush.bf16.msra.mxu3 %v5202_v6 }
  0x2a   :  { %139 = vst [vmem:[#allocation2 + $0xc8] sm:$0xff] %v138_v25  ;;  %v5185_v10 = vld [vmem:[#allocation5 + $0x380] sm:$0xf]  ;;  %v6974_v11 = vld [vmem:[#allocation5 + $0x38c] sm:$0xf0]  ;;  %v5058_v14 = vor.u32 %v6942_v9, %v5057_v8  ;;  %1558 = vmatpush.bf16.msra.mxu0 %v4802_v12 }
  0x2b   :  { %141 = vst [vmem:[#allocation2 + $0xd0] sm:$0xff] %v140_v26  ;;  %v4785_v15 = vld [vmem:[#allocation5 + $0x60] sm:$0xf]  ;;  %v6874_v16 = vld [vmem:[#allocation5 + $0x6c] sm:$0xf0]  ;;  %v5186_v18 = vor.u32 %v6974_v11, %v5185_v10  ;;  %1571 = vmatpush.bf16.msra.mxu1 %v4930_v13 }
  0x2c   :  { %143 = vst [vmem:[#allocation2 + $0xd8] sm:$0xff] %v142_v27  ;;  %v4913_v17 = vld [vmem:[#allocation5 + $0x160] sm:$0xf]  ;;  %v6906_v19 = vld [vmem:[#allocation5 + $0x16c] sm:$0xf0]  ;;  %v4786_v24 = vor.u32 %v6874_v16, %v4785_v15  ;;  %1584 = vmatpush.bf16.msra.mxu2 %v5058_v14 }
  0x2d   :  { %145 = vst [vmem:[#allocation2 + $0xe0] sm:$0xff] %v144_v28  ;;  %v5041_v20 = vld [vmem:[#allocation5 + $0x260] sm:$0xf]  ;;  %v6938_v21 = vld [vmem:[#allocation5 + $0x26c] sm:$0xf0]  ;;  %v4914_v25 = vor.u32 %v6906_v19, %v4913_v17  ;;  %1597 = vmatpush.bf16.msra.mxu3 %v5186_v18 }
  0x2e   :  { %147 = vst [vmem:[#allocation2 + $0xe8] sm:$0xff] %v146_v29  ;;  %v5169_v22 = vld [vmem:[#allocation5 + $0x360] sm:$0xf]  ;;  %v6970_v23 = vld [vmem:[#allocation5 + $0x36c] sm:$0xf0]  ;;  %v5042_v26 = vor.u32 %v6938_v21, %v5041_v20  ;;  %1559 = vmatpush.bf16.msra.mxu0 %v4786_v24 }
  0x2f   :  { %149 = vst [vmem:[#allocation2 + $0xf0] sm:$0xff] %v148_v30  ;;  %v4769_v27 = vld [vmem:[#allocation5 + $0x40] sm:$0xf]  ;;  %v6870_v28 = vld [vmem:[#allocation5 + $0x4c] sm:$0xf0]  ;;  %v5170_v30 = vor.u32 %v6970_v23, %v5169_v22  ;;  %1572 = vmatpush.bf16.msra.mxu1 %v4914_v25 }
  0x30   :  { %151 = vst [vmem:[#allocation2 + $0xf8] sm:$0xff] %v150_v31  ;;  %v4897_v29 = vld [vmem:[#allocation5 + $0x140] sm:$0xf]  ;;  %v6902_v31 = vld [vmem:[#allocation5 + $0x14c] sm:$0xf0]  ;;  %v4770_v36 = vor.u32 %v6870_v28, %v4769_v27  ;;  %1585 = vmatpush.bf16.msra.mxu2 %v5042_v26 }
  0x31   :  { %v5025_v32 = vld [vmem:[#allocation5 + $0x240] sm:$0xf]  ;;  %v6934_v33 = vld [vmem:[#allocation5 + $0x24c] sm:$0xf0]  ;;  %v4898_v37 = vor.u32 %v6902_v31, %v4897_v29  ;;  %1598 = vmatpush.bf16.msra.mxu3 %v5170_v30  ;;  %v6888_v5 = vld [vmem:[#allocation5 + $0xe4] sm:$0xf] }
  0x32   :  { %v5153_v34 = vld [vmem:[#allocation5 + $0x340] sm:$0xf]  ;;  %v6966_v35 = vld [vmem:[#allocation5 + $0x34c] sm:$0xf0]  ;;  %v5026_v38 = vor.u32 %v6934_v33, %v5025_v32  ;;  %1560 = vmatpush.bf16.msra.mxu0 %v4770_v36  ;;  %v4851_v6 = vld [vmem:[#allocation5 + $0xf0] sm:$0xf0] }
  0x33   :  { %v4753_v39 = vld [vmem:[#allocation5 + $0x20] sm:$0xf]  ;;  %v6866_v40 = vld [vmem:[#allocation5 + $0x2c] sm:$0xf0]  ;;  %v5154_v42 = vor.u32 %v6966_v35, %v5153_v34  ;;  %1573 = vmatpush.bf16.msra.mxu1 %v4898_v37  ;;  %v4854_v14 = vor.u32 %v6888_v5, %v4851_v6  ;;  %v6884_v18 = vld [vmem:[#allocation5 + $0xc4] sm:$0xf] }
  0x34   :  { %v4881_v41 = vld [vmem:[#allocation5 + $0x120] sm:$0xf]  ;;  %v6898_v43 = vld [vmem:[#allocation5 + $0x12c] sm:$0xf0]  ;;  %v4754_v48 = vor.u32 %v6866_v40, %v4753_v39  ;;  %1586 = vmatpush.bf16.msra.mxu2 %v5026_v38  ;;  %v4835_v19 = vld [vmem:[#allocation5 + $0xd0] sm:$0xf0] }
  0x35   :  { %v5009_v44 = vld [vmem:[#allocation5 + $0x220] sm:$0xf]  ;;  %v6930_v45 = vld [vmem:[#allocation5 + $0x22c] sm:$0xf0]  ;;  %v4882_v51 = vor.u32 %v6898_v43, %v4881_v41  ;;  %1599 = vmatpush.bf16.msra.mxu3 %v5154_v42  ;;  %v4838_v27 = vor.u32 %v6884_v18, %v4835_v19  ;;  %v6880_v30 = vld [vmem:[#allocation5 + $0xa4] sm:$0xf] }
  0x36   :  { %v5137_v46 = vld [vmem:[#allocation5 + $0x320] sm:$0xf]  ;;  %v6962_v47 = vld [vmem:[#allocation5 + $0x32c] sm:$0xf0]  ;;  %v5010_v52 = vor.u32 %v6930_v45, %v5009_v44  ;;  %1561 = vmatpush.bf16.msra.mxu0 %v4754_v48  ;;  %v4819_v31 = vld [vmem:[#allocation5 + $0xb0] sm:$0xf0] }
  0x37   :  { %v4737_v49 = vld [vmem:[#allocation5] sm:$0xf]  ;;  %v6862_v50 = vld [vmem:[#allocation5 + $0xc] sm:$0xf0]  ;;  %v5138_v56 = vor.u32 %v6962_v47, %v5137_v46  ;;  %1574 = vmatpush.bf16.msra.mxu1 %v4882_v51  ;;  %v173_v34 = vld [vmem:[%s8122_s0 + $0x8] sm:$0xff]  ;;  %v4822_v43 = vor.u32 %v6880_v30, %v4819_v31 }
  0x38   :  { %v4865_v53 = vld [vmem:[#allocation5 + $0x100] sm:$0xf]  ;;  %v6894_v54 = vld [vmem:[#allocation5 + $0x10c] sm:$0xf0]  ;;  %v4738_v63 = vor.u32 %v6862_v50, %v4737_v49  ;;  %1587 = vmatpush.bf16.msra.mxu2 %v5010_v52  ;;  %v416_v40 = vunpack.c.l.b16 %v173_v34  ;;  %v417_v42 = vunpack.c.h.b16 %v173_v34  ;;  %v6876_v48 = vld [vmem:[#allocation5 + $0x84] sm:$0xf] }
  0x39   :  { %v4993_v55 = vld [vmem:[#allocation5 + $0x200] sm:$0xf]  ;;  %v6926_v57 = vld [vmem:[#allocation5 + $0x20c] sm:$0xf0]  ;;  %v4866_v3 = vor.u32 %v6894_v54, %v4865_v53  ;;  %1600 = vmatpush.bf16.msra.mxu3 %v5138_v56  ;;  %v4803_v49 = vld [vmem:[#allocation5 + $0x90] sm:$0xf0] }
  0x3a   :  { %v5121_v58 = vld [vmem:[#allocation5 + $0x300] sm:$0xf]  ;;  %v6958_v59 = vld [vmem:[#allocation5 + $0x30c] sm:$0xf0]  ;;  %v4994_v4 = vor.u32 %v6926_v57, %v4993_v55  ;;  %1562 = vmatpush.bf16.msra.mxu0 %v4738_v63  ;;  %v7727_v50 = vpack.c.b16 %v416_v40, %v416_v40  ;;  %v7731_v52 = vpack.c.b16 %v417_v42, %v417_v42  ;;  %v6920_v40 = vld [vmem:[#allocation5 + $0x1e4] sm:$0xf] }
  0x3b   :  { %v5361_v60 = vld [vmem:[#allocation5 + $0x4e0] sm:$0xf]  ;;  %v7018_v61 = vld [vmem:[#allocation5 + $0x4ec] sm:$0xf0]  ;;  %v5122_v7 = vor.u32 %v6958_v59, %v5121_v58  ;;  %1575 = vmatpush.bf16.msra.mxu1 %v4866_v3  ;;  %v6952_v42 = vld [vmem:[#allocation5 + $0x2e4] sm:$0xf] }
  0x3c   :  { %v5489_v62 = vld [vmem:[#allocation5 + $0x5e0] sm:$0xf]  ;;  %v7050_v0 = vld [vmem:[#allocation5 + $0x5ec] sm:$0xf0]  ;;  %v5362_v8 = vor.u32 %v7018_v61, %v5361_v60  ;;  %1588 = vmatpush.bf16.msra.mxu2 %v4994_v4  ;;  %v4806_v60 = vor.u32 %v6876_v48, %v4803_v49 }
  0x3d   :  { %v5617_v1 = vld [vmem:[#allocation5 + $0x6e0] sm:$0xf]  ;;  %v7082_v2 = vld [vmem:[#allocation5 + $0x6ec] sm:$0xf0]  ;;  %v5490_v9 = vor.u32 %v7050_v0, %v5489_v62  ;;  %1601 = vmatpush.bf16.msra.mxu3 %v5122_v7  ;;  %v6872_v0 = vld [vmem:[#allocation5 + $0x64] sm:$0xf] }
  0x3e   :  { %v5618_v10 = vor.u32 %v7082_v2, %v5617_v1  ;;  %v5345_v11 = vld [vmem:[#allocation5 + $0x4c0] sm:$0xf]  ;;  %v7014_v12 = vld [vmem:[#allocation5 + $0x4cc] sm:$0xf0]  ;;  %1607 = vmatpush.bf16.msrb.mxu0 %v5362_v8  ;;  %v4787_v1 = vld [vmem:[#allocation5 + $0x70] sm:$0xf0] }
  0x3f   :  { %v5473_v13 = vld [vmem:[#allocation5 + $0x5c0] sm:$0xf]  ;;  %v7046_v15 = vld [vmem:[#allocation5 + $0x5cc] sm:$0xf0]  ;;  %v5346_v20 = vor.u32 %v7014_v12, %v5345_v11  ;;  %1620 = vmatpush.bf16.msrb.mxu1 %v5490_v9  ;;  %1589 = vmatmul.bf16.vlgmr.msra.gmra.mxu2 %v7727_v50  ;;  %v4790_v8 = vor.u32 %v6872_v0, %v4787_v1  ;;  %v6868_v12 = vld [vmem:[#allocation5 + $0x44] sm:$0xf] }
  0x40   :  { %v5601_v16 = vld [vmem:[#allocation5 + $0x6c0] sm:$0xf]  ;;  %v7078_v17 = vld [vmem:[#allocation5 + $0x6cc] sm:$0xf0]  ;;  %1633 = vmatpush.bf16.msrb.mxu2 %v5618_v10  ;;  %v5474_v22 = vor.u32 %v7046_v15, %v5473_v13  ;;  %1602 = vmatmul.bf16.vlgmr.msra.gmra.mxu3 %v7731_v52  ;;  %v4771_v13 = vld [vmem:[#allocation5 + $0x50] sm:$0xf0] }
  0x41   :  { %v5329_v21 = vld [vmem:[#allocation5 + $0x4a0] sm:$0xf]  ;;  %v5602_v23 = vor.u32 %v7078_v17, %v5601_v16  ;;  %v7010_v24 = vld [vmem:[#allocation5 + $0x4ac] sm:$0xf0]  ;;  %1646 = vmatpush.bf16.msrb.mxu3 %v4854_v14  ;;  %v6948_v0 = vld [vmem:[#allocation5 + $0x2c4] sm:$0xf] }
  0x42   :  { %v5457_v25 = vld [vmem:[#allocation5 + $0x5a0] sm:$0xf]  ;;  %v7042_v26 = vld [vmem:[#allocation5 + $0x5ac] sm:$0xf0]  ;;  %1608 = vmatpush.bf16.msrb.mxu0 %v5346_v20  ;;  %v5330_v32 = vor.u32 %v7010_v24, %v5329_v21  ;;  %v4774_v20 = vor.u32 %v6868_v12, %v4771_v13  ;;  %v6864_v24 = vld [vmem:[#allocation5 + $0x24] sm:$0xf] }
  0x43   :  { %v5585_v28 = vld [vmem:[#allocation5 + $0x6a0] sm:$0xf]  ;;  %v7074_v29 = vld [vmem:[#allocation5 + $0x6ac] sm:$0xf0]  ;;  %v5458_v33 = vor.u32 %v7042_v26, %v5457_v25  ;;  %1621 = vmatpush.bf16.msrb.mxu1 %v5474_v22  ;;  %v4755_v25 = vld [vmem:[#allocation5 + $0x30] sm:$0xf0] }
  0x44   :  { %v172_v35 = vld [vmem:[%s8122_s0] sm:$0xff]  ;;  %1634 = vmatpush.bf16.msrb.mxu2 %v5602_v23  ;;  %v5586_v36 = vor.u32 %v7074_v29, %v5585_v28  ;;  %v7006_v38 = vld [vmem:[#allocation5 + $0x48c] sm:$0xf0] }
  0x45   :  { %v5313_v37 = vld [vmem:[#allocation5 + $0x480] sm:$0xf]  ;;  %v414_v41 = vunpack.c.l.b16 %v172_v35  ;;  %1647 = vmatpush.bf16.msrb.mxu3 %v4838_v27  ;;  %v7038_v44 = vld [vmem:[#allocation5 + $0x58c] sm:$0xf0]  ;;  %v415_v47 = vunpack.c.h.b16 %v172_v35  ;;  %v175_v35 = vld [vmem:[%s8122_s0 + $0x18] sm:$0xf] }
  0x46   :  { %v5441_v39 = vld [vmem:[#allocation5 + $0x580] sm:$0xf]  ;;  %v7070_v46 = vld [vmem:[#allocation5 + $0x68c] sm:$0xf0]  ;;  %1609 = vmatpush.bf16.msrb.mxu0 %v5330_v32  ;;  %v5314_v53 = vor.u32 %v7006_v38, %v5313_v37  ;;  %v6860_v37 = vld [vmem:[#allocation5 + $0x4] sm:$0xf] }
  0x47   :  { %v5569_v45 = vld [vmem:[#allocation5 + $0x680] sm:$0xf]  ;;  %v7729_v51 = vpack.c.b16 %v414_v41, %v414_v41  ;;  %v7733_v54 = vpack.c.b16 %v415_v47, %v415_v47  ;;  %1622 = vmatpush.bf16.msrb.mxu1 %v5458_v33  ;;  %v5442_v55 = vor.u32 %v7038_v44, %v5441_v39  ;;  %v7002_v58 = vld [vmem:[#allocation5 + $0x46c] sm:$0xf0]  ;;  %v4739_v38 = vld [vmem:[#allocation5 + $0x10] sm:$0xf0]  ;;  %v420_v47 = vunpack.c.l.b16 %v175_v35 }
  0x48   :  { %1635 = vmatpush.bf16.msrb.mxu2 %v5586_v36  ;;  %v5570_v56 = vor.u32 %v7070_v46, %v5569_v45  ;;  %v5297_v57 = vld [vmem:[#allocation5 + $0x460] sm:$0xf]  ;;  %v7034_v61 = vld [vmem:[#allocation5 + $0x56c] sm:$0xf0]  ;;  %v4758_v36 = vor.u32 %v6864_v24, %v4755_v25  ;;  %v4979_v41 = vld [vmem:[#allocation5 + $0x1f0] sm:$0xf0] }
  0x49   :  { %v5425_v59 = vld [vmem:[#allocation5 + $0x560] sm:$0xf]  ;;  %1648 = vmatpush.bf16.msrb.mxu3 %v4822_v43  ;;  %v7066_v63 = vld [vmem:[#allocation5 + $0x66c] sm:$0xf0]  ;;  %1563 = vmatmul.bf16.vlgmr.msra.gmra.mxu0 %v7729_v51  ;;  %v5298_v2 = vor.u32 %v7002_v58, %v5297_v57  ;;  %v5107_v44 = vld [vmem:[#allocation5 + $0x2f0] sm:$0xf0]  ;;  %v4742_v58 = vor.u32 %v6860_v37, %v4739_v38 }
  0x4a   :  { %v5553_v62 = vld [vmem:[#allocation5 + $0x660] sm:$0xf]  ;;  %1610 = vmatpush.bf16.msrb.mxu0 %v5314_v53  ;;  %1576 = vmatmul.bf16.vlgmr.msra.gmra.mxu1 %v7733_v54  ;;  %v5426_v3 = vor.u32 %v7034_v61, %v5425_v59  ;;  %v6998_v6 = vld [vmem:[#allocation5 + $0x44c] sm:$0xf0]  ;;  %v6984_v45 = vld [vmem:[#allocation5 + $0x3e4] sm:$0xf]  ;;  %v4982_v59 = vor.u32 %v6920_v40, %v4979_v41 }
  0x4b   :  { %1623 = vmatpush.bf16.msrb.mxu1 %v5442_v55  ;;  %v5554_v4 = vor.u32 %v7066_v63, %v5553_v62  ;;  %v5281_v5 = vld [vmem:[#allocation5 + $0x440] sm:$0xf]  ;;  %v7030_v9 = vld [vmem:[#allocation5 + $0x54c] sm:$0xf0]  ;;  %v5235_v46 = vld [vmem:[#allocation5 + $0x3f0] sm:$0xf0] }
  0x4c   :  { %1636 = vmatpush.bf16.msrb.mxu2 %v5570_v56  ;;  %v5409_v7 = vld [vmem:[#allocation5 + $0x540] sm:$0xf]  ;;  %v7062_v11 = vld [vmem:[#allocation5 + $0x64c] sm:$0xf0]  ;;  %v5282_v14 = vor.u32 %v6998_v6, %v5281_v5  ;;  %v7016_v53 = vld [vmem:[#allocation5 + $0x4e4] sm:$0xf]  ;;  %v5238_v61 = vor.u32 %v6984_v45, %v5235_v46  ;;  %v7745_v5 = vpack.c.b16 %v420_v47, %v420_v47 }
  0x4d   :  { %1649 = vmatpush.bf16.msrb.mxu3 %v4806_v60  ;;  %v5537_v10 = vld [vmem:[#allocation5 + $0x640] sm:$0xf]  ;;  %v5410_v15 = vor.u32 %v7030_v9, %v5409_v7  ;;  %v6994_v18 = vld [vmem:[#allocation5 + $0x42c] sm:$0xf0]  ;;  %v5363_v55 = vld [vmem:[#allocation5 + $0x4f0] sm:$0xf0]  ;;  %v5110_v60 = vor.u32 %v6952_v42, %v5107_v44 }
  0x4e   :  { %1611 = vmatpush.bf16.msrb.mxu0 %v5298_v2  ;;  %v5538_v16 = vor.u32 %v7062_v11, %v5537_v10  ;;  %v5265_v17 = vld [vmem:[#allocation5 + $0x420] sm:$0xf]  ;;  %v7026_v21 = vld [vmem:[#allocation5 + $0x52c] sm:$0xf0]  ;;  %v6916_v62 = vld [vmem:[#allocation5 + $0x1c4] sm:$0xf]  ;;  %v5366_v1 = vor.u32 %v7016_v53, %v5363_v55 }
  0x4f   :  { %1624 = vmatpush.bf16.msrb.mxu1 %v5426_v3  ;;  %v5393_v19 = vld [vmem:[#allocation5 + $0x520] sm:$0xf]  ;;  %v7058_v23 = vld [vmem:[#allocation5 + $0x62c] sm:$0xf0]  ;;  %v5266_v27 = vor.u32 %v6994_v18, %v5265_v17  ;;  %v4963_v63 = vld [vmem:[#allocation5 + $0x1d0] sm:$0xf0] }
  0x50   :  { %1637 = vmatpush.bf16.msrb.mxu2 %v5554_v4  ;;  %v5521_v22 = vld [vmem:[#allocation5 + $0x620] sm:$0xf]  ;;  %v6990_v28 = vld [vmem:[#allocation5 + $0x40c] sm:$0xf0]  ;;  %v5394_v31 = vor.u32 %v7026_v21, %v5393_v19  ;;  %v5091_v2 = vld [vmem:[#allocation5 + $0x2d0] sm:$0xf0]  ;;  %v4966_v10 = vor.u32 %v6916_v62, %v4963_v63 }
  0x51   :  { %1650 = vmatpush.bf16.msrb.mxu3 %v4790_v8  ;;  %v5249_v26 = vld [vmem:[#allocation5 + $0x400] sm:$0xf]  ;;  %v7022_v30 = vld [vmem:[#allocation5 + $0x50c] sm:$0xf0]  ;;  %v5522_v32 = vor.u32 %v7058_v23, %v5521_v22  ;;  %v6980_v3 = vld [vmem:[#allocation5 + $0x3c4] sm:$0xf]  ;;  %v5094_v11 = vor.u32 %v6948_v0, %v5091_v2 }
  0x52   :  { %1612 = vmatpush.bf16.msrb.mxu0 %v5282_v14  ;;  %v5377_v29 = vld [vmem:[#allocation5 + $0x500] sm:$0xf]  ;;  %v7054_v34 = vld [vmem:[#allocation5 + $0x60c] sm:$0xf0]  ;;  %v5250_v43 = vor.u32 %v6990_v28, %v5249_v26  ;;  %v5219_v4 = vld [vmem:[#allocation5 + $0x3d0] sm:$0xf0] }
  0x53   :  { %1625 = vmatpush.bf16.msrb.mxu1 %v5410_v15  ;;  %v5505_v33 = vld [vmem:[#allocation5 + $0x600] sm:$0xf]  ;;  %v174_v39 = vld [vmem:[%s8122_s0 + $0x10] sm:$0xff]  ;;  %v5378_v48 = vor.u32 %v7022_v30, %v5377_v29  ;;  %v7012_v6 = vld [vmem:[#allocation5 + $0x4c4] sm:$0xf]  ;;  %v5222_v12 = vor.u32 %v6980_v3, %v5219_v4 }
  0x54   :  { %1638 = vmatpush.bf16.msrb.mxu2 %v5538_v16  ;;  %v5506_v49 = vor.u32 %v7054_v34, %v5505_v33  ;;  %v418_v56 = vunpack.c.l.b16 %v174_v39  ;;  %v419_v57 = vunpack.c.h.b16 %v174_v39  ;;  %v5347_v7 = vld [vmem:[#allocation5 + $0x4d0] sm:$0xf0]  ;;  %v6912_v13 = vld [vmem:[#allocation5 + $0x1a4] sm:$0xf] }
  0x55   :  { %1651 = vmatpush.bf16.msrb.mxu3 %v4774_v20  ;;  %v4947_v14 = vld [vmem:[#allocation5 + $0x1b0] sm:$0xf0]  ;;  %v6944_v15 = vld [vmem:[#allocation5 + $0x2a4] sm:$0xf]  ;;  %v5350_v16 = vor.u32 %v7012_v6, %v5347_v7 }
  0x56   :  { %1613 = vmatpush.bf16.msrb.mxu0 %v5266_v27  ;;  %v7747_v8 = vpack.c.b16 %v418_v56, %v418_v56  ;;  %v7749_v9 = vpack.c.b16 %v419_v57, %v419_v57  ;;  %v5075_v17 = vld [vmem:[#allocation5 + $0x2b0] sm:$0xf0]  ;;  %v6976_v18 = vld [vmem:[#allocation5 + $0x3a4] sm:$0xf]  ;;  %v4950_v22 = vor.u32 %v6912_v13, %v4947_v14 }
  0x57   :  { %1626 = vmatpush.bf16.msrb.mxu1 %v5394_v31  ;;  %v5203_v19 = vld [vmem:[#allocation5 + $0x3b0] sm:$0xf0]  ;;  %v7008_v20 = vld [vmem:[#allocation5 + $0x4a4] sm:$0xf]  ;;  %v5078_v23 = vor.u32 %v6944_v15, %v5075_v17 }
  0x58   :  { %1639 = vmatpush.bf16.msrb.mxu2 %v5522_v32  ;;  %v5331_v21 = vld [vmem:[#allocation5 + $0x4b0] sm:$0xf0]  ;;  %v5206_v24 = vor.u32 %v6976_v18, %v5203_v19  ;;  %v6908_v25 = vld [vmem:[#allocation5 + $0x184] sm:$0xf] }
  0x59   :  { %1652 = vmatpush.bf16.msrb.mxu3 %v4758_v36  ;;  %v4931_v26 = vld [vmem:[#allocation5 + $0x190] sm:$0xf0]  ;;  %v6940_v27 = vld [vmem:[#allocation5 + $0x284] sm:$0xf]  ;;  %v5334_v28 = vor.u32 %v7008_v20, %v5331_v21 }
  0x5a   :  { %1614 = vmatpush.bf16.msrb.mxu0 %v5250_v43  ;;  %v5059_v29 = vld [vmem:[#allocation5 + $0x290] sm:$0xf0]  ;;  %v6972_v30 = vld [vmem:[#allocation5 + $0x384] sm:$0xf]  ;;  %v4934_v34 = vor.u32 %v6908_v25, %v4931_v26 }
  0x5b   :  { %1627 = vmatpush.bf16.msrb.mxu1 %v5378_v48  ;;  %v5187_v31 = vld [vmem:[#allocation5 + $0x390] sm:$0xf0]  ;;  %v7004_v32 = vld [vmem:[#allocation5 + $0x484] sm:$0xf]  ;;  %v5062_v35 = vor.u32 %v6940_v27, %v5059_v29 }
  0x5c   :  { %1640 = vmatpush.bf16.msrb.mxu2 %v5506_v49  ;;  %v5315_v33 = vld [vmem:[#allocation5 + $0x490] sm:$0xf0]  ;;  %v5190_v36 = vor.u32 %v6972_v30, %v5187_v31  ;;  %v6904_v37 = vld [vmem:[#allocation5 + $0x164] sm:$0xf] }
  0x5d   :  { %1653 = vmatpush.bf16.msrb.mxu3 %v4742_v58  ;;  %1615 = vmatmul.bf16.vlgmr.msrb.gmra.mxu0 %v7747_v8  ;;  %v4915_v38 = vld [vmem:[#allocation5 + $0x170] sm:$0xf0]  ;;  %v6936_v39 = vld [vmem:[#allocation5 + $0x264] sm:$0xf]  ;;  %v5318_v40 = vor.u32 %v7004_v32, %v5315_v33 }
  0x5e   :  { %1659 = vmatpush.bf16.msra.mxu0 %v4982_v59  ;;  %1628 = vmatmul.bf16.vlgmr.msrb.gmra.mxu1 %v7749_v9  ;;  %v5043_v41 = vld [vmem:[#allocation5 + $0x270] sm:$0xf0]  ;;  %v6968_v42 = vld [vmem:[#allocation5 + $0x364] sm:$0xf]  ;;  %v4918_v46 = vor.u32 %v6904_v37, %v4915_v38 }
  0x5f   :  { %1672 = vmatpush.bf16.msra.mxu1 %v5110_v60  ;;  %1641 = vmatmul.bf16.vlgmr.msrb.gmra.mxu2 %v7745_v5  ;;  %v5171_v43 = vld [vmem:[#allocation5 + $0x370] sm:$0xf0]  ;;  %v7000_v44 = vld [vmem:[#allocation5 + $0x464] sm:$0xf]  ;;  %v5046_v47 = vor.u32 %v6936_v39, %v5043_v41 }
  0x60   :  { %1685 = vmatpush.bf16.msra.mxu2 %v5238_v61  ;;  %1654 = vmatmul.bf16.vlgmr.msrb.gmra.mxu3 %v7729_v51  ;;  %v5299_v45 = vld [vmem:[#allocation5 + $0x470] sm:$0xf0]  ;;  %v5174_v48 = vor.u32 %v6968_v42, %v5171_v43  ;;  %v6900_v49 = vld [vmem:[#allocation5 + $0x144] sm:$0xf] }
  0x61   :  { %1698 = vmatpush.bf16.msra.mxu3 %v5366_v1  ;;  %v4899_v53 = vld [vmem:[#allocation5 + $0x150] sm:$0xf0]  ;;  %v6932_v55 = vld [vmem:[#allocation5 + $0x244] sm:$0xf]  ;;  %v5302_v56 = vor.u32 %v7000_v44, %v5299_v45 }
  0x62   :  { %1660 = vmatpush.bf16.msra.mxu0 %v4966_v10  ;;  %v5027_v57 = vld [vmem:[#allocation5 + $0x250] sm:$0xf0]  ;;  %v6964_v58 = vld [vmem:[#allocation5 + $0x344] sm:$0xf]  ;;  %v4902_v62 = vor.u32 %v6900_v49, %v4899_v53 }
  0x63   :  { %1673 = vmatpush.bf16.msra.mxu1 %v5094_v11  ;;  %v5155_v59 = vld [vmem:[#allocation5 + $0x350] sm:$0xf0]  ;;  %v6996_v60 = vld [vmem:[#allocation5 + $0x444] sm:$0xf]  ;;  %v5030_v1 = vor.u32 %v6932_v55, %v5027_v57 }
  0x64   :  { %1686 = vmatpush.bf16.msra.mxu2 %v5222_v12  ;;  %v5283_v61 = vld [vmem:[#allocation5 + $0x450] sm:$0xf0]  ;;  %v6896_v63 = vld [vmem:[#allocation5 + $0x124] sm:$0xf]  ;;  %v5158_v2 = vor.u32 %v6964_v58, %v5155_v59 }
  0x65   :  { %1699 = vmatpush.bf16.msra.mxu3 %v5350_v16  ;;  %v4883_v0 = vld [vmem:[#allocation5 + $0x130] sm:$0xf0]  ;;  %v6928_v3 = vld [vmem:[#allocation5 + $0x224] sm:$0xf]  ;;  %v5286_v7 = vor.u32 %v6996_v60, %v5283_v61 }
  0x66   :  { %1661 = vmatpush.bf16.msra.mxu0 %v4950_v22  ;;  %v5011_v4 = vld [vmem:[#allocation5 + $0x230] sm:$0xf0]  ;;  %v6960_v6 = vld [vmem:[#allocation5 + $0x324] sm:$0xf]  ;;  %v4886_v13 = vor.u32 %v6896_v63, %v4883_v0 }
  0x67   :  { %1674 = vmatpush.bf16.msra.mxu1 %v5078_v23  ;;  %v5139_v10 = vld [vmem:[#allocation5 + $0x330] sm:$0xf0]  ;;  %v6992_v11 = vld [vmem:[#allocation5 + $0x424] sm:$0xf] }
  0x68   :  { %1687 = vmatpush.bf16.msra.mxu2 %v5206_v24  ;;  %v5267_v12 = vld [vmem:[#allocation5 + $0x430] sm:$0xf0]  ;;  %v6892_v14 = vld [vmem:[#allocation5 + $0x104] sm:$0xf] }
  0x69   :  { %1700 = vmatpush.bf16.msra.mxu3 %v5334_v28  ;;  %v4867_v15 = vld [vmem:[#allocation5 + $0x110] sm:$0xf0] }
  0x6a   :  { %1662 = vmatpush.bf16.msra.mxu0 %v4934_v34 }
  0x6b   :  { %1675 = vmatpush.bf16.msra.mxu1 %v5062_v35 }
  0x6c   :  { %1688 = vmatpush.bf16.msra.mxu2 %v5190_v36 }
  0x6d   :  { %1701 = vmatpush.bf16.msra.mxu3 %v5318_v40 }
  0x6e   :  { %1663 = vmatpush.bf16.msra.mxu0 %v4918_v46 }
  0x6f   :  { %1676 = vmatpush.bf16.msra.mxu1 %v5046_v47 }
  0x70   :  { %1689 = vmatpush.bf16.msra.mxu2 %v5174_v48 }
  0x71   :  { %1702 = vmatpush.bf16.msra.mxu3 %v5302_v56 }
  0x72   :  { %1664 = vmatpush.bf16.msra.mxu0 %v4902_v62 }
  0x73   :  { %157 = vsyncadd [#allocation4], 4096  ;;  %1677 = vmatpush.bf16.msra.mxu1 %v5030_v1  ;;  %v5014_v16 = vor.u32 %v6928_v3, %v5011_v4  ;;  %v5142_v17 = vor.u32 %v6960_v6, %v5139_v10  ;;  %v6924_v18 = vld [vmem:[#allocation5 + $0x204] sm:$0xf]  ;;  %v4995_v19 = vld [vmem:[#allocation5 + $0x210] sm:$0xf0]  ;;  %v5270_v21 = vor.u32 %v6992_v11, %v5267_v12  ;;  %v4870_v28 = vor.u32 %v6892_v14, %v4867_v15 }
  0x74   :  { %1690 = vmatpush.bf16.msra.mxu2 %v5158_v2  ;;  %v6956_v20 = vld [vmem:[#allocation5 + $0x304] sm:$0xf]  ;;  %v5123_v22 = vld [vmem:[#allocation5 + $0x310] sm:$0xf0]  ;;  %v4857_v30 = vld [vmem:[#allocation5 + $0xe8] sm:$0xf]  ;;  %v4998_v32 = vor.u32 %v6924_v18, %v4995_v19 }
  0x75   :  { %1703 = vmatpush.bf16.msra.mxu3 %v5286_v7  ;;  %v6988_v23 = vld [vmem:[#allocation5 + $0x404] sm:$0xf]  ;;  %v5251_v24 = vld [vmem:[#allocation5 + $0x410] sm:$0xf0]  ;;  %v6891_v31 = vld [vmem:[#allocation5 + $0xf4] sm:$0xf0]  ;;  %v5126_v33 = vor.u32 %v6956_v20, %v5123_v22 }
  0x76   :  { %v7048_v25 = vld [vmem:[#allocation5 + $0x5e4] sm:$0xf]  ;;  %v5491_v26 = vld [vmem:[#allocation5 + $0x5f0] sm:$0xf0]  ;;  %1665 = vmatpush.bf16.msra.mxu0 %v4886_v13  ;;  %v4985_v34 = vld [vmem:[#allocation5 + $0x1e8] sm:$0xf]  ;;  %v5254_v36 = vor.u32 %v6988_v23, %v5251_v24  ;;  %v4858_v39 = vor.u32 %v6891_v31, %v4857_v30 }
  0x77   :  { %v7080_v27 = vld [vmem:[#allocation5 + $0x6e4] sm:$0xf]  ;;  %v5619_v29 = vld [vmem:[#allocation5 + $0x6f0] sm:$0xf0]  ;;  %1678 = vmatpush.bf16.msra.mxu1 %v5014_v16  ;;  %v6923_v35 = vld [vmem:[#allocation5 + $0x1f4] sm:$0xf0]  ;;  %v5494_v37 = vor.u32 %v7048_v25, %v5491_v26 }
  0x78   :  { %1691 = vmatpush.bf16.msra.mxu2 %v5142_v17  ;;  %v5622_v38 = vor.u32 %v7080_v27, %v5619_v29  ;;  %v7044_v40 = vld [vmem:[#allocation5 + $0x5c4] sm:$0xf]  ;;  %v5475_v41 = vld [vmem:[#allocation5 + $0x5d0] sm:$0xf0]  ;;  %v4986_v43 = vor.u32 %v6923_v35, %v4985_v34  ;;  %v4841_v45 = vld [vmem:[#allocation5 + $0xc8] sm:$0xf] }
  0x79   :  { %1704 = vmatpush.bf16.msra.mxu3 %v5270_v21  ;;  %v7076_v42 = vld [vmem:[#allocation5 + $0x6c4] sm:$0xf]  ;;  %v5603_v44 = vld [vmem:[#allocation5 + $0x6d0] sm:$0xf0]  ;;  %v6887_v46 = vld [vmem:[#allocation5 + $0xd4] sm:$0xf0]  ;;  %v5478_v49 = vor.u32 %v7044_v40, %v5475_v41 }
  0x7a   :  { %1666 = vmatpush.bf16.msra.mxu0 %v4870_v28  ;;  %v4969_v47 = vld [vmem:[#allocation5 + $0x1c8] sm:$0xf]  ;;  %v6919_v48 = vld [vmem:[#allocation5 + $0x1d4] sm:$0xf0]  ;;  %v5606_v53 = vor.u32 %v7076_v42, %v5603_v44  ;;  %v4842_v55 = vor.u32 %v6887_v46, %v4841_v45  ;;  %v7040_v56 = vld [vmem:[#allocation5 + $0x5a4] sm:$0xf] }
  0x7b   :  { %1679 = vmatpush.bf16.msra.mxu1 %v4998_v32  ;;  %v5459_v57 = vld [vmem:[#allocation5 + $0x5b0] sm:$0xf0]  ;;  %v7072_v58 = vld [vmem:[#allocation5 + $0x6a4] sm:$0xf]  ;;  %v4970_v59 = vor.u32 %v6919_v48, %v4969_v47  ;;  %v4825_v61 = vld [vmem:[#allocation5 + $0xa8] sm:$0xf] }
  0x7c   :  { %1692 = vmatpush.bf16.msra.mxu2 %v5126_v33  ;;  %v5587_v60 = vld [vmem:[#allocation5 + $0x6b0] sm:$0xf0]  ;;  %v6883_v62 = vld [vmem:[#allocation5 + $0xb4] sm:$0xf0]  ;;  %v4953_v63 = vld [vmem:[#allocation5 + $0x1a8] sm:$0xf]  ;;  %v5462_v1 = vor.u32 %v7040_v56, %v5459_v57 }
  0x7d   :  { %1705 = vmatpush.bf16.msra.mxu3 %v5254_v36  ;;  %v6915_v0 = vld [vmem:[#allocation5 + $0x1b4] sm:$0xf0]  ;;  %1667 = vmatmul.bf16.vlgmr.msra.gmra.mxu0 %v7733_v54  ;;  %v5590_v2 = vor.u32 %v7072_v58, %v5587_v60  ;;  %v4826_v3 = vor.u32 %v6883_v62, %v4825_v61  ;;  %v7036_v4 = vld [vmem:[#allocation5 + $0x584] sm:$0xf]  ;;  %v5443_v6 = vld [vmem:[#allocation5 + $0x590] sm:$0xf0] }
  0x7e   :  { %1711 = vmatpush.bf16.msrb.mxu0 %v5494_v37  ;;  %1680 = vmatmul.bf16.vlgmr.msra.gmra.mxu1 %v7727_v50  ;;  %v7068_v7 = vld [vmem:[#allocation5 + $0x684] sm:$0xf]  ;;  %v4954_v10 = vor.u32 %v6915_v0, %v4953_v63  ;;  %v5571_v11 = vld [vmem:[#allocation5 + $0x690] sm:$0xf0]  ;;  %v4809_v12 = vld [vmem:[#allocation5 + $0x88] sm:$0xf]  ;;  %v5446_v16 = vor.u32 %v7036_v4, %v5443_v6 }
  0x7f   :  { %1724 = vmatpush.bf16.msrb.mxu1 %v5622_v38  ;;  %1693 = vmatmul.bf16.vlgmr.msra.gmra.mxu2 %v7731_v52  ;;  %v6879_v13 = vld [vmem:[#allocation5 + $0x94] sm:$0xf0]  ;;  %v4937_v14 = vld [vmem:[#allocation5 + $0x188] sm:$0xf]  ;;  %v5574_v17 = vor.u32 %v7068_v7, %v5571_v11  ;;  %v7032_v19 = vld [vmem:[#allocation5 + $0x564] sm:$0xf] }
  0x80   :  { %1737 = vmatpush.bf16.msrb.mxu2 %v4858_v39  ;;  %1706 = vmatmul.bf16.vlgmr.msra.gmra.mxu3 %v7747_v8  ;;  %v6911_v15 = vld [vmem:[#allocation5 + $0x194] sm:$0xf0]  ;;  %v4810_v18 = vor.u32 %v6879_v13, %v4809_v12  ;;  %v5427_v20 = vld [vmem:[#allocation5 + $0x570] sm:$0xf0]  ;;  %v7064_v21 = vld [vmem:[#allocation5 + $0x664] sm:$0xf] }
  0x81   :  { %1750 = vmatpush.bf16.msrb.mxu3 %v4986_v43  ;;  %v4938_v22 = vor.u32 %v6911_v15, %v4937_v14  ;;  %v5555_v23 = vld [vmem:[#allocation5 + $0x670] sm:$0xf0]  ;;  %v4793_v24 = vld [vmem:[#allocation5 + $0x68] sm:$0xf]  ;;  %v6875_v25 = vld [vmem:[#allocation5 + $0x74] sm:$0xf0]  ;;  %v5430_v28 = vor.u32 %v7032_v19, %v5427_v20 }
  0x82   :  { %1712 = vmatpush.bf16.msrb.mxu0 %v5478_v49  ;;  %v4921_v26 = vld [vmem:[#allocation5 + $0x168] sm:$0xf]  ;;  %v6907_v27 = vld [vmem:[#allocation5 + $0x174] sm:$0xf0]  ;;  %v5558_v29 = vor.u32 %v7064_v21, %v5555_v23  ;;  %v4794_v30 = vor.u32 %v6875_v25, %v4793_v24  ;;  %v7028_v31 = vld [vmem:[#allocation5 + $0x544] sm:$0xf] }
  0x83   :  { %1725 = vmatpush.bf16.msrb.mxu1 %v5606_v53  ;;  %v5411_v32 = vld [vmem:[#allocation5 + $0x550] sm:$0xf0]  ;;  %v7060_v33 = vld [vmem:[#allocation5 + $0x644] sm:$0xf]  ;;  %v4922_v34 = vor.u32 %v6907_v27, %v4921_v26  ;;  %v4777_v36 = vld [vmem:[#allocation5 + $0x48] sm:$0xf] }
  0x84   :  { %1738 = vmatpush.bf16.msrb.mxu2 %v4842_v55  ;;  %v5539_v35 = vld [vmem:[#allocation5 + $0x650] sm:$0xf0]  ;;  %v6871_v37 = vld [vmem:[#allocation5 + $0x54] sm:$0xf0]  ;;  %v4905_v38 = vld [vmem:[#allocation5 + $0x148] sm:$0xf]  ;;  %v5414_v40 = vor.u32 %v7028_v31, %v5411_v32 }
  0x85   :  { %1751 = vmatpush.bf16.msrb.mxu3 %v4970_v59  ;;  %v6903_v39 = vld [vmem:[#allocation5 + $0x154] sm:$0xf0]  ;;  %v5542_v41 = vor.u32 %v7060_v33, %v5539_v35  ;;  %v4778_v42 = vor.u32 %v6871_v37, %v4777_v36  ;;  %v7024_v43 = vld [vmem:[#allocation5 + $0x524] sm:$0xf]  ;;  %v5395_v44 = vld [vmem:[#allocation5 + $0x530] sm:$0xf0] }
  0x86   :  { %1713 = vmatpush.bf16.msrb.mxu0 %v5462_v1  ;;  %v7056_v45 = vld [vmem:[#allocation5 + $0x624] sm:$0xf]  ;;  %v4906_v46 = vor.u32 %v6903_v39, %v4905_v38  ;;  %v5523_v47 = vld [vmem:[#allocation5 + $0x630] sm:$0xf0]  ;;  %v4761_v48 = vld [vmem:[#allocation5 + $0x28] sm:$0xf]  ;;  %v5398_v56 = vor.u32 %v7024_v43, %v5395_v44 }
  0x87   :  { %1726 = vmatpush.bf16.msrb.mxu1 %v5590_v2  ;;  %v6867_v49 = vld [vmem:[#allocation5 + $0x34] sm:$0xf0]  ;;  %v4889_v53 = vld [vmem:[#allocation5 + $0x128] sm:$0xf]  ;;  %v7020_v57 = vld [vmem:[#allocation5 + $0x504] sm:$0xf]  ;;  %v5526_v59 = vor.u32 %v7056_v45, %v5523_v47 }
  0x88   :  { %1739 = vmatpush.bf16.msrb.mxu2 %v4826_v3  ;;  %v6899_v55 = vld [vmem:[#allocation5 + $0x134] sm:$0xf0]  ;;  %v5379_v58 = vld [vmem:[#allocation5 + $0x510] sm:$0xf0]  ;;  %v4762_v60 = vor.u32 %v6867_v49, %v4761_v48  ;;  %v7052_v61 = vld [vmem:[#allocation5 + $0x604] sm:$0xf] }
  0x89   :  { %1752 = vmatpush.bf16.msrb.mxu3 %v4954_v10  ;;  %v5507_v62 = vld [vmem:[#allocation5 + $0x610] sm:$0xf0]  ;;  %v4745_v63 = vld [vmem:[#allocation5 + $0x8] sm:$0xf]  ;;  %v4890_v0 = vor.u32 %v6899_v55, %v4889_v53  ;;  %v6863_v1 = vld [vmem:[#allocation5 + $0x14] sm:$0xf0]  ;;  %v5382_v10 = vor.u32 %v7020_v57, %v5379_v58 }
  0x8a   :  { %1714 = vmatpush.bf16.msrb.mxu0 %v5446_v16  ;;  %v4873_v2 = vld [vmem:[#allocation5 + $0x108] sm:$0xf]  ;;  %v6895_v3 = vld [vmem:[#allocation5 + $0x114] sm:$0xf0]  ;;  %v5510_v14 = vor.u32 %v7052_v61, %v5507_v62  ;;  %v4746_v15 = vor.u32 %v6863_v1, %v4745_v63  ;;  %s8123_s26 = sld [smem:[#allocation20_spill]]  ;;  %vm2360_vm0 = vcmask 523264  }
  0x8b   :  { %1727 = vmatpush.bf16.msrb.mxu1 %v5574_v17  ;;  %v5113_v4 = vld [vmem:[#allocation5 + $0x2e8] sm:$0xf]  ;;  %v6955_v6 = vld [vmem:[#allocation5 + $0x2f4] sm:$0xf0]  ;;  %s8124_s4 = sld [smem:[#allocation21_spill]]  ;;  %vm2426_vm1 = vcmask 1040384  }
  0x8c   :  { %1740 = vmatpush.bf16.msrb.mxu2 %v4810_v18  ;;  %v5241_v7 = vld [vmem:[#allocation5 + $0x3e8] sm:$0xf]  ;;  %v6987_v11 = vld [vmem:[#allocation5 + $0x3f4] sm:$0xf0]  ;;  %v4874_v18 = vor.u32 %v6895_v3, %v4873_v2  ;;  %v5114_v19 = vor.u32 %v6955_v6, %v5113_v4  ;;  %s8125_s0 = sld [smem:[#allocation22_spill]]  ;;  %vm2414_vm2 = vcmask 15360  }
  0x8d   :  { %1753 = vmatpush.bf16.msrb.mxu3 %v4938_v22  ;;  %v5369_v12 = vld [vmem:[#allocation5 + $0x4e8] sm:$0xf]  ;;  %v7019_v13 = vld [vmem:[#allocation5 + $0x4f4] sm:$0xf0]  ;;  %v5242_v20 = vor.u32 %v6987_v11, %v5241_v7  ;;  %vm2388_vm3 = vcmask 64512   ;;  %s166_s15 = sshll.u32 %s8110_s17, 4  ;;  %s167_s15 = int_to_ptr.hbm [resolvable:$true] %s166_s15 }
  0x8e   :  { %1715 = vmatpush.bf16.msrb.mxu0 %v5430_v28  ;;  %v5497_v16 = vld [vmem:[#allocation5 + $0x5e8] sm:$0xf]  ;;  %v7051_v17 = vld [vmem:[#allocation5 + $0x5f4] sm:$0xf0]  ;;  %v5370_v21 = vor.u32 %v7019_v13, %v5369_v12 }
  0x8f   :  { %1728 = vmatpush.bf16.msrb.mxu1 %v5558_v29  ;;  %v5097_v22 = vld [vmem:[#allocation5 + $0x2c8] sm:$0xf]  ;;  %v6951_v23 = vld [vmem:[#allocation5 + $0x2d4] sm:$0xf0]  ;;  %v5498_v25 = vor.u32 %v7051_v17, %v5497_v16 }
  0x90   :  { %1741 = vmatpush.bf16.msrb.mxu2 %v4794_v30  ;;  %v5225_v24 = vld [vmem:[#allocation5 + $0x3c8] sm:$0xf]  ;;  %v6983_v26 = vld [vmem:[#allocation5 + $0x3d4] sm:$0xf0]  ;;  %v5098_v31 = vor.u32 %v6951_v23, %v5097_v22 }
  0x91   :  { %1754 = vmatpush.bf16.msrb.mxu3 %v4922_v34  ;;  %v5353_v27 = vld [vmem:[#allocation5 + $0x4c8] sm:$0xf]  ;;  %v7015_v28 = vld [vmem:[#allocation5 + $0x4d4] sm:$0xf0]  ;;  %v5226_v32 = vor.u32 %v6983_v26, %v5225_v24 }
  0x92   :  { %1716 = vmatpush.bf16.msrb.mxu0 %v5414_v40  ;;  %v5481_v29 = vld [vmem:[#allocation5 + $0x5c8] sm:$0xf]  ;;  %v7047_v30 = vld [vmem:[#allocation5 + $0x5d4] sm:$0xf0]  ;;  %v5354_v33 = vor.u32 %v7015_v28, %v5353_v27 }
  0x93   :  { %1729 = vmatpush.bf16.msrb.mxu1 %v5542_v41  ;;  %v5081_v34 = vld [vmem:[#allocation5 + $0x2a8] sm:$0xf]  ;;  %v6947_v35 = vld [vmem:[#allocation5 + $0x2b4] sm:$0xf0]  ;;  %v5482_v37 = vor.u32 %v7047_v30, %v5481_v29 }
  0x94   :  { %1742 = vmatpush.bf16.msrb.mxu2 %v4778_v42  ;;  %v5209_v36 = vld [vmem:[#allocation5 + $0x3a8] sm:$0xf]  ;;  %v6979_v38 = vld [vmem:[#allocation5 + $0x3b4] sm:$0xf0]  ;;  %v5082_v43 = vor.u32 %v6947_v35, %v5081_v34 }
  0x95   :  { %1755 = vmatpush.bf16.msrb.mxu3 %v4906_v46  ;;  %v5337_v39 = vld [vmem:[#allocation5 + $0x4a8] sm:$0xf]  ;;  %v7011_v40 = vld [vmem:[#allocation5 + $0x4b4] sm:$0xf0]  ;;  %v5210_v44 = vor.u32 %v6979_v38, %v5209_v36 }
  0x96   :  { %1717 = vmatpush.bf16.msrb.mxu0 %v5398_v56  ;;  %v5465_v41 = vld [vmem:[#allocation5 + $0x5a8] sm:$0xf]  ;;  %v7043_v42 = vld [vmem:[#allocation5 + $0x5b4] sm:$0xf0]  ;;  %v5338_v45 = vor.u32 %v7011_v40, %v5337_v39 }
  0x97   :  { %1730 = vmatpush.bf16.msrb.mxu1 %v5526_v59  ;;  %v5065_v46 = vld [vmem:[#allocation5 + $0x288] sm:$0xf]  ;;  %v6943_v47 = vld [vmem:[#allocation5 + $0x294] sm:$0xf0]  ;;  %v5466_v49 = vor.u32 %v7043_v42, %v5465_v41 }
  0x98   :  { %1743 = vmatpush.bf16.msrb.mxu2 %v4762_v60  ;;  %v5193_v48 = vld [vmem:[#allocation5 + $0x388] sm:$0xf]  ;;  %v6975_v53 = vld [vmem:[#allocation5 + $0x394] sm:$0xf0]  ;;  %v5066_v59 = vor.u32 %v6943_v47, %v5065_v46 }
  0x99   :  { %1756 = vmatpush.bf16.msrb.mxu3 %v4890_v0  ;;  %v5321_v55 = vld [vmem:[#allocation5 + $0x488] sm:$0xf]  ;;  %v7007_v56 = vld [vmem:[#allocation5 + $0x494] sm:$0xf0]  ;;  %v5194_v60 = vor.u32 %v6975_v53, %v5193_v48  ;;  %v6889_v48 = vld [vmem:[#allocation5 + $0xec] sm:$0xf] }
  0x9a   :  { %1718 = vmatpush.bf16.msrb.mxu0 %v5382_v10  ;;  %v5449_v57 = vld [vmem:[#allocation5 + $0x588] sm:$0xf]  ;;  %v7039_v58 = vld [vmem:[#allocation5 + $0x594] sm:$0xf0]  ;;  %v5322_v61 = vor.u32 %v7007_v56, %v5321_v55  ;;  %v4859_v53 = vld [vmem:[#allocation5 + $0xf8] sm:$0xf0] }
  0x9b   :  { %1731 = vmatpush.bf16.msrb.mxu1 %v5510_v14  ;;  %v5049_v62 = vld [vmem:[#allocation5 + $0x268] sm:$0xf]  ;;  %v6939_v63 = vld [vmem:[#allocation5 + $0x274] sm:$0xf0]  ;;  %v5450_v1 = vor.u32 %v7039_v58, %v5449_v57  ;;  %v6921_v55 = vld [vmem:[#allocation5 + $0x1ec] sm:$0xf] }
  0x9c   :  { %1744 = vmatpush.bf16.msrb.mxu2 %v4746_v15  ;;  %v5177_v0 = vld [vmem:[#allocation5 + $0x368] sm:$0xf]  ;;  %v6971_v2 = vld [vmem:[#allocation5 + $0x374] sm:$0xf0]  ;;  %v5050_v10 = vor.u32 %v6939_v63, %v5049_v62  ;;  %v4987_v56 = vld [vmem:[#allocation5 + $0x1f8] sm:$0xf0]  ;;  %v4862_v63 = vor.u32 %v6889_v48, %v4859_v53 }
  0x9d   :  { %1757 = vmatpush.bf16.msrb.mxu3 %v4874_v18  ;;  %1719 = vmatmul.bf16.vlgmr.msrb.gmra.mxu0 %v7749_v9  ;;  %v5305_v3 = vld [vmem:[#allocation5 + $0x468] sm:$0xf]  ;;  %v7003_v4 = vld [vmem:[#allocation5 + $0x474] sm:$0xf0]  ;;  %v5178_v11 = vor.u32 %v6971_v2, %v5177_v0  ;;  %v4990_v0 = vor.u32 %v6921_v55, %v4987_v56  ;;  %v5051_v48 = vld [vmem:[#allocation5 + $0x278] sm:$0xf0] }
  0x9e   :  { %1763 = vmatpush.bf16.msra.mxu0 %v5114_v19  ;;  %1732 = vmatmul.bf16.vlgmr.msrb.gmra.mxu1 %v7745_v5  ;;  %v5433_v6 = vld [vmem:[#allocation5 + $0x568] sm:$0xf]  ;;  %v7035_v7 = vld [vmem:[#allocation5 + $0x574] sm:$0xf0]  ;;  %v5306_v12 = vor.u32 %v7003_v4, %v5305_v3  ;;  %v6885_v3 = vld [vmem:[#allocation5 + $0xcc] sm:$0xf] }
  0x9f   :  { %1776 = vmatpush.bf16.msra.mxu1 %v5242_v20  ;;  %1745 = vmatmul.bf16.vlgmr.msrb.gmra.mxu2 %v7729_v51  ;;  %v5033_v13 = vld [vmem:[#allocation5 + $0x248] sm:$0xf]  ;;  %v6935_v14 = vld [vmem:[#allocation5 + $0x254] sm:$0xf0]  ;;  %v5434_v16 = vor.u32 %v7035_v7, %v5433_v6  ;;  %v4843_v6 = vld [vmem:[#allocation5 + $0xd8] sm:$0xf0] }
  0xa0   :  { %1789 = vmatpush.bf16.msra.mxu2 %v5370_v21  ;;  %1758 = vmatmul.bf16.vlgmr.msrb.gmra.mxu3 %v7733_v54  ;;  %v5161_v15 = vld [vmem:[#allocation5 + $0x348] sm:$0xf]  ;;  %v6967_v17 = vld [vmem:[#allocation5 + $0x354] sm:$0xf0]  ;;  %v5034_v22 = vor.u32 %v6935_v14, %v5033_v13  ;;  %v6917_v7 = vld [vmem:[#allocation5 + $0x1cc] sm:$0xf]  ;;  %v4846_v14 = vor.u32 %v6885_v3, %v4843_v6 }
  0xa1   :  { %1802 = vmatpush.bf16.msra.mxu3 %v5498_v25  ;;  %v5289_v18 = vld [vmem:[#allocation5 + $0x448] sm:$0xf]  ;;  %v6999_v19 = vld [vmem:[#allocation5 + $0x454] sm:$0xf0]  ;;  %v5162_v23 = vor.u32 %v6967_v17, %v5161_v15 }
  0xa2   :  { %1764 = vmatpush.bf16.msra.mxu0 %v5098_v31  ;;  %v5417_v20 = vld [vmem:[#allocation5 + $0x548] sm:$0xf]  ;;  %v7031_v21 = vld [vmem:[#allocation5 + $0x554] sm:$0xf0]  ;;  %v5290_v24 = vor.u32 %v6999_v19, %v5289_v18  ;;  %v6881_v18 = vld [vmem:[#allocation5 + $0xac] sm:$0xf] }
  0xa3   :  { %1777 = vmatpush.bf16.msra.mxu1 %v5226_v32  ;;  %v5017_v25 = vld [vmem:[#allocation5 + $0x228] sm:$0xf]  ;;  %v6931_v26 = vld [vmem:[#allocation5 + $0x234] sm:$0xf0]  ;;  %v5418_v28 = vor.u32 %v7031_v21, %v5417_v20  ;;  %v4827_v20 = vld [vmem:[#allocation5 + $0xb8] sm:$0xf0] }
  0xa4   :  { %1790 = vmatpush.bf16.msra.mxu2 %v5354_v33  ;;  %v5145_v27 = vld [vmem:[#allocation5 + $0x328] sm:$0xf]  ;;  %v6963_v29 = vld [vmem:[#allocation5 + $0x334] sm:$0xf0]  ;;  %v5018_v34 = vor.u32 %v6931_v26, %v5017_v25  ;;  %v6913_v21 = vld [vmem:[#allocation5 + $0x1ac] sm:$0xf]  ;;  %v4830_v26 = vor.u32 %v6881_v18, %v4827_v20 }
  0xa5   :  { %1803 = vmatpush.bf16.msra.mxu3 %v5482_v37  ;;  %v5273_v30 = vld [vmem:[#allocation5 + $0x428] sm:$0xf]  ;;  %v6995_v31 = vld [vmem:[#allocation5 + $0x434] sm:$0xf0]  ;;  %v5146_v37 = vor.u32 %v6963_v29, %v5145_v27 }
  0xa6   :  { %1765 = vmatpush.bf16.msra.mxu0 %v5082_v43  ;;  %v5401_v32 = vld [vmem:[#allocation5 + $0x528] sm:$0xf]  ;;  %v7027_v33 = vld [vmem:[#allocation5 + $0x534] sm:$0xf0]  ;;  %v5274_v38 = vor.u32 %v6995_v31, %v5273_v30  ;;  %v6877_v30 = vld [vmem:[#allocation5 + $0x8c] sm:$0xf] }
  0xa7   :  { %1778 = vmatpush.bf16.msra.mxu1 %v5210_v44  ;;  %v5001_v35 = vld [vmem:[#allocation5 + $0x208] sm:$0xf]  ;;  %v6927_v36 = vld [vmem:[#allocation5 + $0x214] sm:$0xf0]  ;;  %v5402_v42 = vor.u32 %v7027_v33, %v5401_v32  ;;  %v4811_v32 = vld [vmem:[#allocation5 + $0x98] sm:$0xf0] }
  0xa8   :  { %1791 = vmatpush.bf16.msra.mxu2 %v5338_v45  ;;  %v5129_v39 = vld [vmem:[#allocation5 + $0x308] sm:$0xf]  ;;  %v6959_v40 = vld [vmem:[#allocation5 + $0x314] sm:$0xf0]  ;;  %v6909_v33 = vld [vmem:[#allocation5 + $0x18c] sm:$0xf] }
  0xa9   :  { %1804 = vmatpush.bf16.msra.mxu3 %v5466_v49  ;;  %v5257_v41 = vld [vmem:[#allocation5 + $0x408] sm:$0xf]  ;;  %v6991_v43 = vld [vmem:[#allocation5 + $0x414] sm:$0xf0]  ;;  %v5002_v49 = vor.u32 %v6927_v36, %v5001_v35  ;;  %v5130_v57 = vor.u32 %v6959_v40, %v5129_v39  ;;  %v6941_v35 = vld [vmem:[#allocation5 + $0x28c] sm:$0xf] }
  0xaa   :  { %1766 = vmatpush.bf16.msra.mxu0 %v5066_v59  ;;  %v5385_v44 = vld [vmem:[#allocation5 + $0x508] sm:$0xf]  ;;  %v7023_v45 = vld [vmem:[#allocation5 + $0x514] sm:$0xf0]  ;;  %v5258_v58 = vor.u32 %v6991_v43, %v5257_v41  ;;  %v6953_v59 = vld [vmem:[#allocation5 + $0x2ec] sm:$0xf] }
  0xab   :  { %1779 = vmatpush.bf16.msra.mxu1 %v5194_v60  ;;  %v5625_v46 = vld [vmem:[#allocation5 + $0x6e8] sm:$0xf]  ;;  %v7083_v47 = vld [vmem:[#allocation5 + $0x6f4] sm:$0xf0]  ;;  %v5115_v60 = vld [vmem:[#allocation5 + $0x2f8] sm:$0xf0] }
  0xac   :  { %1792 = vmatpush.bf16.msra.mxu2 %v5322_v61  ;;  %v5386_v61 = vor.u32 %v7023_v45, %v5385_v44  ;;  %v5626_v62 = vor.u32 %v7083_v47, %v5625_v46  ;;  %v7079_v2 = vld [vmem:[#allocation5 + $0x6d4] sm:$0xf0]  ;;  %v5118_v4 = vor.u32 %v6953_v59, %v5115_v60  ;;  %v5067_v36 = vld [vmem:[#allocation5 + $0x298] sm:$0xf0]  ;;  %v5561_v40 = vld [vmem:[#allocation5 + $0x668] sm:$0xf] }
  0xad   :  { %1805 = vmatpush.bf16.msra.mxu3 %v5450_v1  ;;  %v5609_v1 = vld [vmem:[#allocation5 + $0x6c8] sm:$0xf]  ;;  %v7075_v17 = vld [vmem:[#allocation5 + $0x6b4] sm:$0xf0]  ;;  %v5070_v43 = vor.u32 %v6941_v35, %v5067_v36  ;;  %v4795_v44 = vld [vmem:[#allocation5 + $0x78] sm:$0xf0] }
  0xae   :  { %1767 = vmatpush.bf16.msra.mxu0 %v5050_v10  ;;  %v4971_v10 = vld [vmem:[#allocation5 + $0x1d8] sm:$0xf0]  ;;  %v5610_v13 = vor.u32 %v7079_v2, %v5609_v1  ;;  %v7071_v29 = vld [vmem:[#allocation5 + $0x694] sm:$0xf0]  ;;  %v6905_v45 = vld [vmem:[#allocation5 + $0x16c] sm:$0xf] }
  0xaf   :  { %1780 = vmatpush.bf16.msra.mxu1 %v5178_v11  ;;  %v6949_v11 = vld [vmem:[#allocation5 + $0x2cc] sm:$0xf]  ;;  %v4974_v15 = vor.u32 %v6917_v7, %v4971_v10  ;;  %v7067_v41 = vld [vmem:[#allocation5 + $0x674] sm:$0xf0]  ;;  %v4923_v46 = vld [vmem:[#allocation5 + $0x178] sm:$0xf0] }
  0xb0   :  { %1793 = vmatpush.bf16.msra.mxu2 %v5306_v12  ;;  %v5099_v12 = vld [vmem:[#allocation5 + $0x2d8] sm:$0xf0]  ;;  %v6937_v47 = vld [vmem:[#allocation5 + $0x26c] sm:$0xf]  ;;  %v4926_v55 = vor.u32 %v6905_v45, %v4923_v46  ;;  %v5545_v56 = vld [vmem:[#allocation5 + $0x648] sm:$0xf] }
  0xb1   :  { %1806 = vmatpush.bf16.msra.mxu3 %v5434_v16  ;;  %v5593_v16 = vld [vmem:[#allocation5 + $0x6a8] sm:$0xf]  ;;  %v5102_v19 = vor.u32 %v6949_v11, %v5099_v12  ;;  %v5054_v59 = vor.u32 %v6937_v47, %v5051_v48  ;;  %v4779_v60 = vld [vmem:[#allocation5 + $0x58] sm:$0xf0]  ;;  %v7059_v7 = vld [vmem:[#allocation5 + $0x634] sm:$0xf0] }
  0xb2   :  { %1768 = vmatpush.bf16.msra.mxu0 %v5034_v22  ;;  %v4955_v22 = vld [vmem:[#allocation5 + $0x1b8] sm:$0xf0]  ;;  %v5594_v25 = vor.u32 %v7075_v17, %v5593_v16  ;;  %v5529_v6 = vld [vmem:[#allocation5 + $0x628] sm:$0xf]  ;;  %v6865_v10 = vld [vmem:[#allocation5 + $0x2c] sm:$0xf] }
  0xb3   :  { %1781 = vmatpush.bf16.msra.mxu1 %v5162_v23  ;;  %v6945_v23 = vld [vmem:[#allocation5 + $0x2ac] sm:$0xf]  ;;  %v4958_v27 = vor.u32 %v6913_v21, %v4955_v22  ;;  %v5019_v17 = vld [vmem:[#allocation5 + $0x238] sm:$0xf0]  ;;  %v5530_v18 = vor.u32 %v7059_v7, %v5529_v6  ;;  %v7055_v20 = vld [vmem:[#allocation5 + $0x614] sm:$0xf0] }
  0xb4   :  { %1794 = vmatpush.bf16.msra.mxu2 %v5290_v24  ;;  %v5083_v24 = vld [vmem:[#allocation5 + $0x2b8] sm:$0xf0]  ;;  %v6929_v16 = vld [vmem:[#allocation5 + $0x22c] sm:$0xf] }
  0xb5   :  { %1807 = vmatpush.bf16.msra.mxu3 %v5418_v28  ;;  %v5577_v28 = vld [vmem:[#allocation5 + $0x688] sm:$0xf]  ;;  %v5086_v31 = vor.u32 %v6945_v23, %v5083_v24  ;;  %v6861_v23 = vld [vmem:[#allocation5 + $0xc] sm:$0xf]  ;;  %v4747_v24 = vld [vmem:[#allocation5 + $0x18] sm:$0xf0] }
  0xb6   :  { %1769 = vmatpush.bf16.msra.mxu0 %v5018_v34  ;;  %v4939_v34 = vld [vmem:[#allocation5 + $0x198] sm:$0xf0]  ;;  %v7009_v7 = vld [vmem:[#allocation5 + $0x4ac] sm:$0xf] }
  0xb7   :  { %1782 = vmatpush.bf16.msra.mxu1 %v5146_v37  ;;  %v5578_v37 = vor.u32 %v7071_v29, %v5577_v28  ;;  %v4942_v39 = vor.u32 %v6909_v33, %v4939_v34  ;;  %v4875_v28 = vld [vmem:[#allocation5 + $0x118] sm:$0xf0]  ;;  %v6925_v29 = vld [vmem:[#allocation5 + $0x20c] sm:$0xf] }
  0xb8   :  { %1795 = vmatpush.bf16.msra.mxu2 %v5274_v38  ;;  %v4814_v38 = vor.u32 %v6877_v30, %v4811_v32  ;;  %v5003_v30 = vld [vmem:[#allocation5 + $0x218] sm:$0xf0]  ;;  %v6985_v32 = vld [vmem:[#allocation5 + $0x3ec] sm:$0xf] }
  0xb9   :  { %1808 = vmatpush.bf16.msra.mxu3 %v5402_v42  ;;  %v6873_v42 = vld [vmem:[#allocation5 + $0x6c] sm:$0xf]  ;;  %v5243_v33 = vld [vmem:[#allocation5 + $0x3f8] sm:$0xf0]  ;;  %v5006_v45 = vor.u32 %v6925_v29, %v5003_v30 }
  0xba   :  { %1770 = vmatpush.bf16.msra.mxu0 %v5002_v49  ;;  %v5562_v49 = vor.u32 %v7067_v41, %v5561_v40  ;;  %v4798_v53 = vor.u32 %v6873_v42, %v4795_v44  ;;  %v7017_v34 = vld [vmem:[#allocation5 + $0x4ec] sm:$0xf]  ;;  %v5371_v36 = vld [vmem:[#allocation5 + $0x4f8] sm:$0xf0]  ;;  %v4750_v40 = vor.u32 %v6861_v23, %v4747_v24  ;;  %v5246_v46 = vor.u32 %v6985_v32, %v5243_v33 }
  0xbb   :  { %1783 = vmatpush.bf16.msra.mxu1 %v5130_v57  ;;  %v7063_v57 = vld [vmem:[#allocation5 + $0x654] sm:$0xf0]  ;;  %v7081_v42 = vld [vmem:[#allocation5 + $0x6ec] sm:$0xf]  ;;  %v5374_v47 = vor.u32 %v7017_v34, %v5371_v36  ;;  %v5211_v6 = vld [vmem:[#allocation5 + $0x3b8] sm:$0xf0] }
  0xbc   :  { %1796 = vmatpush.bf16.msra.mxu2 %v5258_v58  ;;  %v6869_v58 = vld [vmem:[#allocation5 + $0x4c] sm:$0xf]  ;;  %v5546_v1 = vor.u32 %v7063_v57, %v5545_v56  ;;  %v5355_v57 = vld [vmem:[#allocation5 + $0x4d8] sm:$0xf0] }
  0xbd   :  { %1809 = vmatpush.bf16.msra.mxu3 %v5386_v61  ;;  %1771 = vmatmul.bf16.vlgmr.msra.gmra.mxu0 %v7727_v50  ;;  %v6901_v61 = vld [vmem:[#allocation5 + $0x14c] sm:$0xf]  ;;  %v4782_v3 = vor.u32 %v6869_v58, %v4779_v60  ;;  %v5323_v24 = vld [vmem:[#allocation5 + $0x498] sm:$0xf0] }
  0xbe   :  { %1815 = vmatpush.bf16.msrb.mxu0 %v5626_v62  ;;  %1784 = vmatmul.bf16.vlgmr.msra.gmra.mxu1 %v7731_v52  ;;  %v4907_v62 = vld [vmem:[#allocation5 + $0x158] sm:$0xf0]  ;;  %v7045_v58 = vld [vmem:[#allocation5 + $0x5cc] sm:$0xf] }
  0xbf   :  { %1828 = vmatpush.bf16.msrb.mxu1 %v4862_v63  ;;  %1797 = vmatmul.bf16.vlgmr.msra.gmra.mxu2 %v7747_v8  ;;  %v6933_v63 = vld [vmem:[#allocation5 + $0x24c] sm:$0xf]  ;;  %v5179_v34 = vld [vmem:[#allocation5 + $0x378] sm:$0xf0] }
  0xc0   :  { %1841 = vmatpush.bf16.msrb.mxu2 %v4990_v0  ;;  %1810 = vmatmul.bf16.vlgmr.msra.gmra.mxu3 %v7749_v9  ;;  %v5035_v0 = vld [vmem:[#allocation5 + $0x258] sm:$0xf0]  ;;  %v7077_v60 = vld [vmem:[#allocation5 + $0x6cc] sm:$0xf] }
  0xc1   :  { %1854 = vmatpush.bf16.msrb.mxu3 %v5118_v4  ;;  %v4910_v4 = vor.u32 %v6901_v61, %v4907_v62  ;;  %v5038_v12 = vor.u32 %v6933_v63, %v5035_v0  ;;  %v5611_v61 = vld [vmem:[#allocation5 + $0x6d8] sm:$0xf0]  ;;  %v6969_v33 = vld [vmem:[#allocation5 + $0x36c] sm:$0xf] }
  0xc2   :  { %1816 = vmatpush.bf16.msrb.mxu0 %v5610_v13  ;;  %v4763_v13 = vld [vmem:[#allocation5 + $0x38] sm:$0xf0] }
  0xc3   :  { %1829 = vmatpush.bf16.msrb.mxu1 %v4846_v14  ;;  %v6897_v14 = vld [vmem:[#allocation5 + $0x12c] sm:$0xf]  ;;  %v4766_v21 = vor.u32 %v6865_v10, %v4763_v13  ;;  %v5614_v10 = vor.u32 %v7077_v60, %v5611_v61 }
  0xc4   :  { %1842 = vmatpush.bf16.msrb.mxu2 %v4974_v15  ;;  %v4891_v15 = vld [vmem:[#allocation5 + $0x138] sm:$0xf0]  ;;  %v7041_v13 = vld [vmem:[#allocation5 + $0x5ac] sm:$0xf] }
  0xc5   :  { %1855 = vmatpush.bf16.msrb.mxu3 %v5102_v19  ;;  %v5513_v19 = vld [vmem:[#allocation5 + $0x608] sm:$0xf]  ;;  %v4894_v22 = vor.u32 %v6897_v14, %v4891_v15  ;;  %v5467_v14 = vld [vmem:[#allocation5 + $0x5b8] sm:$0xf0]  ;;  %v7073_v15 = vld [vmem:[#allocation5 + $0x6ac] sm:$0xf] }
  0xc6   :  { %1817 = vmatpush.bf16.msrb.mxu0 %v5594_v25  ;;  %v7767_v2 = vpop.f32.mrf.mxu0  ;;  %v6893_v25 = vld [vmem:[#allocation5 + $0x10c] sm:$0xf]  ;;  %v5514_v35 = vor.u32 %v7055_v20, %v5513_v19  ;;  %v5470_v19 = vor.u32 %v7041_v13, %v5467_v14  ;;  %v5531_v14 = vld [vmem:[#allocation5 + $0x638] sm:$0xf0] }
  0xc7   :  { %1830 = vmatpush.bf16.msrb.mxu1 %v4830_v26  ;;  %v7769_v11 = vpop.f32.mrf.mxu1  ;;  %v7771_v26 = vpop.f32.mrf.mxu2  ;;  %v4878_v41 = vor.u32 %v6893_v25, %v4875_v28  ;;  %v6973_v20 = vld [vmem:[#allocation5 + $0x38c] sm:$0xf]  ;;  %v5579_v28 = vld [vmem:[#allocation5 + $0x698] sm:$0xf0] }
  0xc8   :  { %1843 = vmatpush.bf16.msrb.mxu2 %v4958_v27  ;;  %v5022_v27 = vor.u32 %v6929_v16, %v5019_v17  ;;  %v5595_v16 = vld [vmem:[#allocation5 + $0x6b8] sm:$0xf0]  ;;  %v7037_v25 = vld [vmem:[#allocation5 + $0x58c] sm:$0xf] }
  0xc9   :  { %1856 = vmatpush.bf16.msrb.mxu3 %v5086_v31  ;;  %v7773_v31 = vpop.f32.mrf.mxu3  ;;  %v5598_v23 = vor.u32 %v7073_v15, %v5595_v16  ;;  %v7057_v13 = vld [vmem:[#allocation5 + $0x62c] sm:$0xf]  ;;  %v7790_v15 = vld [vmem:[%s8123_s26] sm:$0xf] }
  0xca   :  { %1818 = vmatpush.bf16.msrb.mxu0 %v5578_v37  ;;  %v7049_v37 = vld [vmem:[#allocation5 + $0x5ec] sm:$0xf] }
  0xcb   :  { %1831 = vmatpush.bf16.msrb.mxu1 %v4814_v38  ;;  %v5499_v38 = vld [vmem:[#allocation5 + $0x5f8] sm:$0xf0] }
  0xcc   :  { %1844 = vmatpush.bf16.msrb.mxu2 %v4942_v39  ;;  %v5502_v48 = vor.u32 %v7049_v37, %v5499_v38  ;;  %v5307_v37 = vld [vmem:[#allocation5 + $0x478] sm:$0xf0]  ;;  %v7033_v38 = vld [vmem:[#allocation5 + $0x56c] sm:$0xf] }
  0xcd   :  { %1857 = vmatpush.bf16.msrb.mxu3 %v5070_v43  ;;  %v5627_v43 = vld [vmem:[#allocation5 + $0x6f8] sm:$0xf0] }
  0xce   :  { %1819 = vmatpush.bf16.msrb.mxu0 %v5562_v49  ;;  %v1566_v39 = vpop.f32.mrf.mxu0  ;;  %v6981_v49 = vld [vmem:[#allocation5 + $0x3cc] sm:$0xf]  ;;  %v5630_v56 = vor.u32 %v7081_v42, %v5627_v43  ;;  %v5182_v42 = vor.u32 %v6969_v33, %v5179_v34 }
  0xcf   :  { %1832 = vmatpush.bf16.msrb.mxu1 %v4798_v53  ;;  %v1579_v44 = vpop.f32.mrf.mxu1  ;;  %v5227_v53 = vld [vmem:[#allocation5 + $0x3d8] sm:$0xf0]  ;;  %v1592_v62 = vpop.f32.mrf.mxu2 }
  0xd0   :  { %1845 = vmatpush.bf16.msrb.mxu2 %v4926_v55  ;;  %v7013_v55 = vld [vmem:[#allocation5 + $0x4cc] sm:$0xf]  ;;  %v5230_v63 = vor.u32 %v6981_v49, %v5227_v53  ;;  %v5435_v39 = vld [vmem:[#allocation5 + $0x578] sm:$0xf0] }
  0xd1   :  { %1858 = vmatpush.bf16.msrb.mxu3 %v5054_v59  ;;  %v5483_v59 = vld [vmem:[#allocation5 + $0x5d8] sm:$0xf0]  ;;  %v1605_v0 = vpop.f32.mrf.mxu3  ;;  %v5438_v44 = vor.u32 %v7033_v38, %v5435_v39  ;;  %v7090_v39 = vld [vmem:[%s8124_s4 + $0x30] sm:$0xff] }
  0xd2   :  { %1820 = vmatpush.bf16.msrb.mxu0 %v5546_v1  ;;  %v5358_v1 = vor.u32 %v7013_v55, %v5355_v57  ;;  %v5291_v53 = vld [vmem:[#allocation5 + $0x458] sm:$0xf0]  ;;  %v7029_v55 = vld [vmem:[#allocation5 + $0x54c] sm:$0xf] }
  0xd3   :  { %1833 = vmatpush.bf16.msrb.mxu1 %v4782_v3  ;;  %v5486_v3 = vor.u32 %v7045_v58, %v5483_v59  ;;  %v7061_v57 = vld [vmem:[#allocation5 + $0x64c] sm:$0xf]  ;;  %v5547_v58 = vld [vmem:[#allocation5 + $0x658] sm:$0xf0] }
  0xd4   :  { %1846 = vmatpush.bf16.msrb.mxu2 %v4910_v4  ;;  %v6977_v4 = vld [vmem:[#allocation5 + $0x3ac] sm:$0xf]  ;;  %v7099_v38 = vld [vmem:[%s8124_s4 + $0x78] sm:$0xff] }
  0xd5   :  { %1859 = vmatpush.bf16.msrb.mxu3 %v5038_v12  ;;  %v5339_v12 = vld [vmem:[#allocation5 + $0x4b8] sm:$0xf0]  ;;  %v5214_v17 = vor.u32 %v6977_v4, %v5211_v6  ;;  %v6993_v4 = vld [vmem:[#allocation5 + $0x42c] sm:$0xf]  ;;  %v5550_v6 = vor.u32 %v7061_v57, %v5547_v58 }
  0xd6   :  { %1821 = vmatpush.bf16.msrb.mxu0 %v5530_v18  ;;  %v5342_v18 = vor.u32 %v7009_v7, %v5339_v12  ;;  %v5275_v7 = vld [vmem:[#allocation5 + $0x438] sm:$0xf0]  ;;  %v7085_v58 = vld [vmem:[%s8124_s4 + $0x8] sm:$0xff] }
  0xd7   :  { %1834 = vmatpush.bf16.msrb.mxu1 %v4766_v21  ;;  %v5195_v21 = vld [vmem:[#allocation5 + $0x398] sm:$0xf0] }
  0xd8   :  { %1847 = vmatpush.bf16.msrb.mxu2 %v4894_v22  ;;  %v7005_v22 = vld [vmem:[#allocation5 + $0x48c] sm:$0xf]  ;;  %v5403_v12 = vld [vmem:[#allocation5 + $0x538] sm:$0xf0] }
  0xd9   :  { %1860 = vmatpush.bf16.msrb.mxu3 %v5022_v27  ;;  %v7069_v27 = vld [vmem:[#allocation5 + $0x68c] sm:$0xf] }
  0xda   :  { %1822 = vmatpush.bf16.msrb.mxu0 %v5514_v35  ;;  %v7779_v29 = vpop.f32.mrf.mxu0  ;;  %v7001_v35 = vld [vmem:[#allocation5 + $0x46c] sm:$0xf]  ;;  %v5582_v36 = vor.u32 %v7069_v27, %v5579_v28  ;;  %v402_v27 = vperm.slane %v7790_v15, 0 }
  0xdb   :  { %1835 = vmatpush.bf16.msrb.mxu1 %v4750_v40  ;;  %v7781_v30 = vpop.f32.mrf.mxu1  ;;  %v7065_v40 = vld [vmem:[#allocation5 + $0x66c] sm:$0xf]  ;;  %v5310_v43 = vor.u32 %v7001_v35, %v5307_v37 }
  0xdc   :  { %1848 = vmatpush.bf16.msrb.mxu2 %v4878_v41  ;;  %v5563_v41 = vld [vmem:[#allocation5 + $0x678] sm:$0xf0]  ;;  %v7053_v28 = vld [vmem:[#allocation5 + $0x60c] sm:$0xf]  ;;  %v1565_v37 = vadd.f32 %v7767_v2, %v402_v27  ;;  %v7098_v2 = vld [vmem:[%s8124_s4 + $0x70] sm:$0xff] }
  0xdd   :  { %1861 = vmatpush.bf16.msrb.mxu3 %v5006_v45  ;;  %1823 = vmatmul.bf16.vlgmr.msrb.gmra.mxu0 %v7745_v5  ;;  %v6965_v45 = vld [vmem:[#allocation5 + $0x34c] sm:$0xf]  ;;  %v5566_v49 = vor.u32 %v7065_v40, %v5563_v41  ;;  %v7102_v27 = vld [vmem:[%s8124_s4 + $0x90] sm:$0xff] }
  0xde   :  { %1867 = vmatpush.bf16.msra.mxu0 %v5246_v46  ;;  %1836 = vmatmul.bf16.vlgmr.msrb.gmra.mxu1 %v7729_v51  ;;  %v5326_v51 = vor.u32 %v7005_v22, %v5323_v24  ;;  %v5163_v46 = vld [vmem:[#allocation5 + $0x358] sm:$0xf0]  ;;  %v1578_v40 = vadd.f32 %v7769_v11, %v1565_v37  ;;  %v7089_v41 = vld [vmem:[%s8124_s4 + $0x28] sm:$0xff] }
  0xdf   :  { %1880 = vmatpush.bf16.msra.mxu1 %v5374_v47  ;;  %1849 = vmatmul.bf16.vlgmr.msrb.gmra.mxu2 %v7733_v54  ;;  %v5451_v54 = vld [vmem:[#allocation5 + $0x598] sm:$0xf0]  ;;  %v6997_v47 = vld [vmem:[#allocation5 + $0x44c] sm:$0xf]  ;;  %v5166_v60 = vor.u32 %v6965_v45, %v5163_v46 }
  0xe0   :  { %1893 = vmatpush.bf16.msra.mxu2 %v5502_v48  ;;  %1862 = vmatmul.bf16.vlgmr.msrb.gmra.mxu3 %v7727_v50  ;;  %v5198_v50 = vor.u32 %v6973_v20, %v5195_v21  ;;  %v5454_v32 = vor.u32 %v7037_v25, %v5451_v54  ;;  %v5131_v20 = vld [vmem:[#allocation5 + $0x318] sm:$0xf0]  ;;  %v6989_v21 = vld [vmem:[#allocation5 + $0x40c] sm:$0xf]  ;;  %v1591_v11 = vadd.f32 %v7771_v26, %v1578_v40 }
  0xe1   :  { %1906 = vmatpush.bf16.msra.mxu3 %v5630_v56  ;;  %v5419_v56 = vld [vmem:[#allocation5 + $0x558] sm:$0xf0]  ;;  %v7021_v25 = vld [vmem:[#allocation5 + $0x50c] sm:$0xf] }
  0xe2   :  { %1868 = vmatpush.bf16.msra.mxu0 %v5230_v63  ;;  %v7783_v48 = vpop.f32.mrf.mxu2  ;;  %v1618_v61 = vpop.f32.mrf.mxu0  ;;  %v5294_v63 = vor.u32 %v6997_v47, %v5291_v53  ;;  %v5422_v0 = vor.u32 %v7029_v55, %v5419_v56  ;;  %v5259_v24 = vld [vmem:[#allocation5 + $0x418] sm:$0xf0]  ;;  %v403_v47 = vperm.slane %v7790_v15, 1 }
  0xe3   :  { %1881 = vmatpush.bf16.msra.mxu1 %v5358_v1  ;;  %v7785_v59 = vpop.f32.mrf.mxu3  ;;  %v1631_v62 = vpop.f32.mrf.mxu1  ;;  %v6961_v1 = vld [vmem:[#allocation5 + $0x32c] sm:$0xf]  ;;  %v5387_v54 = vld [vmem:[#allocation5 + $0x518] sm:$0xf0]  ;;  %v5262_v33 = vor.u32 %v6989_v21, %v5259_v24  ;;  %v7104_v21 = vld [vmem:[%s8124_s4 + $0xa0] sm:$0xff] }
  0xe4   :  { %1894 = vmatpush.bf16.msra.mxu2 %v5486_v3  ;;  %v5147_v3 = vld [vmem:[#allocation5 + $0x338] sm:$0xf0]  ;;  %v5390_v34 = vor.u32 %v7021_v25, %v5387_v54  ;;  %v1656_v57 = vadd.f32 %v7785_v59, %v403_v47 }
  0xe5   :  { %1907 = vmatpush.bf16.msra.mxu3 %v5614_v10  ;;  %v7025_v10 = vld [vmem:[#allocation5 + $0x52c] sm:$0xf]  ;;  %v5150_v16 = vor.u32 %v6961_v1, %v5147_v3  ;;  %v7087_v26 = vld [vmem:[%s8124_s4 + $0x18] sm:$0xff] }
  0xe6   :  { %1869 = vmatpush.bf16.msra.mxu0 %v5214_v17  ;;  %v5278_v17 = vor.u32 %v6993_v4, %v5275_v7  ;;  %v7095_v46 = vld [vmem:[%s8124_s4 + $0x58] sm:$0xff] }
  0xe7   :  { %1882 = vmatpush.bf16.msra.mxu1 %v5342_v18  ;;  %v5406_v18 = vor.u32 %v7025_v10, %v5403_v12  ;;  %v7106_v12 = vld [vmem:[%s8124_s4 + $0xb0] sm:$0xff]  ;;  %v7103_v25 = vld [vmem:[%s8124_s4 + $0x98] sm:$0xff] }
  0xe8   :  { %1895 = vmatpush.bf16.msra.mxu2 %v5470_v19  ;;  %v6957_v19 = vld [vmem:[#allocation5 + $0x30c] sm:$0xf]  ;;  %v7115_v37 = vld [vmem:[%s8124_s4 + $0xf8] sm:$0xff] }
  0xe9   :  { %1908 = vmatpush.bf16.msra.mxu3 %v5598_v23  ;;  %v5534_v23 = vor.u32 %v7057_v13, %v5531_v14 }
  0xea   :  { %1870 = vmatpush.bf16.msra.mxu0 %v5198_v50  ;;  %v1644_v22 = vpop.f32.mrf.mxu2  ;;  %v5515_v50 = vld [vmem:[#allocation5 + $0x618] sm:$0xf0] }
  0xeb   :  { %1883 = vmatpush.bf16.msra.mxu1 %v5326_v51  ;;  %v1657_v51 = vpop.f32.mrf.mxu3  ;;  %v5518_v35 = vor.u32 %v7053_v28, %v5515_v50  ;;  %v7101_v50 = vld [vmem:[%s8124_s4 + $0x88] sm:$0xff] }
  0xec   :  { %1896 = vmatpush.bf16.msra.mxu2 %v5454_v32  ;;  %v5134_v32 = vor.u32 %v6957_v19, %v5131_v20 }
  0xed   :  { %1909 = vmatpush.bf16.msra.mxu3 %v5582_v36  ;;  %v7091_v36 = vld [vmem:[%s8124_s4 + $0x38] sm:$0xff] }
  0xee   :  { %1871 = vmatpush.bf16.msra.mxu0 %v5182_v42 }
  0xef   :  { %1884 = vmatpush.bf16.msra.mxu1 %v5310_v43  ;;  %v7096_v43 = vld [vmem:[%s8124_s4 + $0x60] sm:$0xff] }
  0xf0   :  { %1897 = vmatpush.bf16.msra.mxu2 %v5438_v44 }
  0xf1   :  { %1910 = vmatpush.bf16.msra.mxu3 %v5566_v49  ;;  %v7086_v49 = vld [vmem:[%s8124_s4 + $0x10] sm:$0xff] }
  0xf2   :  { %1872 = vmatpush.bf16.msra.mxu0 %v5166_v60  ;;  %v7107_v60 = vld [vmem:[%s8124_s4 + $0xb8] sm:$0xff] }
  0xf3   :  { %1885 = vmatpush.bf16.msra.mxu1 %v5294_v63 }
  0xf4   :  { %1898 = vmatpush.bf16.msra.mxu2 %v5422_v0  ;;  %v7084_v0 = vld [vmem:[%s8124_s4] sm:$0xff] }
  0xf5   :  { %1911 = vmatpush.bf16.msra.mxu3 %v5550_v6 }
  0xf6   :  { %1873 = vmatpush.bf16.msra.mxu0 %v5150_v16 }
  0xf7   :  { %1886 = vmatpush.bf16.msra.mxu1 %v5278_v17 }
  0xf8   :  { %1899 = vmatpush.bf16.msra.mxu2 %v5406_v18  ;;  %v7105_v18 = vld [vmem:[%s8124_s4 + $0xa8] sm:$0xff] }
  0xf9   :  { %1912 = vmatpush.bf16.msra.mxu3 %v5534_v23 }
  0xfa   :  { %1874 = vmatpush.bf16.msra.mxu0 %v5134_v32 }
  0xfb   :  { %1887 = vmatpush.bf16.msra.mxu1 %v5262_v33  ;;  %v1681_v42 = vpop.f32.mrf.mxu1  ;;  %v7100_v33 = vld [vmem:[%s8124_s4 + $0x80] sm:$0xff] }
  0xfc   :  { %1900 = vmatpush.bf16.msra.mxu2 %v5390_v34  ;;  %v404_v34 = vperm.slane %v7790_v15, 2 }
  0xfd   :  { %1913 = vmatpush.bf16.msra.mxu3 %v5518_v35  ;;  %1875 = vmatmul.bf16.vlgmr.msra.gmra.mxu0 %v7731_v52  ;;  %v7097_v52 = vld [vmem:[%s8124_s4 + $0x68] sm:$0xff] }
  0xfe   :  { %2187 = vmatpush.bf16.msrb.mxu0 %v7091_v36  ;;  %1888 = vmatmul.bf16.vlgmr.msra.gmra.mxu1 %v7747_v8  ;;  %v7088_v8 = vld [vmem:[%s8124_s4 + $0x20] sm:$0xff] }
  0xff   :  { %2200 = vmatpush.bf16.msrb.mxu1 %v7099_v38  ;;  %1901 = vmatmul.bf16.vlgmr.msra.gmra.mxu2 %v7749_v9  ;;  %v1668_v9 = vpop.f32.mrf.mxu0 }
 0x100   :  { %1914 = vmatmul.bf16.vlgmr.msra.gmra.mxu3 %v7745_v5  ;;  %v1604_v5 = vadd.f32 %v7773_v31, %v1591_v11  ;;  %2213 = vmatpush.bf16.msrb.mxu2 %v7107_v60  ;;  %v1669_v59 = vadd.f32 %v1668_v9, %v1656_v57 }
 0x101   :  { %2226 = vmatpush.bf16.msrb.mxu3 %v7115_v37  ;;  %v7127_v37 = vld [vmem:[%s8100_s7 + $0x18] sm:$0xff] }
 0x102   :  { %2188 = vmatpush.bf16.msrb.mxu0 %v7090_v39  ;;  %v1617_v44 = vadd.f32 %v7779_v29, %v1604_v5  ;;  %v1694_v45 = vpop.f32.mrf.mxu2  ;;  %v7094_v29 = vld [vmem:[%s8124_s4 + $0x50] sm:$0xff]  ;;  %v1682_v3 = vadd.f32 %v1681_v42, %v1669_v59  ;;  %v7112_v5 = vld [vmem:[%s8124_s4 + $0xe0] sm:$0xff] }
 0x103   :  { %2201 = vmatpush.bf16.msrb.mxu1 %v7098_v2  ;;  %v1707_v31 = vpop.f32.mrf.mxu3  ;;  %v1683_v56 = vpop.f32.mrf.mxu1  ;;  %v7114_v2 = vld [vmem:[%s8124_s4 + $0xf0] sm:$0xff] }
 0x104   :  { %v1630_v55 = vadd.f32 %v7781_v30, %v1617_v44  ;;  %v7093_v30 = vld [vmem:[%s8124_s4 + $0x48] sm:$0xff]  ;;  %v1695_v6 = vadd.f32 %v1694_v45, %v1682_v3  ;;  %2214 = vmatpush.bf16.msrb.mxu2 %v7106_v12 }
 0x105   :  { %2227 = vmatpush.bf16.msrb.mxu3 %v7114_v2 }
 0x106   :  { %2189 = vmatpush.bf16.msrb.mxu0 %v7089_v41  ;;  %v1643_v61 = vadd.f32 %v7783_v48, %v1630_v55  ;;  %v7092_v48 = vld [vmem:[%s8124_s4 + $0x40] sm:$0xff]  ;;  %v1708_v7 = vadd.f32 %v1707_v31, %v1695_v6  ;;  %v7109_v55 = vld [vmem:[%s8124_s4 + $0xc8] sm:$0xff] }
 0x107   :  { %2202 = vmatpush.bf16.msrb.mxu1 %v7097_v52  ;;  %v1670_v53 = vpop.f32.mrf.mxu0  ;;  %v7113_v52 = vld [vmem:[%s8124_s4 + $0xe8] sm:$0xff] }
 0x108   :  { %v1919_v1 = vmax.f32 %v1643_v61, 0.0  ;;  %2215 = vmatpush.bf16.msrb.mxu2 %v7105_v18 }
 0x109   :  { %2228 = vmatpush.bf16.msrb.mxu3 %v7113_v52 }
 0x10a   :  { %2190 = vmatpush.bf16.msrb.mxu0 %v7088_v8  ;;  %v1696_v62 = vpop.f32.mrf.mxu2  ;;  %v1923_v4 = vpack.c.bf16 %v1919_v1, %v1919_v1 }
 0x10b   :  { %2203 = vmatpush.bf16.msrb.mxu1 %v7096_v43  ;;  %v1709_v63 = vpop.f32.mrf.mxu3  ;;  %v405_v62 = vperm.slane %v7790_v15, 3 }
 0x10c   :  { %2216 = vmatpush.bf16.msrb.mxu2 %v7104_v21  ;;  %v7395_v21 = vld [vmem:[%s8125_s0] ss:$0 sm:$0xff] }
 0x10d   :  { %2229 = vmatpush.bf16.msrb.mxu3 %v7112_v5  ;;  %v7396_v5 = vld [vmem:[%s8099_s6] ss:$0 sm:$0xff]  ;;  %s7513_s6 = smov 126  }
 0x10e   :  { %2191 = vmatpush.bf16.msrb.mxu0 %v7087_v26  ;;  %v7111_v26 = vld [vmem:[%s8124_s4 + $0xd8] sm:$0xff] }
 0x10f   :  { %2204 = vmatpush.bf16.msrb.mxu1 %v7095_v46  ;;  %v7110_v46 = vld [vmem:[%s8124_s4 + $0xd0] sm:$0xff] }
 0x110   :  { %2217 = vmatpush.bf16.msrb.mxu2 %v7103_v25 }
 0x111   :  { %2230 = vmatpush.bf16.msrb.mxu3 %v7111_v26 }
 0x112   :  { %2192 = vmatpush.bf16.msrb.mxu0 %v7086_v49 }
 0x113   :  { %2205 = vmatpush.bf16.msrb.mxu1 %v7094_v29 }
 0x114   :  { %2218 = vmatpush.bf16.msrb.mxu2 %v7102_v27  ;;  %v7122_v27 = vld [vmem:[%s8098_s5 + $0x30] sm:$0xff] }
 0x115   :  { %2231 = vmatpush.bf16.msrb.mxu3 %v7110_v46  ;;  %v7397_v46 = vld [vmem:[%s8101_s8] ss:$0 sm:$0xff] }
 0x116   :  { %2193 = vmatpush.bf16.msrb.mxu0 %v7085_v58  ;;  %v7108_v58 = vld [vmem:[%s8124_s4 + $0xc0] sm:$0xff]  ;;  %s7515_s4 = smov [#allocation3]  }
 0x117   :  { %2206 = vmatpush.bf16.msrb.mxu1 %v7093_v30  ;;  %s168_s8 = sshll.u32 %s7515_s4, 4  ;;  %s169_s8 = int_to_ptr.vmem [resolvable:$true] %s168_s8 }
 0x118   :  { %2219 = vmatpush.bf16.msrb.mxu2 %v7101_v50  ;;  %v7120_v50 = vld [vmem:[%s8098_s5 + $0x20] sm:$0xff]  ;;  %171 = dma.hbm_to_vmem [thread:$0]  %s167_s15, 28672, %s169_s8, [#allocation4 + $0x1] }
 0x119   :  { %2232 = vmatpush.bf16.msrb.mxu3 %v7109_v55 }
 0x11a   :  { %2194 = vmatpush.bf16.msrb.mxu0 %v7084_v0  ;;  %v1720_v10 = vpop.f32.mrf.mxu0 }
 0x11b   :  { %2207 = vmatpush.bf16.msrb.mxu1 %v7092_v48  ;;  %v1721_v13 = vadd.f32 %v1720_v10, %v1708_v7  ;;  %v1733_v14 = vpop.f32.mrf.mxu1 }
 0x11c   :  { %2220 = vmatpush.bf16.msrb.mxu2 %v7100_v33 }
 0x11d   :  { %2195 = vmatmul.bf16.vlgmr.msrb.gmra.mxu0 %v1923_v4  ;;  %v1734_v16 = vadd.f32 %v1733_v14, %v1721_v13  ;;  %2233 = vmatpush.bf16.msrb.mxu3 %v7108_v58 }
 0x11f   :  { %v1920_v17 = vmax.f32 %v1734_v16, 0.0  ;;  %2368 = vmatpush.bf16.msra.mxu1 %v7127_v37 }
 0x121   :  { %v1924_v19 = vpack.c.bf16 %v1920_v17, %v1920_v17 }
 0x122   :  { %v1746_v20 = vpop.f32.mrf.mxu2  ;;  %v1722_v23 = vpop.f32.mrf.mxu0 }
 0x123   :  { %v1759_v22 = vpop.f32.mrf.mxu3  ;;  %2208 = vmatmul.bf16.vlgmr.msrb.gmra.mxu1 %v1924_v19  ;;  %v1735_v24 = vpop.f32.mrf.mxu1  ;;  %v1747_v38 = vadd.f32 %v1746_v20, %v404_v34  ;;  %v7117_v34 = vld [vmem:[%s8098_s5 + $0x8] sm:$0xff] }
 0x125   :  { %v1760_v41 = vadd.f32 %v1759_v22, %v1747_v38  ;;  %v7126_v38 = vld [vmem:[%s8100_s7 + $0x10] sm:$0xff] }
 0x126   :  { %2369 = vmatpush.bf16.msra.mxu1 %v7126_v38 }
 0x12a   :  { %v1748_v54 = vpop.f32.mrf.mxu2 }
 0x12b   :  { %v1761_v28 = vpop.f32.mrf.mxu3  ;;  %v7123_v54 = vld [vmem:[%s8098_s5 + $0x38] sm:$0xff] }
 0x12c   :  { %2309 = vmatpush.bf16.msra.mxu0 %v7123_v54  ;;  %v7121_v28 = vld [vmem:[%s8098_s5 + $0x28] sm:$0xff] }
 0x130   :  { %2310 = vmatpush.bf16.msra.mxu0 %v7122_v27 }
 0x134   :  { %2311 = vmatpush.bf16.msra.mxu0 %v7121_v28 }
 0x138   :  { %2312 = vmatpush.bf16.msra.mxu0 %v7120_v50 }
 0x13a   :  { %v1772_v51 = vpop.f32.mrf.mxu0 }
 0x13b   :  { %v1785_v32 = vpop.f32.mrf.mxu1  ;;  %v1773_v9 = vadd.f32 %v1772_v51, %v1760_v41  ;;  %v7119_v51 = vld [vmem:[%s8098_s5 + $0x18] sm:$0xff] }
 0x13c   :  { %2313 = vmatpush.bf16.msra.mxu0 %v7119_v51 }
 0x13d   :  { %v1786_v42 = vadd.f32 %v1785_v32, %v1773_v9  ;;  %v7118_v32 = vld [vmem:[%s8098_s5 + $0x10] sm:$0xff]  ;;  %v7124_v9 = vld [vmem:[%s8100_s7] sm:$0xff] }
 0x140   :  { %2314 = vmatpush.bf16.msra.mxu0 %v7118_v32 }
 0x142   :  { %v1798_v35 = vpop.f32.mrf.mxu2  ;;  %v1774_v39 = vpop.f32.mrf.mxu0 }
 0x143   :  { %v1811_v36 = vpop.f32.mrf.mxu3  ;;  %v1787_v40 = vpop.f32.mrf.mxu1  ;;  %v1799_v43 = vadd.f32 %v1798_v35, %v1786_v42 }
 0x144   :  { %2315 = vmatpush.bf16.msra.mxu0 %v7117_v34 }
 0x145   :  { %v1812_v44 = vadd.f32 %v1811_v36, %v1799_v43  ;;  %v7116_v36 = vld [vmem:[%s8098_s5] sm:$0xff] }
 0x148   :  { %2316 = vmatpush.bf16.msra.mxu0 %v7116_v36 }
 0x14a   :  { %v1800_v11 = vpop.f32.mrf.mxu2 }
 0x14b   :  { %v1813_v8 = vpop.f32.mrf.mxu3 }
 0x14c   :  { %v7125_v8 = vld [vmem:[%s8100_s7 + $0x8] sm:$0xff] }
 0x14d   :  { %2370 = vmatpush.bf16.msra.mxu1 %v7125_v8 }
 0x151   :  { %2371 = vmatpush.bf16.msra.mxu1 %v7124_v9 }
 0x15a   :  { %v1824_v45 = vpop.f32.mrf.mxu0 }
 0x15b   :  { %v1825_v31 = vadd.f32 %v1824_v45, %v1812_v44  ;;  %v1837_v47 = vpop.f32.mrf.mxu1 }
 0x15c   :  { %v1838_v63 = vadd.f32 %v1837_v47, %v405_v62 }
 0x15d   :  { %v1921_v49 = vmax.f32 %v1825_v31, 0.0 }
 0x15f   :  { %v1925_v53 = vpack.c.bf16 %v1921_v49, %v1921_v49 }
 0x161   :  { %2221 = vmatmul.bf16.vlgmr.msrb.gmra.mxu2 %v1925_v53 }
 0x162   :  { %v1850_v56 = vpop.f32.mrf.mxu2  ;;  %v1826_v57 = vpop.f32.mrf.mxu0 }
 0x163   :  { %v1863_v29 = vpop.f32.mrf.mxu3  ;;  %v1839_v60 = vpop.f32.mrf.mxu1  ;;  %v1851_v59 = vadd.f32 %v1850_v56, %v1838_v63  ;;  %v2418_v57 = vld [vmem:[%s8104_s11] sm:$0x1] }
 0x164   :  { %v2428_v58 = vsel %vm2426_vm1, %v2418_v57, 0  ;;  %v2377_v60 = vld [vmem:[%s8102_s9] sm:$0xff] }
 0x165   :  { %v1864_v0 = vadd.f32 %v1863_v29, %v1851_v59  ;;  %v7514_v29 = vmov 0.0   ;;  %2437 = vmatpush.bf16.msra.mxu3 %v2428_v58  ;;  %v2387_v63 = vld [vmem:[%s8103_s10] sm:$0xff]  ;;  %v7131_v59 = vld [vmem:[%s8106_s13 + $0x18] sm:$0xff] }
 0x166   :  { %2412 = vst [vmem:[%s8113_s20] sm:$0xff] %v7514_v29  ;;  %2488 = vmatpush.bf16.msrb.mxu1 %v7131_v59 }
 0x167   :  { %2413 = vst [vmem:[%s8113_s20 + $0x8] sm:$0xff] %v7514_v29 }
 0x16a   :  { %v1852_v61 = vpop.f32.mrf.mxu2 }
 0x16b   :  { %v1865_v30 = vpop.f32.mrf.mxu3 }
 0x17a   :  { %v1876_v1 = vpop.f32.mrf.mxu0 }
 0x17b   :  { %v1889_v48 = vpop.f32.mrf.mxu1  ;;  %v1877_v3 = vadd.f32 %v1876_v1, %v1864_v0  ;;  %v7130_v0 = vld [vmem:[%s8106_s13 + $0x10] sm:$0xff] }
 0x17c   :  { %2489 = vmatpush.bf16.msrb.mxu1 %v7130_v0 }
 0x17d   :  { %v1890_v4 = vadd.f32 %v1889_v48, %v1877_v3  ;;  %v7129_v3 = vld [vmem:[%s8106_s13 + $0x8] sm:$0xff] }
 0x180   :  { %2490 = vmatpush.bf16.msrb.mxu1 %v7129_v3 }
 0x182   :  { %v1902_v6 = vpop.f32.mrf.mxu2  ;;  %v1878_v12 = vpop.f32.mrf.mxu0 }
 0x183   :  { %v1903_v7 = vadd.f32 %v1902_v6, %v1890_v4  ;;  %v1915_v10 = vpop.f32.mrf.mxu3  ;;  %v1891_v13 = vpop.f32.mrf.mxu1  ;;  %v7128_v4 = vld [vmem:[%s8106_s13] sm:$0xff] }
 0x184   :  { %2491 = vmatpush.bf16.msrb.mxu1 %v7128_v4  ;;  %v7398_v6 = vld [vmem:[%s8105_s12] ss:$0 sm:$0xff] }
 0x185   :  { %v1916_v14 = vadd.f32 %v1915_v10, %v1903_v7 }
 0x187   :  { %v1922_v16 = vmax.f32 %v1916_v14, 0.0 }
 0x189   :  { %v1926_v17 = vpack.c.bf16 %v1922_v16, %v1922_v16  ;;  %v7399_v16 = vld [vmem:[%s8107_s14] ss:$0 sm:$0xff] }
 0x18a   :  { %v1904_v18 = vpop.f32.mrf.mxu2 }
 0x18b   :  { %v1917_v19 = vpop.f32.mrf.mxu3  ;;  %2234 = vmatmul.bf16.vlgmr.msrb.gmra.mxu3 %v1926_v17 }
 0x19a   :  { %v2196_v20 = vpop.f32.mrf.mxu0 }
 0x19b   :  { %v2197_v22 = vadd.f32 %v7395_v21, %v2196_v20 }
 0x1a0   :  { %v2209_v23 = vpop.f32.mrf.mxu1 }
 0x1a1   :  { %v2210_v24 = vadd.f32 %v2209_v23, %v2197_v22 }
 0x1a2   :  { %v2198_v15 = vpop.f32.mrf.mxu0 }
 0x1a8   :  { %v2211_v25 = vpop.f32.mrf.mxu1 }
 0x1e4   :  { %v2222_v33 = vpop.f32.mrf.mxu2 }
 0x1e5   :  { %v2223_v39 = vadd.f32 %v2222_v33, %v2210_v24 }
 0x1ec   :  { %v2224_v35 = vpop.f32.mrf.mxu2 }
 0x20e   :  { %v2235_v40 = vpop.f32.mrf.mxu3 }
 0x20f   :  { %v2236_v2 = vadd.f32 %v2235_v40, %v2223_v39 }
 0x211   :  { %v2239_v41 = vmax.f32 %v2236_v2, 0.0 }
 0x213   :  { %v2240_v11 = vpack.c.bf16 %v2239_v41, %v2239_v41 }
 0x215   :  { %2317 = vmatmul.bf16.vlgmr.msra.gmra.mxu0 %v2240_v11 }
 0x216   :  { %v2237_v52 = vpop.f32.mrf.mxu3 }
 0x292   :  { %v2318_v42 = vpop.f32.mrf.mxu0 }
 0x293   :  { %v2319_v43 = vadd.f32 %v7396_v5, %v2318_v42 }
 0x295   :  { %v2322_v26 = vmax.f32 %v2319_v43, 0.0 }
 0x297   :  { %v2323_v44 = vpack.c.bf16 %v2322_v26, %v2322_v26 }
 0x299   :  { %5807 = vmatmul.msk.bf16.vlgmr.msra.gmra.mxu1 %vm2360_vm0, %v2323_v44 }
 0x29a   :  { %v2320_v45 = vpop.f32.mrf.mxu0 }
 0x316   :  { %v2373_v31 = vpop.f32.mrf.mxu1 }
 0x317   :  { %v2374_v47 = vadd.f32 %v7397_v46, %v2373_v31 }
 0x319   :  { %v2378_v49 = vmul.f32 0.5, %v2374_v47 }
 0x31b   :  { %v2379_v53 = vmul.f32 1.442695, %v2378_v49 }
 0x31d   :  { %7400 = vpow2.f32 %v2379_v53 }
 0x31e   :  { %v2375_v55 = vpop.f32.mrf.mxu1 }
 0x323   :  { %v7401_v56 = vpop.eup %7400 }
 0x324   :  { %2382 = vrot.lane.b32.xlu0 %v7401_v56, %s7513_s6 }
 0x396   :  { %v2383_v61 = vpop.permute.xlu0 %2382 }
 0x397   :  { %v2385_v30 = vmul.f32 %v2383_v61, %v2377_v60 }
 0x399   :  { %v2386_v62 = vadd.f32 %v2385_v30, %v2374_v47 }
 0x39b   :  { %2407 = vmatpush.msra.mxu2 %v2386_v62  ;;  %2415 = vst.msk [vmem:[%s8113_s20] sm:$0xff] %vm2414_vm2, %v2386_v62 }
 0x39c   :  { %5808 = vmatmul.msk.f32.vlgmr.msra.gmra.mxu2 %vm2388_vm3, %v2387_v63 }
 0x41f   :  { %v2409_v1 = vpop.f32.mrf.mxu2 }
 0x420   :  { %2416 = vst.msk [vmem:[%s8113_s20 + $0x8] sm:$0xff] %vm2414_vm2, %v2409_v1  ;;  %v2417_v48 = vpack.c.bf16 %v2409_v1, %v2409_v1 }
 0x422   :  { %5809 = vmatmul.msk.bf16.vlgmr.msra.gmra.mxu3 %vm2414_vm2, %v2417_v48 }
 0x4a5   :  { %v2439_v7 = vpop.f32.mrf.mxu3 }
 0x4a6   :  { %v2440_v10 = vadd.f32 %v7398_v6, %v2439_v7 }
 0x4a8   :  { %v2443_v12 = vmax.f32 %v2440_v10, 0.0 }
 0x4aa   :  { %v2444_v13 = vpack.c.bf16 %v2443_v12, %v2443_v12 }
 0x4ac   :  { %5826 = vmatmul.msk.bf16.vlgmr.msrb.gmra.mxu1 %vm2360_vm0, %v2444_v13 }
 0x4ad   :  { %v2441_v14 = vpop.f32.mrf.mxu3 }
 0x529   :  { %v2493_v17 = vpop.f32.mrf.mxu1 }
 0x52a   :  { %v7993_v18 = vadd.f32 %v7399_v16, %v2493_v17 }
 0x52c   :  { %v2497_v19 = vmax.f32 %v7993_v18, 0.0 }
 0x531   :  { %v2495_v20 = vpop.f32.mrf.mxu1 }
 0x532   :  { %7504 = dma.done.wait [#allocation4], 4096 }
 0x533   :  { %7505 = vsyncadd [#allocation4], 4294963200  ;;  %v5941_v15 = vld [vmem:[#allocation2 + $0xe0] sm:$0xf]  ;;  %v7162_v21 = vld [vmem:[#allocation2 + $0xec] sm:$0xf0] }
 0x534   :  { %v7160_v22 = vld [vmem:[#allocation2 + $0xe4] sm:$0xf]  ;;  %v5942_v23 = vor.u32 %v7162_v21, %v5941_v15  ;;  %v5943_v24 = vld [vmem:[#allocation2 + $0xf0] sm:$0xf0]  ;;  %v5949_v25 = vld [vmem:[#allocation2 + $0xe8] sm:$0xf] }
 0x535   :  { %v7163_v54 = vld [vmem:[#allocation2 + $0xf4] sm:$0xf0]  ;;  %v5946_v27 = vor.u32 %v7160_v22, %v5943_v24  ;;  %v7161_v50 = vld [vmem:[#allocation2 + $0xec] sm:$0xf]  ;;  %v5951_v51 = vld [vmem:[#allocation2 + $0xf8] sm:$0xf0] }
 0x536   :  { %v5950_v28 = vor.u32 %v7163_v54, %v5949_v25  ;;  %v5925_v32 = vld [vmem:[#allocation2 + $0xc0] sm:$0xf]  ;;  %2705 = vmatpush.bf16.msrb.mxu2 %v5942_v23  ;;  %v5954_v33 = vor.u32 %v7161_v50, %v5951_v51  ;;  %v7158_v34 = vld [vmem:[#allocation2 + $0xcc] sm:$0xf0]  ;;  %v7156_v35 = vld [vmem:[#allocation2 + $0xc4] sm:$0xf] }
 0x537   :  { %v5927_v36 = vld [vmem:[#allocation2 + $0xd0] sm:$0xf0]  ;;  %2718 = vmatpush.bf16.msrb.mxu3 %v5946_v27  ;;  %v5926_v37 = vor.u32 %v7158_v34, %v5925_v32  ;;  %v5933_v39 = vld [vmem:[#allocation2 + $0xc8] sm:$0xf]  ;;  %v7159_v40 = vld [vmem:[#allocation2 + $0xd4] sm:$0xf0] }
 0x538   :  { %2731 = vmatpush.bf16.msrb.mxu0 %v5950_v28  ;;  %v5930_v38 = vor.u32 %v7156_v35, %v5927_v36  ;;  %v7157_v2 = vld [vmem:[#allocation2 + $0xcc] sm:$0xf]  ;;  %2744 = vmatpush.bf16.msra.mxu1 %v5954_v33  ;;  %v5934_v41 = vor.u32 %v7159_v40, %v5933_v39  ;;  %v5935_v11 = vld [vmem:[#allocation2 + $0xd8] sm:$0xf0]  ;;  %v5909_v52 = vld [vmem:[#allocation2 + $0xa0] sm:$0xf] }
 0x539   :  { %v7154_v8 = vld [vmem:[#allocation2 + $0xac] sm:$0xf0]  ;;  %v5938_v9 = vor.u32 %v7157_v2, %v5935_v11  ;;  %v7152_v5 = vld [vmem:[#allocation2 + $0xa4] sm:$0xf]  ;;  %v5911_v42 = vld [vmem:[#allocation2 + $0xb0] sm:$0xf0] }
 0x53a   :  { %v5917_v43 = vld [vmem:[#allocation2 + $0xa8] sm:$0xf]  ;;  %2706 = vmatpush.bf16.msrb.mxu2 %v5926_v37  ;;  %v5910_v26 = vor.u32 %v7154_v8, %v5909_v52  ;;  %v7155_v44 = vld [vmem:[#allocation2 + $0xb4] sm:$0xf0]  ;;  %v7153_v45 = vld [vmem:[#allocation2 + $0xac] sm:$0xf]  ;;  %v5914_v31 = vor.u32 %v7152_v5, %v5911_v42 }
 0x53b   :  { %v5919_v46 = vld [vmem:[#allocation2 + $0xb8] sm:$0xf0]  ;;  %2719 = vmatpush.bf16.msrb.mxu3 %v5930_v38  ;;  %v5918_v47 = vor.u32 %v7155_v44, %v5917_v43  ;;  %v5893_v49 = vld [vmem:[#allocation2 + $0x80] sm:$0xf]  ;;  %v7150_v53 = vld [vmem:[#allocation2 + $0x8c] sm:$0xf0] }
 0x53c   :  { %2732 = vmatpush.bf16.msrb.mxu0 %v5934_v41  ;;  %v7148_v55 = vld [vmem:[#allocation2 + $0x84] sm:$0xf]  ;;  %2745 = vmatpush.bf16.msra.mxu1 %v5938_v9  ;;  %v5922_v56 = vor.u32 %v7153_v45, %v5919_v46  ;;  %v5895_v29 = vld [vmem:[#allocation2 + $0x90] sm:$0xf0]  ;;  %v5901_v57 = vld [vmem:[#allocation2 + $0x88] sm:$0xf]  ;;  %v5894_v30 = vor.u32 %v7150_v53, %v5893_v49 }
 0x53d   :  { %v7151_v58 = vld [vmem:[#allocation2 + $0x94] sm:$0xf0]  ;;  %v7149_v60 = vld [vmem:[#allocation2 + $0x8c] sm:$0xf]  ;;  %v5903_v61 = vld [vmem:[#allocation2 + $0x98] sm:$0xf0]  ;;  %v5898_v62 = vor.u32 %v7148_v55, %v5895_v29 }
 0x53e   :  { %2707 = vmatpush.bf16.msrb.mxu2 %v5910_v26  ;;  %v5902_v63 = vor.u32 %v7151_v58, %v5901_v57  ;;  %v5877_v59 = vld [vmem:[#allocation2 + $0x60] sm:$0xf]  ;;  %v7146_v0 = vld [vmem:[#allocation2 + $0x6c] sm:$0xf0]  ;;  %v7144_v1 = vld [vmem:[#allocation2 + $0x64] sm:$0xf]  ;;  %v5906_v48 = vor.u32 %v7149_v60, %v5903_v61 }
 0x53f   :  { %2720 = vmatpush.bf16.msrb.mxu3 %v5914_v31  ;;  %v5879_v3 = vld [vmem:[#allocation2 + $0x70] sm:$0xf0]  ;;  %v5885_v4 = vld [vmem:[#allocation2 + $0x68] sm:$0xf]  ;;  %v7147_v6 = vld [vmem:[#allocation2 + $0x74] sm:$0xf0]  ;;  %v5878_v12 = vor.u32 %v7146_v0, %v5877_v59 }
 0x540   :  { %2733 = vmatpush.bf16.msrb.mxu0 %v5918_v47  ;;  %2746 = vmatpush.bf16.msra.mxu1 %v5922_v56  ;;  %v7145_v7 = vld [vmem:[#allocation2 + $0x6c] sm:$0xf]  ;;  %v5887_v10 = vld [vmem:[#allocation2 + $0x78] sm:$0xf0]  ;;  %v5882_v13 = vor.u32 %v7144_v1, %v5879_v3  ;;  %v5886_v14 = vor.u32 %v7147_v6, %v5885_v4  ;;  %v5861_v16 = vld [vmem:[#allocation2 + $0x40] sm:$0xf]  ;;  %v2502_v47 = vpack.c.bf16 %v2497_v19, %v2497_v19 }
 0x541   :  { %v7142_v17 = vld [vmem:[#allocation2 + $0x4c] sm:$0xf0]  ;;  %v7140_v20 = vld [vmem:[#allocation2 + $0x44] sm:$0xf]  ;;  %v5890_v15 = vor.u32 %v7145_v7, %v5887_v10  ;;  %v5863_v21 = vld [vmem:[#allocation2 + $0x50] sm:$0xf0] }
 0x542   :  { %2708 = vmatpush.bf16.msrb.mxu2 %v5894_v30  ;;  %v5869_v22 = vld [vmem:[#allocation2 + $0x48] sm:$0xf]  ;;  %v7143_v23 = vld [vmem:[#allocation2 + $0x54] sm:$0xf0]  ;;  %v7141_v24 = vld [vmem:[#allocation2 + $0x4c] sm:$0xf]  ;;  %v5862_v54 = vor.u32 %v7142_v17, %v5861_v16  ;;  %v5866_v27 = vor.u32 %v7140_v20, %v5863_v21 }
 0x543   :  { %2721 = vmatpush.bf16.msrb.mxu3 %v5898_v62  ;;  %v5871_v25 = vld [vmem:[#allocation2 + $0x58] sm:$0xf0]  ;;  %v5870_v28 = vor.u32 %v7143_v23, %v5869_v22  ;;  %v5845_v50 = vld [vmem:[#allocation2 + $0x20] sm:$0xf]  ;;  %v7138_v51 = vld [vmem:[#allocation2 + $0x2c] sm:$0xf0] }
 0x544   :  { %2734 = vmatpush.bf16.msrb.mxu0 %v5902_v63  ;;  %2747 = vmatpush.bf16.msra.mxu1 %v5906_v48  ;;  %v7136_v32 = vld [vmem:[#allocation2 + $0x24] sm:$0xf]  ;;  %v5874_v33 = vor.u32 %v7141_v24, %v5871_v25  ;;  %v5847_v34 = vld [vmem:[#allocation2 + $0x30] sm:$0xf0]  ;;  %v5853_v35 = vld [vmem:[#allocation2 + $0x28] sm:$0xf]  ;;  %v5846_v39 = vor.u32 %v7138_v51, %v5845_v50 }
 0x545   :  { %v7139_v36 = vld [vmem:[#allocation2 + $0x34] sm:$0xf0]  ;;  %v7137_v37 = vld [vmem:[#allocation2 + $0x2c] sm:$0xf]  ;;  %v5855_v38 = vld [vmem:[#allocation2 + $0x38] sm:$0xf0]  ;;  %v5850_v40 = vor.u32 %v7136_v32, %v5847_v34 }
 0x546   :  { %2709 = vmatpush.bf16.msrb.mxu2 %v5878_v12  ;;  %v5854_v2 = vor.u32 %v7139_v36, %v5853_v35  ;;  %v5829_v41 = vld [vmem:[#allocation2] sm:$0xf]  ;;  %v7134_v11 = vld [vmem:[#allocation2 + $0xc] sm:$0xf0]  ;;  %v7132_v52 = vld [vmem:[#allocation2 + $0x4] sm:$0xf]  ;;  %v5858_v8 = vor.u32 %v7137_v37, %v5855_v38 }
 0x547   :  { %2722 = vmatpush.bf16.msrb.mxu3 %v5882_v13  ;;  %v5831_v9 = vld [vmem:[#allocation2 + $0x10] sm:$0xf0]  ;;  %v5837_v5 = vld [vmem:[#allocation2 + $0x8] sm:$0xf]  ;;  %v7135_v42 = vld [vmem:[#allocation2 + $0x14] sm:$0xf0]  ;;  %v5830_v44 = vor.u32 %v7134_v11, %v5829_v41 }
 0x548   :  { %2735 = vmatpush.bf16.msrb.mxu0 %v5886_v14  ;;  %2748 = vmatpush.bf16.msra.mxu1 %v5890_v15  ;;  %v7133_v43 = vld [vmem:[#allocation2 + $0xc] sm:$0xf]  ;;  %v5839_v26 = vld [vmem:[#allocation2 + $0x18] sm:$0xf0]  ;;  %v5834_v45 = vor.u32 %v7132_v52, %v5831_v9  ;;  %v5838_v46 = vor.u32 %v7135_v42, %v5837_v5  ;;  %v2535_v49 = vld [vmem:[%s8109_s16] sm:$0xf] }
 0x549   :  { %v5842_v31 = vor.u32 %v7133_v43, %v5839_v26  ;;  %v2539_v53 = vperm.slane %v2535_v49, 2  ;;  %v2540_v55 = vperm.slane %v2535_v49, 3  ;;  %v2537_v19 = vperm.slane %v2535_v49, 0 }
 0x54a   :  { %2710 = vmatpush.bf16.msrb.mxu2 %v5862_v54  ;;  %v2538_v60 = vperm.slane %v2535_v49, 1 }
 0x54b   :  { %2723 = vmatpush.bf16.msrb.mxu3 %v5866_v27 }
 0x54c   :  { %2736 = vmatpush.bf16.msrb.mxu0 %v5870_v28  ;;  %2749 = vmatpush.bf16.msra.mxu1 %v5874_v33 }
 0x54e   :  { %2711 = vmatpush.bf16.msrb.mxu2 %v5846_v39 }
 0x54f   :  { %2724 = vmatpush.bf16.msrb.mxu3 %v5850_v40 }
 0x550   :  { %2737 = vmatpush.bf16.msrb.mxu0 %v5854_v2  ;;  %2750 = vmatpush.bf16.msra.mxu1 %v5858_v8 }
 0x552   :  { %2712 = vmatpush.bf16.msrb.mxu2 %v5830_v44 }
 0x553   :  { %2725 = vmatpush.bf16.msrb.mxu3 %v5834_v45 }
 0x554   :  { %2738 = vmatpush.bf16.msrb.mxu0 %v5838_v46  ;;  %2751 = vmatpush.bf16.msra.mxu1 %v5842_v31 }
 0x555   :  { %2713 = vmatmul.bf16.vlgmr.msrb.gmra.mxu2 %v2502_v47 }
 0x556   :  { %2726 = vmatmul.bf16.vlgmr.msrb.gmra.mxu3 %v2502_v47 }
 0x557   :  { %2739 = vmatmul.bf16.vlgmr.msrb.gmra.mxu0 %v2502_v47  ;;  %2752 = vmatmul.bf16.vlgmr.msra.gmra.mxu1 %v2502_v47 }
 0x5d4   :  { %v2740_v56 = vpop.f32.mrf.mxu0  ;;  %v2753_v18 = vpop.f32.mrf.mxu1 }
 0x5d5   :  { %v8002_v29 = vadd.f32 %v2740_v56, %v2539_v53  ;;  %v8004_v57 = vadd.f32 %v2753_v18, %v2540_v55 }
 0x5d7   :  { %v2759_v58 = vmax.f32 %v8002_v29, 0.0  ;;  %v2760_v61 = vmax.f32 %v8004_v57, 0.0 }
 0x5d8   :  { %v2714_v30 = vpop.f32.mrf.mxu2 }
 0x5d9   :  { %v8008_v62 = vadd.f32 %v2714_v30, %v2537_v19  ;;  %v2727_v63 = vpop.f32.mrf.mxu3 }
 0x5da   :  { %v8010_v59 = vadd.f32 %v2727_v63, %v2538_v60 }
 0x5db   :  { %v2757_v0 = vmax.f32 %v8008_v62, 0.0 }
 0x5dc   :  { %v2742_v1 = vpop.f32.mrf.mxu0  ;;  %v2758_v48 = vmax.f32 %v8010_v59, 0.0  ;;  %v2755_v3 = vpop.f32.mrf.mxu1 }
 0x5e0   :  { %v2716_v4 = vpop.f32.mrf.mxu2 }
 0x5e1   :  { %v2729_v6 = vpop.f32.mrf.mxu3 }
 0x5e2   :  { %7506 = dma.done.wait [#allocation4 + $0x1], 28672 }
 0x5e3   :  { %7507 = vsyncadd [#allocation4 + $0x1], 4294938624  ;;  %v6153_v7 = vld [vmem:[#allocation3 + $0x188] sm:$0xf]  ;;  %v7216_v10 = vld [vmem:[#allocation3 + $0x1a0] sm:$0xf0]  ;;  %v8027_v62 = vpack.c.bf16 %v2759_v58, %v2759_v58  ;;  %v8032_v59 = vpack.c.bf16 %v2760_v61, %v2760_v61 }
 0x5e4   :  { %v6377_v12 = vld [vmem:[#allocation3 + $0x348] sm:$0xf]  ;;  %v6154_v13 = vor.u32 %v7216_v10, %v6153_v7  ;;  %v7272_v14 = vld [vmem:[#allocation3 + $0x360] sm:$0xf0]  ;;  %v6125_v21 = vld [vmem:[#allocation3 + $0x150] sm:$0xf] }
 0x5e5   :  { %v6601_v16 = vld [vmem:[#allocation3 + $0x508] sm:$0xf]  ;;  %v7328_v17 = vld [vmem:[#allocation3 + $0x520] sm:$0xf0]  ;;  %v6378_v20 = vor.u32 %v7272_v14, %v6377_v12  ;;  %v7209_v22 = vld [vmem:[#allocation3 + $0x168] sm:$0xf0] }
 0x5e6   :  { %v6602_v15 = vor.u32 %v7328_v17, %v6601_v16  ;;  %v6349_v23 = vld [vmem:[#allocation3 + $0x310] sm:$0xf]  ;;  %4193 = vmatpush.bf16.msra.mxu2 %v6154_v13  ;;  %v6126_v24 = vor.u32 %v7209_v22, %v6125_v21  ;;  %v7265_v25 = vld [vmem:[#allocation3 + $0x328] sm:$0xf0]  ;;  %v6825_v54 = vld [vmem:[#allocation3 + $0x6c8] sm:$0xf] }
 0x5e7   :  { %v7384_v27 = vld [vmem:[#allocation3 + $0x6e0] sm:$0xf0]  ;;  %4206 = vmatpush.bf16.msra.mxu3 %v6378_v20  ;;  %v6350_v28 = vor.u32 %v7265_v25, %v6349_v23  ;;  %v6573_v51 = vld [vmem:[#allocation3 + $0x4d0] sm:$0xf]  ;;  %v7321_v32 = vld [vmem:[#allocation3 + $0x4e8] sm:$0xf0] }
 0x5e8   :  { %4219 = vmatpush.bf16.msra.mxu0 %v6602_v15  ;;  %v6826_v50 = vor.u32 %v7384_v27, %v6825_v54  ;;  %v6097_v33 = vld [vmem:[#allocation3 + $0x118] sm:$0xf]  ;;  %v6574_v34 = vor.u32 %v7321_v32, %v6573_v51  ;;  %v7202_v35 = vld [vmem:[#allocation3 + $0x130] sm:$0xf0]  ;;  %v6797_v38 = vld [vmem:[#allocation3 + $0x690] sm:$0xf] }
 0x5e9   :  { %v6321_v36 = vld [vmem:[#allocation3 + $0x2d8] sm:$0xf]  ;;  %v7258_v37 = vld [vmem:[#allocation3 + $0x2f0] sm:$0xf0]  ;;  %v7377_v39 = vld [vmem:[#allocation3 + $0x6a8] sm:$0xf0]  ;;  %v6098_v2 = vor.u32 %v7202_v35, %v6097_v33 }
 0x5ea   :  { %4232 = vmatpush.bf16.msrb.mxu1 %v6826_v50  ;;  %v6545_v40 = vld [vmem:[#allocation3 + $0x498] sm:$0xf]  ;;  %4194 = vmatpush.bf16.msra.mxu2 %v6126_v24  ;;  %v6798_v41 = vor.u32 %v7377_v39, %v6797_v38  ;;  %v7314_v11 = vld [vmem:[#allocation3 + $0x4b0] sm:$0xf0]  ;;  %v6069_v52 = vld [vmem:[#allocation3 + $0xe0] sm:$0xf]  ;;  %v6322_v9 = vor.u32 %v7258_v37, %v6321_v36 }
 0x5eb   :  { %v7195_v8 = vld [vmem:[#allocation3 + $0xf8] sm:$0xf0]  ;;  %4207 = vmatpush.bf16.msra.mxu3 %v6350_v28  ;;  %v6546_v5 = vor.u32 %v7314_v11, %v6545_v40  ;;  %v6293_v42 = vld [vmem:[#allocation3 + $0x2a0] sm:$0xf]  ;;  %v6769_v26 = vld [vmem:[#allocation3 + $0x658] sm:$0xf] }
 0x5ec   :  { %4220 = vmatpush.bf16.msra.mxu0 %v6574_v34  ;;  %v7251_v43 = vld [vmem:[#allocation3 + $0x2b8] sm:$0xf0]  ;;  %v7370_v44 = vld [vmem:[#allocation3 + $0x670] sm:$0xf0]  ;;  %v6517_v45 = vld [vmem:[#allocation3 + $0x460] sm:$0xf]  ;;  %v6070_v47 = vor.u32 %v7195_v8, %v6069_v52 }
 0x5ed   :  { %v7307_v46 = vld [vmem:[#allocation3 + $0x478] sm:$0xf0]  ;;  %v6770_v31 = vor.u32 %v7370_v44, %v6769_v26  ;;  %v6741_v49 = vld [vmem:[#allocation3 + $0x620] sm:$0xf]  ;;  %v6294_v55 = vor.u32 %v7251_v43, %v6293_v42  ;;  %v6041_v18 = vld [vmem:[#allocation3 + $0xa8] sm:$0xf] }
 0x5ee   :  { %4233 = vmatpush.bf16.msrb.mxu1 %v6798_v41  ;;  %4195 = vmatpush.bf16.msra.mxu2 %v6098_v2  ;;  %v7363_v53 = vld [vmem:[#allocation3 + $0x638] sm:$0xf0]  ;;  %v6518_v56 = vor.u32 %v7307_v46, %v6517_v45  ;;  %v7188_v19 = vld [vmem:[#allocation3 + $0xc0] sm:$0xf0]  ;;  %v6265_v60 = vld [vmem:[#allocation3 + $0x268] sm:$0xf] }
 0x5ef   :  { %4208 = vmatpush.bf16.msra.mxu3 %v6322_v9  ;;  %v7244_v30 = vld [vmem:[#allocation3 + $0x280] sm:$0xf0]  ;;  %v6489_v63 = vld [vmem:[#allocation3 + $0x428] sm:$0xf]  ;;  %v6742_v3 = vor.u32 %v7363_v53, %v6741_v49  ;;  %v6042_v4 = vor.u32 %v7188_v19, %v6041_v18  ;;  %v6013_v13 = vld [vmem:[#allocation3 + $0x70] sm:$0xf] }
 0x5f0   :  { %4221 = vmatpush.bf16.msra.mxu0 %v6546_v5  ;;  %v7300_v1 = vld [vmem:[#allocation3 + $0x440] sm:$0xf0]  ;;  %v6713_v6 = vld [vmem:[#allocation3 + $0x5e8] sm:$0xf]  ;;  %v6266_v10 = vor.u32 %v7244_v30, %v6265_v60  ;;  %v7181_v14 = vld [vmem:[#allocation3 + $0x88] sm:$0xf0] }
 0x5f1   :  { %v7356_v7 = vld [vmem:[#allocation3 + $0x600] sm:$0xf0]  ;;  %v6490_v12 = vor.u32 %v7300_v1, %v6489_v63  ;;  %v6237_v16 = vld [vmem:[#allocation3 + $0x230] sm:$0xf]  ;;  %v7237_v17 = vld [vmem:[#allocation3 + $0x248] sm:$0xf0]  ;;  %v6014_v22 = vor.u32 %v7181_v14, %v6013_v13 }
 0x5f2   :  { %4234 = vmatpush.bf16.msrb.mxu1 %v6770_v31  ;;  %4196 = vmatpush.bf16.msra.mxu2 %v6070_v47  ;;  %v6461_v20 = vld [vmem:[#allocation3 + $0x3f0] sm:$0xf]  ;;  %v7293_v15 = vld [vmem:[#allocation3 + $0x408] sm:$0xf0]  ;;  %v6714_v21 = vor.u32 %v7356_v7, %v6713_v6  ;;  %v6238_v25 = vor.u32 %v7237_v17, %v6237_v16  ;;  %v5985_v27 = vld [vmem:[#allocation3 + $0x38] sm:$0xf]  ;;  %v8022_v17 = vpack.c.bf16 %v2758_v48, %v2758_v48 }
 0x5f3   :  { %4209 = vmatpush.bf16.msra.mxu3 %v6294_v55  ;;  %v6685_v23 = vld [vmem:[#allocation3 + $0x5b0] sm:$0xf]  ;;  %v7349_v24 = vld [vmem:[#allocation3 + $0x5c8] sm:$0xf0]  ;;  %v6462_v54 = vor.u32 %v7293_v15, %v6461_v20  ;;  %v7174_v28 = vld [vmem:[#allocation3 + $0x50] sm:$0xf0] }
 0x5f4   :  { %4222 = vmatpush.bf16.msra.mxu0 %v6518_v56  ;;  %v6209_v50 = vld [vmem:[#allocation3 + $0x1f8] sm:$0xf]  ;;  %v7230_v51 = vld [vmem:[#allocation3 + $0x210] sm:$0xf0]  ;;  %v6686_v34 = vor.u32 %v7349_v24, %v6685_v23  ;;  %v5957_v35 = vld [vmem:[#allocation3] sm:$0xf]  ;;  %v5986_v36 = vor.u32 %v7174_v28, %v5985_v27 }
 0x5f5   :  { %v6433_v32 = vld [vmem:[#allocation3 + $0x3b8] sm:$0xf]  ;;  %v7286_v33 = vld [vmem:[#allocation3 + $0x3d0] sm:$0xf0]  ;;  %v7167_v37 = vld [vmem:[#allocation3 + $0x18] sm:$0xf0]  ;;  %v6210_v40 = vor.u32 %v7230_v51, %v6209_v50 }
 0x5f6   :  { %4235 = vmatpush.bf16.msrb.mxu1 %v6742_v3  ;;  %4197 = vmatpush.bf16.msra.mxu2 %v6042_v4  ;;  %v6657_v38 = vld [vmem:[#allocation3 + $0x578] sm:$0xf]  ;;  %v7342_v39 = vld [vmem:[#allocation3 + $0x590] sm:$0xf0]  ;;  %v6434_v2 = vor.u32 %v7286_v33, %v6433_v32  ;;  %v6181_v41 = vld [vmem:[#allocation3 + $0x1c0] sm:$0xf]  ;;  %v5958_v45 = vor.u32 %v7167_v37, %v5957_v35 }
 0x5f7   :  { %4210 = vmatpush.bf16.msra.mxu3 %v6266_v10  ;;  %v7223_v11 = vld [vmem:[#allocation3 + $0x1d8] sm:$0xf0]  ;;  %v7213_v52 = vld [vmem:[#allocation3 + $0x18c] sm:$0xf]  ;;  %v6155_v8 = vld [vmem:[#allocation3 + $0x1a4] sm:$0xf0]  ;;  %v6658_v42 = vor.u32 %v7342_v39, %v6657_v38 }
 0x5f8   :  { %4223 = vmatpush.bf16.msra.mxu0 %v6490_v12  ;;  %v7269_v9 = vld [vmem:[#allocation3 + $0x34c] sm:$0xf]  ;;  %v6379_v5 = vld [vmem:[#allocation3 + $0x364] sm:$0xf0]  ;;  %v6405_v43 = vld [vmem:[#allocation3 + $0x380] sm:$0xf]  ;;  %v6182_v49 = vor.u32 %v7223_v11, %v6181_v41  ;;  %v6158_v53 = vor.u32 %v7213_v52, %v6155_v8  ;;  %v8017_v12 = vpack.c.bf16 %v2757_v0, %v2757_v0 }
 0x5f9   :  { %v7279_v26 = vld [vmem:[#allocation3 + $0x398] sm:$0xf0]  ;;  %v7325_v44 = vld [vmem:[#allocation3 + $0x50c] sm:$0xf]  ;;  %v6603_v46 = vld [vmem:[#allocation3 + $0x524] sm:$0xf0]  ;;  %v6382_v18 = vor.u32 %v7269_v9, %v6379_v5 }
 0x5fa   :  { %4236 = vmatpush.bf16.msrb.mxu1 %v6714_v21  ;;  %4198 = vmatpush.bf16.msra.mxu2 %v6014_v22  ;;  %v6629_v31 = vld [vmem:[#allocation3 + $0x540] sm:$0xf]  ;;  %v7335_v47 = vld [vmem:[#allocation3 + $0x558] sm:$0xf0]  ;;  %v7381_v55 = vld [vmem:[#allocation3 + $0x6cc] sm:$0xf]  ;;  %v6406_v19 = vor.u32 %v7279_v26, %v6405_v43  ;;  %v6606_v63 = vor.u32 %v7325_v44, %v6603_v46 }
 0x5fb   :  { %4211 = vmatpush.bf16.msra.mxu3 %v6238_v25  ;;  %v6827_v56 = vld [vmem:[#allocation3 + $0x6e4] sm:$0xf0]  ;;  %v7206_v60 = vld [vmem:[#allocation3 + $0x154] sm:$0xf]  ;;  %v6127_v30 = vld [vmem:[#allocation3 + $0x16c] sm:$0xf0]  ;;  %v6630_v1 = vor.u32 %v7335_v47, %v6629_v31 }
 0x5fc   :  { %4224 = vmatpush.bf16.msra.mxu0 %v6462_v54  ;;  %v7262_v3 = vld [vmem:[#allocation3 + $0x314] sm:$0xf]  ;;  %v6351_v4 = vld [vmem:[#allocation3 + $0x32c] sm:$0xf0]  ;;  %v6830_v6 = vor.u32 %v7381_v55, %v6827_v56  ;;  %v6130_v13 = vor.u32 %v7206_v60, %v6127_v30  ;;  %v7199_v15 = vld [vmem:[#allocation3 + $0x11c] sm:$0xf] }
 0x5fd   :  { %v7318_v7 = vld [vmem:[#allocation3 + $0x4d4] sm:$0xf]  ;;  %v6575_v10 = vld [vmem:[#allocation3 + $0x4ec] sm:$0xf0]  ;;  %v6354_v20 = vor.u32 %v7262_v3, %v6351_v4  ;;  %v6099_v21 = vld [vmem:[#allocation3 + $0x134] sm:$0xf0] }
 0x5fe   :  { %4237 = vmatpush.bf16.msrb.mxu1 %v6686_v34  ;;  %4199 = vmatpush.bf16.msra.mxu2 %v5986_v36  ;;  %v7374_v14 = vld [vmem:[#allocation3 + $0x694] sm:$0xf]  ;;  %v6799_v16 = vld [vmem:[#allocation3 + $0x6ac] sm:$0xf0]  ;;  %v6578_v0 = vor.u32 %v7318_v7, %v6575_v10  ;;  %v7255_v22 = vld [vmem:[#allocation3 + $0x2dc] sm:$0xf]  ;;  %v6102_v29 = vor.u32 %v7199_v15, %v6099_v21 }
 0x5ff   :  { %4212 = vmatpush.bf16.msra.mxu3 %v6210_v40  ;;  %v6323_v23 = vld [vmem:[#allocation3 + $0x2f4] sm:$0xf0]  ;;  %v6802_v48 = vor.u32 %v7374_v14, %v6799_v16  ;;  %v7311_v24 = vld [vmem:[#allocation3 + $0x49c] sm:$0xf]  ;;  %v7192_v28 = vld [vmem:[#allocation3 + $0xe4] sm:$0xf] }
 0x600   :  { %4225 = vmatpush.bf16.msra.mxu0 %v6434_v2  ;;  %v6547_v25 = vld [vmem:[#allocation3 + $0x4b4] sm:$0xf0]  ;;  %v7367_v58 = vld [vmem:[#allocation3 + $0x65c] sm:$0xf]  ;;  %v6326_v27 = vor.u32 %v7255_v22, %v6323_v23  ;;  %v6071_v50 = vld [vmem:[#allocation3 + $0xfc] sm:$0xf0] }
 0x601   :  { %v6771_v54 = vld [vmem:[#allocation3 + $0x674] sm:$0xf0]  ;;  %v6550_v57 = vor.u32 %v7311_v24, %v6547_v25  ;;  %v7248_v61 = vld [vmem:[#allocation3 + $0x2a4] sm:$0xf]  ;;  %v6295_v51 = vld [vmem:[#allocation3 + $0x2bc] sm:$0xf0]  ;;  %v6074_v35 = vor.u32 %v7192_v28, %v6071_v50 }
 0x602   :  { %4238 = vmatpush.bf16.msrb.mxu1 %v6658_v42  ;;  %4200 = vmatpush.bf16.msra.mxu2 %v5958_v45  ;;  %v6774_v32 = vor.u32 %v7367_v58, %v6771_v54  ;;  %v7304_v33 = vld [vmem:[#allocation3 + $0x464] sm:$0xf]  ;;  %v6519_v34 = vld [vmem:[#allocation3 + $0x47c] sm:$0xf0]  ;;  %v6298_v38 = vor.u32 %v7248_v61, %v6295_v51  ;;  %v7185_v39 = vld [vmem:[#allocation3 + $0xac] sm:$0xf] }
 0x603   :  { %4213 = vmatpush.bf16.msra.mxu3 %v6182_v49  ;;  %v7360_v36 = vld [vmem:[#allocation3 + $0x624] sm:$0xf]  ;;  %v6743_v37 = vld [vmem:[#allocation3 + $0x63c] sm:$0xf0]  ;;  %v6043_v40 = vld [vmem:[#allocation3 + $0xc4] sm:$0xf0]  ;;  %v6522_v2 = vor.u32 %v7304_v33, %v6519_v34 }
 0x604   :  { %4226 = vmatpush.bf16.msra.mxu0 %v6406_v19  ;;  %v7241_v41 = vld [vmem:[#allocation3 + $0x26c] sm:$0xf]  ;;  %v6267_v11 = vld [vmem:[#allocation3 + $0x284] sm:$0xf0]  ;;  %v6746_v52 = vor.u32 %v7360_v36, %v6743_v37  ;;  %v6046_v5 = vor.u32 %v7185_v39, %v6043_v40  ;;  %v7178_v44 = vld [vmem:[#allocation3 + $0x74] sm:$0xf] }
 0x605   :  { %4201 = vmatmul.bf16.vlgmr.msra.gmra.mxu2 %v8017_v12  ;;  %v7297_v8 = vld [vmem:[#allocation3 + $0x42c] sm:$0xf]  ;;  %v6491_v9 = vld [vmem:[#allocation3 + $0x444] sm:$0xf0]  ;;  %v6270_v26 = vor.u32 %v7241_v41, %v6267_v11  ;;  %v6015_v45 = vld [vmem:[#allocation3 + $0x8c] sm:$0xf0] }
 0x606   :  { %4245 = vmatpush.bf16.msrb.mxu2 %v6158_v53  ;;  %4239 = vmatpush.bf16.msrb.mxu1 %v6630_v1  ;;  %v7353_v42 = vld [vmem:[#allocation3 + $0x5ec] sm:$0xf]  ;;  %v6715_v43 = vld [vmem:[#allocation3 + $0x604] sm:$0xf0]  ;;  %v6494_v46 = vor.u32 %v7297_v8, %v6491_v9  ;;  %v7234_v31 = vld [vmem:[#allocation3 + $0x234] sm:$0xf]  ;;  %v6018_v56 = vor.u32 %v7178_v44, %v6015_v45 }
 0x607   :  { %4258 = vmatpush.bf16.msrb.mxu3 %v6382_v18  ;;  %4227 = vmatmul.bf16.vlgmr.msra.gmra.mxu0 %v8027_v62  ;;  %v6239_v47 = vld [vmem:[#allocation3 + $0x24c] sm:$0xf0]  ;;  %v6718_v49 = vor.u32 %v7353_v42, %v6715_v43  ;;  %v7290_v53 = vld [vmem:[#allocation3 + $0x3f4] sm:$0xf]  ;;  %v7171_v30 = vld [vmem:[#allocation3 + $0x3c] sm:$0xf] }
 0x608   :  { %4271 = vmatpush.bf16.msrb.mxu0 %v6606_v63  ;;  %4214 = vmatmul.bf16.vlgmr.msra.gmra.mxu3 %v8022_v17  ;;  %v6463_v55 = vld [vmem:[#allocation3 + $0x40c] sm:$0xf0]  ;;  %v7346_v18 = vld [vmem:[#allocation3 + $0x5b4] sm:$0xf]  ;;  %v6242_v60 = vor.u32 %v7234_v31, %v6239_v47  ;;  %v5987_v63 = vld [vmem:[#allocation3 + $0x54] sm:$0xf0] }
 0x609   :  { %4240 = vmatmul.bf16.vlgmr.msrb.gmra.mxu1 %v8032_v59  ;;  %v6687_v19 = vld [vmem:[#allocation3 + $0x5cc] sm:$0xf0]  ;;  %v6466_v1 = vor.u32 %v7290_v53, %v6463_v55  ;;  %v7227_v3 = vld [vmem:[#allocation3 + $0x1fc] sm:$0xf]  ;;  %v6211_v4 = vld [vmem:[#allocation3 + $0x214] sm:$0xf0]  ;;  %v5990_v14 = vor.u32 %v7171_v30, %v5987_v63 }
 0x60a   :  { %4284 = vmatpush.bf16.msra.mxu1 %v6830_v6  ;;  %4246 = vmatpush.bf16.msrb.mxu2 %v6130_v13  ;;  %v6690_v6 = vor.u32 %v7346_v18, %v6687_v19  ;;  %v7283_v7 = vld [vmem:[#allocation3 + $0x3bc] sm:$0xf]  ;;  %v6435_v10 = vld [vmem:[#allocation3 + $0x3d4] sm:$0xf0]  ;;  %v7164_v13 = vld [vmem:[#allocation3 + $0x4] sm:$0xf]  ;;  %v6214_v21 = vor.u32 %v7227_v3, %v6211_v4 }
 0x60b   :  { %4259 = vmatpush.bf16.msrb.mxu3 %v6354_v20  ;;  %v5959_v16 = vld [vmem:[#allocation3 + $0x1c] sm:$0xf0]  ;;  %v7339_v20 = vld [vmem:[#allocation3 + $0x57c] sm:$0xf]  ;;  %v6659_v15 = vld [vmem:[#allocation3 + $0x594] sm:$0xf0] }
 0x60c   :  { %4272 = vmatpush.bf16.msrb.mxu0 %v6578_v0  ;;  %v7220_v0 = vld [vmem:[#allocation3 + $0x1c4] sm:$0xf]  ;;  %v6183_v22 = vld [vmem:[#allocation3 + $0x1dc] sm:$0xf0]  ;;  %v6161_v23 = vld [vmem:[#allocation3 + $0x190] sm:$0xf]  ;;  %v6662_v58 = vor.u32 %v7339_v20, %v6659_v15  ;;  %v5962_v50 = vor.u32 %v7164_v13, %v5959_v16 }
 0x60d   :  { %v7217_v24 = vld [vmem:[#allocation3 + $0x1a8] sm:$0xf0]  ;;  %v6385_v25 = vld [vmem:[#allocation3 + $0x350] sm:$0xf]  ;;  %v7276_v54 = vld [vmem:[#allocation3 + $0x384] sm:$0xf] }
 0x60e   :  { %4285 = vmatpush.bf16.msra.mxu1 %v6802_v48  ;;  %4247 = vmatpush.bf16.msrb.mxu2 %v6102_v29  ;;  %v6438_v48 = vor.u32 %v7283_v7, %v6435_v10  ;;  %v7273_v29 = vld [vmem:[#allocation3 + $0x368] sm:$0xf0]  ;;  %v6609_v28 = vld [vmem:[#allocation3 + $0x510] sm:$0xf]  ;;  %v7332_v61 = vld [vmem:[#allocation3 + $0x544] sm:$0xf]  ;;  %v6162_v33 = vor.u32 %v7217_v24, %v6161_v23 }
 0x60f   :  { %4260 = vmatpush.bf16.msrb.mxu3 %v6326_v27  ;;  %v6407_v27 = vld [vmem:[#allocation3 + $0x39c] sm:$0xf0]  ;;  %v6833_v34 = vld [vmem:[#allocation3 + $0x6d0] sm:$0xf]  ;;  %v6386_v36 = vor.u32 %v7273_v29, %v6385_v25  ;;  %v7210_v39 = vld [vmem:[#allocation3 + $0x170] sm:$0xf0] }
 0x610   :  { %4273 = vmatpush.bf16.msrb.mxu0 %v6550_v57  ;;  %v7329_v57 = vld [vmem:[#allocation3 + $0x528] sm:$0xf0]  ;;  %v6631_v51 = vld [vmem:[#allocation3 + $0x55c] sm:$0xf0]  ;;  %v6410_v37 = vor.u32 %v7276_v54, %v6407_v27  ;;  %v6357_v41 = vld [vmem:[#allocation3 + $0x318] sm:$0xf] }
 0x611   :  { %v6610_v40 = vor.u32 %v7329_v57, %v6609_v28  ;;  %v7266_v11 = vld [vmem:[#allocation3 + $0x330] sm:$0xf0]  ;;  %v6581_v8 = vld [vmem:[#allocation3 + $0x4d8] sm:$0xf]  ;;  %v6105_v44 = vld [vmem:[#allocation3 + $0x120] sm:$0xf] }
 0x612   :  { %4286 = vmatpush.bf16.msra.mxu1 %v6774_v32  ;;  %4248 = vmatpush.bf16.msrb.mxu2 %v6074_v35  ;;  %v6186_v32 = vor.u32 %v7220_v0, %v6183_v22  ;;  %v7385_v35 = vld [vmem:[#allocation3 + $0x6e8] sm:$0xf0]  ;;  %v7322_v9 = vld [vmem:[#allocation3 + $0x4f0] sm:$0xf0]  ;;  %v6805_v42 = vld [vmem:[#allocation3 + $0x698] sm:$0xf] }
 0x613   :  { %4261 = vmatpush.bf16.msrb.mxu3 %v6298_v38  ;;  %v6133_v38 = vld [vmem:[#allocation3 + $0x158] sm:$0xf]  ;;  %v7378_v43 = vld [vmem:[#allocation3 + $0x6b0] sm:$0xf0]  ;;  %v7203_v45 = vld [vmem:[#allocation3 + $0x138] sm:$0xf0] }
 0x614   :  { %4274 = vmatpush.bf16.msrb.mxu0 %v6522_v2  ;;  %v6634_v2 = vor.u32 %v7332_v61, %v6631_v51  ;;  %v6329_v31 = vld [vmem:[#allocation3 + $0x2e0] sm:$0xf]  ;;  %v7259_v47 = vld [vmem:[#allocation3 + $0x2f8] sm:$0xf0]  ;;  %v6077_v30 = vld [vmem:[#allocation3 + $0xe8] sm:$0xf] }
 0x615   :  { %v6553_v53 = vld [vmem:[#allocation3 + $0x4a0] sm:$0xf]  ;;  %v7315_v55 = vld [vmem:[#allocation3 + $0x4b8] sm:$0xf0]  ;;  %v7196_v63 = vld [vmem:[#allocation3 + $0x100] sm:$0xf0] }
 0x616   :  { %4287 = vmatpush.bf16.msra.mxu1 %v6746_v52  ;;  %4249 = vmatpush.bf16.msrb.mxu2 %v6046_v5  ;;  %v6834_v52 = vor.u32 %v7385_v35, %v6833_v34  ;;  %v6134_v5 = vor.u32 %v7210_v39, %v6133_v38  ;;  %v6777_v18 = vld [vmem:[#allocation3 + $0x660] sm:$0xf]  ;;  %v7371_v19 = vld [vmem:[#allocation3 + $0x678] sm:$0xf0]  ;;  %v6301_v3 = vld [vmem:[#allocation3 + $0x2a8] sm:$0xf]  ;;  %v6078_v13 = vor.u32 %v7196_v63, %v6077_v30 }
 0x617   :  { %4262 = vmatpush.bf16.msrb.mxu3 %v6270_v26  ;;  %v6358_v26 = vor.u32 %v7266_v11, %v6357_v41  ;;  %v7252_v4 = vld [vmem:[#allocation3 + $0x2c0] sm:$0xf0]  ;;  %v6525_v7 = vld [vmem:[#allocation3 + $0x468] sm:$0xf]  ;;  %v6049_v15 = vld [vmem:[#allocation3 + $0xb0] sm:$0xf] }
 0x618   :  { %4275 = vmatpush.bf16.msrb.mxu0 %v6494_v46  ;;  %v6582_v46 = vor.u32 %v7322_v9, %v6581_v8  ;;  %v7308_v10 = vld [vmem:[#allocation3 + $0x480] sm:$0xf0]  ;;  %v6302_v20 = vor.u32 %v7252_v4, %v6301_v3  ;;  %v6273_v22 = vld [vmem:[#allocation3 + $0x270] sm:$0xf]  ;;  %v7245_v23 = vld [vmem:[#allocation3 + $0x288] sm:$0xf0] }
 0x619   :  { %v7364_v16 = vld [vmem:[#allocation3 + $0x640] sm:$0xf0]  ;;  %v6526_v0 = vor.u32 %v7308_v10, %v6525_v7  ;;  %v6497_v24 = vld [vmem:[#allocation3 + $0x430] sm:$0xf]  ;;  %v7301_v25 = vld [vmem:[#allocation3 + $0x448] sm:$0xf0]  ;;  %v6274_v27 = vor.u32 %v7245_v23, %v6273_v22 }
 0x61a   :  { %4288 = vmatpush.bf16.msra.mxu1 %v6718_v49  ;;  %4250 = vmatpush.bf16.msrb.mxu2 %v6018_v56  ;;  %v6806_v49 = vor.u32 %v7378_v43, %v6805_v42  ;;  %v6106_v56 = vor.u32 %v7203_v45, %v6105_v44  ;;  %v7357_v54 = vld [vmem:[#allocation3 + $0x608] sm:$0xf0]  ;;  %v6021_v28 = vld [vmem:[#allocation3 + $0x78] sm:$0xf]  ;;  %v6498_v57 = vor.u32 %v7301_v25, %v6497_v24  ;;  %v7238_v51 = vld [vmem:[#allocation3 + $0x250] sm:$0xf0] }
 0x61b   :  { %4263 = vmatpush.bf16.msrb.mxu3 %v6242_v60  ;;  %v6330_v60 = vor.u32 %v7259_v47, %v6329_v31  ;;  %v6245_v61 = vld [vmem:[#allocation3 + $0x238] sm:$0xf]  ;;  %v7294_v34 = vld [vmem:[#allocation3 + $0x410] sm:$0xf0]  ;;  %v5993_v39 = vld [vmem:[#allocation3 + $0x40] sm:$0xf] }
 0x61c   :  { %4276 = vmatpush.bf16.msrb.mxu0 %v6466_v1  ;;  %v6554_v1 = vor.u32 %v7315_v55, %v6553_v53  ;;  %v6246_v38 = vor.u32 %v7238_v51, %v6245_v61  ;;  %v6217_v41 = vld [vmem:[#allocation3 + $0x200] sm:$0xf]  ;;  %v7231_v11 = vld [vmem:[#allocation3 + $0x218] sm:$0xf0]  ;;  %v7168_v43 = vld [vmem:[#allocation3 + $0x20] sm:$0xf0] }
 0x61d   :  { %v6441_v8 = vld [vmem:[#allocation3 + $0x3c0] sm:$0xf]  ;;  %v7287_v9 = vld [vmem:[#allocation3 + $0x3d8] sm:$0xf0]  ;;  %v6218_v45 = vor.u32 %v7231_v11, %v6217_v41  ;;  %v7224_v31 = vld [vmem:[#allocation3 + $0x1e0] sm:$0xf0] }
 0x61e   :  { %4289 = vmatpush.bf16.msra.mxu1 %v6690_v6  ;;  %4251 = vmatpush.bf16.msrb.mxu2 %v5990_v14  ;;  %v6778_v6 = vor.u32 %v7371_v19, %v6777_v18  ;;  %v6749_v14 = vld [vmem:[#allocation3 + $0x628] sm:$0xf]  ;;  %v7343_v44 = vld [vmem:[#allocation3 + $0x598] sm:$0xf0]  ;;  %v7214_v47 = vld [vmem:[#allocation3 + $0x194] sm:$0xf] }
 0x61f   :  { %4264 = vmatpush.bf16.msrb.mxu3 %v6214_v21  ;;  %v7189_v21 = vld [vmem:[#allocation3 + $0xc8] sm:$0xf0]  ;;  %v6163_v53 = vld [vmem:[#allocation3 + $0x1ac] sm:$0xf0]  ;;  %v7270_v55 = vld [vmem:[#allocation3 + $0x354] sm:$0xf] }
 0x620   :  { %4277 = vmatpush.bf16.msrb.mxu0 %v6438_v48  ;;  %v6750_v48 = vor.u32 %v7364_v16, %v6749_v14  ;;  %v6050_v29 = vor.u32 %v7189_v21, %v6049_v15  ;;  %v6413_v19 = vld [vmem:[#allocation3 + $0x388] sm:$0xf]  ;;  %v7326_v30 = vld [vmem:[#allocation3 + $0x514] sm:$0xf]  ;;  %v7336_v4 = vld [vmem:[#allocation3 + $0x560] sm:$0xf0]  ;;  %v6166_v7 = vor.u32 %v7214_v47, %v6163_v53 }
 0x621   :  { %v6637_v3 = vld [vmem:[#allocation3 + $0x548] sm:$0xf]  ;;  %v7382_v10 = vld [vmem:[#allocation3 + $0x6d4] sm:$0xf]  ;;  %v6135_v15 = vld [vmem:[#allocation3 + $0x174] sm:$0xf0] }
 0x622   :  { %4290 = vmatpush.bf16.msra.mxu1 %v6662_v58  ;;  %4252 = vmatpush.bf16.msrb.mxu2 %v5962_v50  ;;  %v6721_v58 = vld [vmem:[#allocation3 + $0x5f0] sm:$0xf]  ;;  %v7182_v50 = vld [vmem:[#allocation3 + $0x90] sm:$0xf0]  ;;  %v7263_v22 = vld [vmem:[#allocation3 + $0x31c] sm:$0xf] }
 0x623   :  { %4265 = vmatpush.bf16.msrb.mxu3 %v6186_v32  ;;  %v6722_v32 = vor.u32 %v7357_v54, %v6721_v58  ;;  %v6022_v35 = vor.u32 %v7182_v50, %v6021_v28  ;;  %v6359_v23 = vld [vmem:[#allocation3 + $0x334] sm:$0xf0]  ;;  %v7319_v24 = vld [vmem:[#allocation3 + $0x4dc] sm:$0xf]  ;;  %v7200_v28 = vld [vmem:[#allocation3 + $0x124] sm:$0xf] }
 0x624   :  { %4278 = vmatpush.bf16.msrb.mxu0 %v6410_v37  ;;  %v7350_v37 = vld [vmem:[#allocation3 + $0x5d0] sm:$0xf0]  ;;  %v6583_v25 = vld [vmem:[#allocation3 + $0x4f4] sm:$0xf0]  ;;  %v7375_v58 = vld [vmem:[#allocation3 + $0x69c] sm:$0xf] }
 0x625   :  { %4253 = vmatmul.bf16.vlgmr.msrb.gmra.mxu2 %v8017_v12  ;;  %v6807_v54 = vld [vmem:[#allocation3 + $0x6b4] sm:$0xf0]  ;;  %v6107_v50 = vld [vmem:[#allocation3 + $0x13c] sm:$0xf0]  ;;  %v7256_v61 = vld [vmem:[#allocation3 + $0x2e4] sm:$0xf] }
 0x626   :  { %4297 = vmatpush.bf16.msra.mxu2 %v6162_v33  ;;  %4291 = vmatpush.bf16.msra.mxu1 %v6634_v2  ;;  %v6469_v33 = vld [vmem:[#allocation3 + $0x3f8] sm:$0xf]  ;;  %v6331_v51 = vld [vmem:[#allocation3 + $0x2fc] sm:$0xf0]  ;;  %v7249_v41 = vld [vmem:[#allocation3 + $0x2ac] sm:$0xf] }
 0x627   :  { %4310 = vmatpush.bf16.msra.mxu3 %v6386_v36  ;;  %4279 = vmatmul.bf16.vlgmr.msrb.gmra.mxu0 %v8027_v62  ;;  %v6693_v36 = vld [vmem:[#allocation3 + $0x5b8] sm:$0xf]  ;;  %v6470_v2 = vor.u32 %v7294_v34, %v6469_v33  ;;  %v7312_v33 = vld [vmem:[#allocation3 + $0x4a4] sm:$0xf]  ;;  %v6555_v34 = vld [vmem:[#allocation3 + $0x4bc] sm:$0xf0] }
 0x628   :  { %4323 = vmatpush.bf16.msra.mxu0 %v6610_v40  ;;  %4266 = vmatmul.bf16.vlgmr.msrb.gmra.mxu3 %v8022_v17  ;;  %v7175_v40 = vld [vmem:[#allocation3 + $0x58] sm:$0xf0]  ;;  %v6303_v11 = vld [vmem:[#allocation3 + $0x2c4] sm:$0xf0]  ;;  %v6275_v47 = vld [vmem:[#allocation3 + $0x28c] sm:$0xf0] }
 0x629   :  { %4292 = vmatmul.bf16.vlgmr.msra.gmra.mxu1 %v8032_v59  ;;  %v5994_v42 = vor.u32 %v7175_v40, %v5993_v39  ;;  %v7193_v39 = vld [vmem:[#allocation3 + $0xec] sm:$0xf]  ;;  %v6079_v40 = vld [vmem:[#allocation3 + $0x104] sm:$0xf0]  ;;  %v7298_v53 = vld [vmem:[#allocation3 + $0x434] sm:$0xf] }
 0x62a   :  { %4336 = vmatpush.bf16.msrb.mxu1 %v6834_v52  ;;  %4298 = vmatpush.bf16.msra.mxu2 %v6134_v5  ;;  %v6694_v52 = vor.u32 %v7350_v37, %v6693_v36  ;;  %v5965_v5 = vld [vmem:[#allocation3 + $0x8] sm:$0xf]  ;;  %v7368_v36 = vld [vmem:[#allocation3 + $0x664] sm:$0xf]  ;;  %v6779_v37 = vld [vmem:[#allocation3 + $0x67c] sm:$0xf0] }
 0x62b   :  { %4311 = vmatpush.bf16.msra.mxu3 %v6358_v26  ;;  %v6665_v26 = vld [vmem:[#allocation3 + $0x580] sm:$0xf]  ;;  %v5966_v63 = vor.u32 %v7168_v43, %v5965_v5  ;;  %v6082_v5 = vor.u32 %v7193_v39, %v6079_v40  ;;  %v6751_v43 = vld [vmem:[#allocation3 + $0x644] sm:$0xf0]  ;;  %v6617_v39 = vld [vmem:[#allocation3 + $0x518] sm:$0xf] }
 0x62c   :  { %4324 = vmatpush.bf16.msra.mxu0 %v6582_v46  ;;  %v6189_v46 = vld [vmem:[#allocation3 + $0x1c8] sm:$0xf]  ;;  %v6666_v18 = vor.u32 %v7343_v44, %v6665_v26  ;;  %v6306_v26 = vor.u32 %v7249_v41, %v6303_v11  ;;  %v7186_v44 = vld [vmem:[#allocation3 + $0xb4] sm:$0xf]  ;;  %v7333_v41 = vld [vmem:[#allocation3 + $0x54c] sm:$0xf] }
 0x62d   :  { %v6639_v11 = vld [vmem:[#allocation3 + $0x564] sm:$0xf0]  ;;  %s4704_s22 = sshll.u32 %s8112_s19, 4  ;;  %s4705_s22 = int_to_ptr.hbm [resolvable:$true] %s4704_s22 }
 0x62e   :  { %4337 = vmatpush.bf16.msrb.mxu1 %v6806_v49  ;;  %4299 = vmatpush.bf16.msra.mxu2 %v6106_v56  ;;  %v6442_v49 = vor.u32 %v7287_v9, %v6441_v8  ;;  %v6387_v56 = vld [vmem:[#allocation3 + $0x36c] sm:$0xf0]  ;;  %v7305_v8 = vld [vmem:[#allocation3 + $0x46c] sm:$0xf]  ;;  %v6527_v9 = vld [vmem:[#allocation3 + $0x484] sm:$0xf0] }
 0x62f   :  { %4312 = vmatpush.bf16.msra.mxu3 %v6330_v60  ;;  %v7280_v60 = vld [vmem:[#allocation3 + $0x3a0] sm:$0xf0]  ;;  %v6390_v14 = vor.u32 %v7270_v55, %v6387_v56  ;;  %v6499_v55 = vld [vmem:[#allocation3 + $0x44c] sm:$0xf0] }
 0x630   :  { %4325 = vmatpush.bf16.msra.mxu0 %v6554_v1  ;;  %v6611_v1 = vld [vmem:[#allocation3 + $0x52c] sm:$0xf0]  ;;  %v6414_v16 = vor.u32 %v7280_v60, %v6413_v19 }
 0x631   :  { %v6614_v21 = vor.u32 %v7326_v30, %v6611_v1  ;;  %v6723_v19 = vld [vmem:[#allocation3 + $0x60c] sm:$0xf0]  ;;  %v7179_v30 = vld [vmem:[#allocation3 + $0x7c] sm:$0xf]  ;;  %v6502_v1 = vor.u32 %v7298_v53, %v6499_v55  ;;  %v6589_v53 = vld [vmem:[#allocation3 + $0x4e0] sm:$0xf] }
 0x632   :  { %4338 = vmatpush.bf16.msrb.mxu1 %v6778_v6  ;;  %4300 = vmatpush.bf16.msra.mxu2 %v6078_v13  ;;  %v6190_v6 = vor.u32 %v7224_v31, %v6189_v46  ;;  %v6835_v13 = vld [vmem:[#allocation3 + $0x6ec] sm:$0xf0]  ;;  %v6530_v46 = vor.u32 %v7305_v8, %v6527_v9  ;;  %v7242_v31 = vld [vmem:[#allocation3 + $0x274] sm:$0xf]  ;;  %v6841_v9 = vld [vmem:[#allocation3 + $0x6d8] sm:$0xf] }
 0x633   :  { %4313 = vmatpush.bf16.msra.mxu3 %v6302_v20  ;;  %v7207_v20 = vld [vmem:[#allocation3 + $0x15c] sm:$0xf]  ;;  %v6278_v60 = vor.u32 %v7242_v31, %v6275_v47  ;;  %v6365_v31 = vld [vmem:[#allocation3 + $0x320] sm:$0xf] }
 0x634   :  { %4326 = vmatpush.bf16.msra.mxu0 %v6526_v0  ;;  %v6638_v0 = vor.u32 %v7336_v4, %v6637_v3  ;;  %v7235_v3 = vld [vmem:[#allocation3 + $0x23c] sm:$0xf]  ;;  %v6247_v4 = vld [vmem:[#allocation3 + $0x254] sm:$0xf0] }
 0x635   :  { %v7267_v47 = vld [vmem:[#allocation3 + $0x338] sm:$0xf0] }
 0x636   :  { %4339 = vmatpush.bf16.msrb.mxu1 %v6750_v48  ;;  %4301 = vmatpush.bf16.msra.mxu2 %v6050_v29  ;;  %v6838_v48 = vor.u32 %v7382_v10, %v6835_v13  ;;  %v6138_v29 = vor.u32 %v7207_v20, %v6135_v15  ;;  %v6471_v10 = vld [vmem:[#allocation3 + $0x414] sm:$0xf0]  ;;  %v6250_v20 = vor.u32 %v7235_v3, %v6247_v4  ;;  %v7172_v15 = vld [vmem:[#allocation3 + $0x44] sm:$0xf]  ;;  %v7323_v55 = vld [vmem:[#allocation3 + $0x4f8] sm:$0xf0] }
 0x637   :  { %4314 = vmatpush.bf16.msra.mxu3 %v6274_v27  ;;  %v6362_v27 = vor.u32 %v7263_v22, %v6359_v23  ;;  %v7228_v22 = vld [vmem:[#allocation3 + $0x204] sm:$0xf]  ;;  %v6219_v23 = vld [vmem:[#allocation3 + $0x21c] sm:$0xf0]  ;;  %v6337_v3 = vld [vmem:[#allocation3 + $0x2e8] sm:$0xf] }
 0x638   :  { %4327 = vmatpush.bf16.msra.mxu0 %v6498_v57  ;;  %v6586_v57 = vor.u32 %v7319_v24, %v6583_v25  ;;  %v7284_v24 = vld [vmem:[#allocation3 + $0x3c4] sm:$0xf]  ;;  %v6443_v25 = vld [vmem:[#allocation3 + $0x3dc] sm:$0xf0] }
 0x639   :  { %v7260_v4 = vld [vmem:[#allocation3 + $0x300] sm:$0xf0] }
 0x63a   :  { %4340 = vmatpush.bf16.msrb.mxu1 %v6722_v32  ;;  %4302 = vmatpush.bf16.msra.mxu2 %v6022_v35  ;;  %v6810_v32 = vor.u32 %v7375_v58, %v6807_v54  ;;  %v6110_v35 = vor.u32 %v7200_v28, %v6107_v50  ;;  %v5967_v54 = vld [vmem:[#allocation3 + $0x24] sm:$0xf0]  ;;  %v6667_v28 = vld [vmem:[#allocation3 + $0x59c] sm:$0xf0]  ;;  %v6222_v50 = vor.u32 %v7228_v22, %v6219_v23  ;;  %v6309_v22 = vld [vmem:[#allocation3 + $0x2b0] sm:$0xf] }
 0x63b   :  { %4315 = vmatpush.bf16.msra.mxu3 %v6246_v38  ;;  %v6334_v38 = vor.u32 %v7256_v61, %v6331_v51  ;;  %v6191_v61 = vld [vmem:[#allocation3 + $0x1e4] sm:$0xf0]  ;;  %v6169_v51 = vld [vmem:[#allocation3 + $0x198] sm:$0xf]  ;;  %v7253_v23 = vld [vmem:[#allocation3 + $0x2c8] sm:$0xf0] }
 0x63c   :  { %4328 = vmatpush.bf16.msra.mxu0 %v6470_v2  ;;  %v6558_v2 = vor.u32 %v7312_v33, %v6555_v34  ;;  %v7218_v33 = vld [vmem:[#allocation3 + $0x1b0] sm:$0xf0]  ;;  %v6393_v34 = vld [vmem:[#allocation3 + $0x358] sm:$0xf] }
 0x63d   :  { %v6170_v8 = vor.u32 %v7218_v33, %v6169_v51  ;;  %v7246_v51 = vld [vmem:[#allocation3 + $0x290] sm:$0xf0]  ;;  %v6505_v33 = vld [vmem:[#allocation3 + $0x438] sm:$0xf] }
 0x63e   :  { %4341 = vmatpush.bf16.msrb.mxu1 %v6694_v52  ;;  %4303 = vmatpush.bf16.msra.mxu2 %v5994_v42  ;;  %v6782_v52 = vor.u32 %v7368_v36, %v6779_v37  ;;  %v7361_v42 = vld [vmem:[#allocation3 + $0x62c] sm:$0xf] }
 0x63f   :  { %4316 = vmatpush.bf16.msra.mxu3 %v6218_v45  ;;  %v6051_v45 = vld [vmem:[#allocation3 + $0xcc] sm:$0xf0]  ;;  %v7277_v37 = vld [vmem:[#allocation3 + $0x38c] sm:$0xf] }
 0x640   :  { %4329 = vmatpush.bf16.msra.mxu0 %v6442_v49  ;;  %v6754_v49 = vor.u32 %v7361_v42, %v6751_v43  ;;  %v6054_v56 = vor.u32 %v7186_v44, %v6051_v45  ;;  %v7211_v44 = vld [vmem:[#allocation3 + $0x178] sm:$0xf0] }
 0x642   :  { %4342 = vmatpush.bf16.msrb.mxu1 %v6666_v18  ;;  %4304 = vmatpush.bf16.msra.mxu2 %v5966_v63  ;;  %v7354_v18 = vld [vmem:[#allocation3 + $0x5f4] sm:$0xf]  ;;  %v6023_v63 = vld [vmem:[#allocation3 + $0x94] sm:$0xf0] }
 0x643   :  { %4317 = vmatpush.bf16.msra.mxu3 %v6190_v6  ;;  %v6726_v6 = vor.u32 %v7354_v18, %v6723_v19  ;;  %v6026_v13 = vor.u32 %v7179_v30, %v6023_v63  ;;  %v6813_v18 = vld [vmem:[#allocation3 + $0x6a0] sm:$0xf]  ;;  %v7379_v19 = vld [vmem:[#allocation3 + $0x6b8] sm:$0xf0]  ;;  %v6113_v30 = vld [vmem:[#allocation3 + $0x128] sm:$0xf] }
 0x644   :  { %4330 = vmatpush.bf16.msra.mxu0 %v6414_v16  ;;  %v6695_v16 = vld [vmem:[#allocation3 + $0x5d4] sm:$0xf0]  ;;  %v7204_v63 = vld [vmem:[#allocation3 + $0x140] sm:$0xf0] }
 0x645   :  { %4305 = vmatmul.bf16.vlgmr.msra.gmra.mxu2 %v8017_v12 }
 0x646   :  { %4349 = vmatpush.bf16.msrb.mxu2 %v6166_v7  ;;  %4343 = vmatpush.bf16.msrb.mxu1 %v6638_v0  ;;  %v7291_v7 = vld [vmem:[#allocation3 + $0x3fc] sm:$0xf] }
 0x647   :  { %4362 = vmatpush.bf16.msrb.mxu3 %v6390_v14  ;;  %4331 = vmatmul.bf16.vlgmr.msra.gmra.mxu0 %v8027_v62  ;;  %v7347_v14 = vld [vmem:[#allocation3 + $0x5bc] sm:$0xf]  ;;  %v6474_v0 = vor.u32 %v7291_v7, %v6471_v10  ;;  %v6561_v7 = vld [vmem:[#allocation3 + $0x4a8] sm:$0xf]  ;;  %v7316_v10 = vld [vmem:[#allocation3 + $0x4c0] sm:$0xf0] }
 0x648   :  { %4375 = vmatpush.bf16.msrb.mxu0 %v6614_v21  ;;  %4318 = vmatmul.bf16.vlgmr.msra.gmra.mxu3 %v8022_v17  ;;  %v5995_v21 = vld [vmem:[#allocation3 + $0x5c] sm:$0xf0] }
 0x649   :  { %4344 = vmatmul.bf16.vlgmr.msrb.gmra.mxu1 %v8032_v59  ;;  %v5998_v58 = vor.u32 %v7172_v15, %v5995_v21  ;;  %v6085_v15 = vld [vmem:[#allocation3 + $0xf0] sm:$0xf]  ;;  %v7197_v21 = vld [vmem:[#allocation3 + $0x108] sm:$0xf0] }
 0x64a   :  { %4388 = vmatpush.bf16.msra.mxu1 %v6838_v48  ;;  %4350 = vmatpush.bf16.msrb.mxu2 %v6138_v29  ;;  %v6698_v48 = vor.u32 %v7347_v14, %v6695_v16  ;;  %v7165_v29 = vld [vmem:[#allocation3 + $0xc] sm:$0xf]  ;;  %v6785_v14 = vld [vmem:[#allocation3 + $0x668] sm:$0xf]  ;;  %v7372_v16 = vld [vmem:[#allocation3 + $0x680] sm:$0xf0] }
 0x64b   :  { %4363 = vmatpush.bf16.msrb.mxu3 %v6362_v27  ;;  %v7340_v27 = vld [vmem:[#allocation3 + $0x584] sm:$0xf]  ;;  %v5970_v40 = vor.u32 %v7165_v29, %v5967_v54  ;;  %v6086_v29 = vor.u32 %v7197_v21, %v6085_v15  ;;  %v7365_v54 = vld [vmem:[#allocation3 + $0x648] sm:$0xf0]  ;;  %v7327_v15 = vld [vmem:[#allocation3 + $0x51c] sm:$0xf] }
 0x64c   :  { %4376 = vmatpush.bf16.msrb.mxu0 %v6586_v57  ;;  %v7221_v57 = vld [vmem:[#allocation3 + $0x1cc] sm:$0xf]  ;;  %v6670_v36 = vor.u32 %v7340_v27, %v6667_v28  ;;  %v6310_v27 = vor.u32 %v7253_v23, %v6309_v22  ;;  %v6057_v28 = vld [vmem:[#allocation3 + $0xb8] sm:$0xf]  ;;  %v6645_v22 = vld [vmem:[#allocation3 + $0x550] sm:$0xf] }
 0x64d   :  { %v7337_v23 = vld [vmem:[#allocation3 + $0x568] sm:$0xf0] }
 0x64e   :  { %4389 = vmatpush.bf16.msra.mxu1 %v6810_v32  ;;  %4351 = vmatpush.bf16.msrb.mxu2 %v6110_v35  ;;  %v6446_v32 = vor.u32 %v7284_v24, %v6443_v25  ;;  %v7274_v35 = vld [vmem:[#allocation3 + $0x370] sm:$0xf0]  ;;  %v6533_v24 = vld [vmem:[#allocation3 + $0x470] sm:$0xf]  ;;  %v7309_v25 = vld [vmem:[#allocation3 + $0x488] sm:$0xf0] }
 0x64f   :  { %4364 = vmatpush.bf16.msrb.mxu3 %v6334_v38  ;;  %v6415_v38 = vld [vmem:[#allocation3 + $0x3a4] sm:$0xf0]  ;;  %v6394_v42 = vor.u32 %v7274_v35, %v6393_v34  ;;  %v7302_v34 = vld [vmem:[#allocation3 + $0x450] sm:$0xf0] }
 0x650   :  { %4377 = vmatpush.bf16.msrb.mxu0 %v6558_v2  ;;  %v7330_v2 = vld [vmem:[#allocation3 + $0x530] sm:$0xf0]  ;;  %v6418_v43 = vor.u32 %v7277_v37, %v6415_v38 }
 0x651   :  { %v6618_v45 = vor.u32 %v7330_v2, %v6617_v39  ;;  %v7358_v37 = vld [vmem:[#allocation3 + $0x610] sm:$0xf0]  ;;  %v6029_v39 = vld [vmem:[#allocation3 + $0x80] sm:$0xf]  ;;  %v6506_v2 = vor.u32 %v7302_v34, %v6505_v33  ;;  %v7320_v33 = vld [vmem:[#allocation3 + $0x4e4] sm:$0xf] }
 0x652   :  { %4390 = vmatpush.bf16.msra.mxu1 %v6782_v52  ;;  %4352 = vmatpush.bf16.msrb.mxu2 %v6082_v5  ;;  %v6194_v52 = vor.u32 %v7221_v57, %v6191_v61  ;;  %v7386_v5 = vld [vmem:[#allocation3 + $0x6f0] sm:$0xf0]  ;;  %v6534_v57 = vor.u32 %v7309_v25, %v6533_v24  ;;  %v6281_v61 = vld [vmem:[#allocation3 + $0x278] sm:$0xf]  ;;  %v7383_v25 = vld [vmem:[#allocation3 + $0x6dc] sm:$0xf] }
 0x653   :  { %4365 = vmatpush.bf16.msrb.mxu3 %v6306_v26  ;;  %v6141_v26 = vld [vmem:[#allocation3 + $0x160] sm:$0xf]  ;;  %v6282_v38 = vor.u32 %v7246_v51, %v6281_v61  ;;  %v7264_v61 = vld [vmem:[#allocation3 + $0x324] sm:$0xf] }
 0x654   :  { %4378 = vmatpush.bf16.msrb.mxu0 %v6530_v46  ;;  %v6642_v46 = vor.u32 %v7333_v41, %v6639_v11  ;;  %v6253_v41 = vld [vmem:[#allocation3 + $0x240] sm:$0xf]  ;;  %v7239_v11 = vld [vmem:[#allocation3 + $0x258] sm:$0xf0] }
 0x655   :  { %v6367_v51 = vld [vmem:[#allocation3 + $0x33c] sm:$0xf0] }
 0x656   :  { %4391 = vmatpush.bf16.msra.mxu1 %v6754_v49  ;;  %4353 = vmatpush.bf16.msrb.mxu2 %v6054_v56  ;;  %v6842_v49 = vor.u32 %v7386_v5, %v6841_v9  ;;  %v6142_v56 = vor.u32 %v7211_v44, %v6141_v26  ;;  %v7295_v9 = vld [vmem:[#allocation3 + $0x418] sm:$0xf0]  ;;  %v6254_v26 = vor.u32 %v7239_v11, %v6253_v41  ;;  %v6001_v44 = vld [vmem:[#allocation3 + $0x48] sm:$0xf]  ;;  %v6591_v34 = vld [vmem:[#allocation3 + $0x4fc] sm:$0xf0] }
 0x657   :  { %4366 = vmatpush.bf16.msrb.mxu3 %v6278_v60  ;;  %v6366_v60 = vor.u32 %v7267_v47, %v6365_v31  ;;  %v6225_v31 = vld [vmem:[#allocation3 + $0x208] sm:$0xf]  ;;  %v7232_v47 = vld [vmem:[#allocation3 + $0x220] sm:$0xf0]  ;;  %v7257_v41 = vld [vmem:[#allocation3 + $0x2ec] sm:$0xf] }
 0x658   :  { %4379 = vmatpush.bf16.msrb.mxu0 %v6502_v1  ;;  %v6590_v1 = vor.u32 %v7323_v55, %v6589_v53  ;;  %v6449_v53 = vld [vmem:[#allocation3 + $0x3c8] sm:$0xf]  ;;  %v7288_v55 = vld [vmem:[#allocation3 + $0x3e0] sm:$0xf0] }
 0x659   :  { %v6339_v11 = vld [vmem:[#allocation3 + $0x304] sm:$0xf0] }
 0x65a   :  { %4392 = vmatpush.bf16.msra.mxu1 %v6726_v6  ;;  %4354 = vmatpush.bf16.msrb.mxu2 %v6026_v13  ;;  %v6814_v6 = vor.u32 %v7379_v19, %v6813_v18  ;;  %v6114_v13 = vor.u32 %v7204_v63, %v6113_v30  ;;  %v7169_v19 = vld [vmem:[#allocation3 + $0x28] sm:$0xf0]  ;;  %v7344_v30 = vld [vmem:[#allocation3 + $0x5a0] sm:$0xf0]  ;;  %v6226_v63 = vor.u32 %v7232_v47, %v6225_v31  ;;  %v7250_v31 = vld [vmem:[#allocation3 + $0x2b4] sm:$0xf] }
 0x65b   :  { %4367 = vmatpush.bf16.msrb.mxu3 %v6250_v20  ;;  %v6338_v20 = vor.u32 %v7260_v4, %v6337_v3  ;;  %v7225_v3 = vld [vmem:[#allocation3 + $0x1e8] sm:$0xf0]  ;;  %v7215_v4 = vld [vmem:[#allocation3 + $0x19c] sm:$0xf]  ;;  %v6311_v47 = vld [vmem:[#allocation3 + $0x2cc] sm:$0xf0] }
 0x65c   :  { %4380 = vmatpush.bf16.msrb.mxu0 %v6474_v0  ;;  %v6562_v0 = vor.u32 %v7316_v10, %v6561_v7  ;;  %v6171_v7 = vld [vmem:[#allocation3 + $0x1b4] sm:$0xf0]  ;;  %v7271_v10 = vld [vmem:[#allocation3 + $0x35c] sm:$0xf] }
 0x65d   :  { %v6174_v24 = vor.u32 %v7215_v4, %v6171_v7  ;;  %v6283_v4 = vld [vmem:[#allocation3 + $0x294] sm:$0xf0]  ;;  %v7299_v7 = vld [vmem:[#allocation3 + $0x43c] sm:$0xf] }
 0x65e   :  { %4393 = vmatpush.bf16.msra.mxu1 %v6698_v48  ;;  %4355 = vmatpush.bf16.msrb.mxu2 %v5998_v58  ;;  %v6786_v48 = vor.u32 %v7372_v16, %v6785_v14  ;;  %v6757_v58 = vld [vmem:[#allocation3 + $0x630] sm:$0xf] }
 0x65f   :  { %4368 = vmatpush.bf16.msrb.mxu3 %v6222_v50  ;;  %v7190_v50 = vld [vmem:[#allocation3 + $0xd0] sm:$0xf0]  ;;  %v6421_v16 = vld [vmem:[#allocation3 + $0x390] sm:$0xf] }
 0x660   :  { %4381 = vmatpush.bf16.msrb.mxu0 %v6446_v32  ;;  %v6758_v32 = vor.u32 %v7365_v54, %v6757_v58  ;;  %v6058_v35 = vor.u32 %v7190_v50, %v6057_v28  ;;  %v6143_v28 = vld [vmem:[#allocation3 + $0x17c] sm:$0xf0] }
 0x662   :  { %4394 = vmatpush.bf16.msra.mxu1 %v6670_v36  ;;  %4356 = vmatpush.bf16.msrb.mxu2 %v5970_v40  ;;  %v6729_v36 = vld [vmem:[#allocation3 + $0x5f8] sm:$0xf]  ;;  %v7183_v40 = vld [vmem:[#allocation3 + $0x98] sm:$0xf0] }
 0x663   :  { %4369 = vmatpush.bf16.msrb.mxu3 %v6194_v52  ;;  %v6730_v52 = vor.u32 %v7358_v37, %v6729_v36  ;;  %v6030_v5 = vor.u32 %v7183_v40, %v6029_v39  ;;  %v7376_v36 = vld [vmem:[#allocation3 + $0x6a4] sm:$0xf]  ;;  %v6815_v37 = vld [vmem:[#allocation3 + $0x6bc] sm:$0xf0]  ;;  %v7201_v39 = vld [vmem:[#allocation3 + $0x12c] sm:$0xf] }
 0x664   :  { %4382 = vmatpush.bf16.msrb.mxu0 %v6418_v43  ;;  %v7351_v43 = vld [vmem:[#allocation3 + $0x5d8] sm:$0xf0]  ;;  %v6115_v40 = vld [vmem:[#allocation3 + $0x144] sm:$0xf0] }
 0x665   :  { %4357 = vmatmul.bf16.vlgmr.msrb.gmra.mxu2 %v8017_v12 }
 0x666   :  { %4401 = vmatpush.bf16.msra.mxu2 %v6170_v8  ;;  %4395 = vmatpush.bf16.msra.mxu1 %v6642_v46  ;;  %v6477_v8 = vld [vmem:[#allocation3 + $0x400] sm:$0xf] }
 0x667   :  { %4414 = vmatpush.bf16.msra.mxu3 %v6394_v42  ;;  %4383 = vmatmul.bf16.vlgmr.msrb.gmra.mxu0 %v8027_v62  ;;  %v6701_v42 = vld [vmem:[#allocation3 + $0x5c0] sm:$0xf]  ;;  %v6478_v46 = vor.u32 %v7295_v9, %v6477_v8  ;;  %v7313_v8 = vld [vmem:[#allocation3 + $0x4ac] sm:$0xf]  ;;  %v6563_v9 = vld [vmem:[#allocation3 + $0x4c4] sm:$0xf0] }
 0x668   :  { %4427 = vmatpush.bf16.msra.mxu0 %v6618_v45  ;;  %4370 = vmatmul.bf16.vlgmr.msrb.gmra.mxu3 %v8022_v17  ;;  %v7176_v45 = vld [vmem:[#allocation3 + $0x60] sm:$0xf0] }
 0x669   :  { %4396 = vmatmul.bf16.vlgmr.msra.gmra.mxu1 %v8032_v59  ;;  %v6002_v18 = vor.u32 %v7176_v45, %v6001_v44  ;;  %v7194_v44 = vld [vmem:[#allocation3 + $0xf4] sm:$0xf]  ;;  %v6087_v45 = vld [vmem:[#allocation3 + $0x10c] sm:$0xf0] }
 0x66a   :  { %4440 = vmatpush.bf16.msrb.mxu1 %v6842_v49  ;;  %4402 = vmatpush.bf16.msra.mxu2 %v6142_v56  ;;  %v6702_v49 = vor.u32 %v7351_v43, %v6701_v42  ;;  %v5973_v56 = vld [vmem:[#allocation3 + $0x10] sm:$0xf]  ;;  %v7369_v42 = vld [vmem:[#allocation3 + $0x66c] sm:$0xf]  ;;  %v6787_v43 = vld [vmem:[#allocation3 + $0x684] sm:$0xf0] }
 0x66b   :  { %4415 = vmatpush.bf16.msra.mxu3 %v6366_v60  ;;  %v6673_v60 = vld [vmem:[#allocation3 + $0x588] sm:$0xf]  ;;  %v5974_v21 = vor.u32 %v7169_v19, %v5973_v56  ;;  %v6090_v56 = vor.u32 %v7194_v44, %v6087_v45  ;;  %v6759_v19 = vld [vmem:[#allocation3 + $0x64c] sm:$0xf0]  ;;  %v6177_v45 = vld [vmem:[#allocation3 + $0x1a0] sm:$0xf] }
 0x66c   :  { %4428 = vmatpush.bf16.msra.mxu0 %v6590_v1  ;;  %v6197_v1 = vld [vmem:[#allocation3 + $0x1d0] sm:$0xf]  ;;  %v6674_v14 = vor.u32 %v7344_v30, %v6673_v60  ;;  %v6314_v60 = vor.u32 %v7250_v31, %v6311_v47  ;;  %v7187_v30 = vld [vmem:[#allocation3 + $0xbc] sm:$0xf]  ;;  %v6401_v31 = vld [vmem:[#allocation3 + $0x360] sm:$0xf] }
 0x66e   :  { %4441 = vmatpush.bf16.msrb.mxu1 %v6814_v6  ;;  %4403 = vmatpush.bf16.msra.mxu2 %v6114_v13  ;;  %v6450_v6 = vor.u32 %v7288_v55, %v6449_v53  ;;  %v6395_v13 = vld [vmem:[#allocation3 + $0x374] sm:$0xf0]  ;;  %v7306_v53 = vld [vmem:[#allocation3 + $0x474] sm:$0xf]  ;;  %v6535_v55 = vld [vmem:[#allocation3 + $0x48c] sm:$0xf0] }
 0x66f   :  { %4416 = vmatpush.bf16.msra.mxu3 %v6338_v20  ;;  %v7281_v20 = vld [vmem:[#allocation3 + $0x3a8] sm:$0xf0]  ;;  %v6398_v58 = vor.u32 %v7271_v10, %v6395_v13  ;;  %v6507_v10 = vld [vmem:[#allocation3 + $0x454] sm:$0xf0] }
 0x670   :  { %4429 = vmatpush.bf16.msra.mxu0 %v6562_v0  ;;  %v6619_v0 = vld [vmem:[#allocation3 + $0x534] sm:$0xf0]  ;;  %v6422_v54 = vor.u32 %v7281_v20, %v6421_v16  ;;  %v8057_v20 = vld [vmem:[%s8111_s18] sm:$0xff]  ;;  %s7516_s18 = smov [#allocation8]  }
 0x671   :  { %v6622_v50 = vor.u32 %v7327_v15, %v6619_v0  ;;  %v6731_v16 = vld [vmem:[#allocation3 + $0x614] sm:$0xf0]  ;;  %v6031_v0 = vld [vmem:[#allocation3 + $0x9c] sm:$0xf0]  ;;  %s4702_s0 = sshll.u32 %s7516_s18, 4  ;;  %s4703_s0 = int_to_ptr.vmem [resolvable:$true] %s4702_s0 }
 0x672   :  { %4442 = vmatpush.bf16.msrb.mxu1 %v6786_v48  ;;  %4404 = vmatpush.bf16.msra.mxu2 %v6086_v29  ;;  %v6198_v48 = vor.u32 %v7225_v3, %v6197_v1  ;;  %v6843_v29 = vld [vmem:[#allocation3 + $0x6f4] sm:$0xf0]  ;;  %v6538_v1 = vor.u32 %v7306_v53, %v6535_v55  ;;  %v7243_v3 = vld [vmem:[#allocation3 + $0x27c] sm:$0xf]  ;;  %v7278_v55 = vld [vmem:[#allocation3 + $0x394] sm:$0xf] }
 0x673   :  { %4417 = vmatpush.bf16.msra.mxu3 %v6310_v27  ;;  %v7208_v27 = vld [vmem:[#allocation3 + $0x164] sm:$0xf]  ;;  %v6286_v15 = vor.u32 %v7243_v3, %v6283_v4  ;;  %v7275_v53 = vld [vmem:[#allocation3 + $0x378] sm:$0xf0]  ;;  %v7334_v4 = vld [vmem:[#allocation3 + $0x554] sm:$0xf] }
 0x674   :  { %4430 = vmatpush.bf16.msra.mxu0 %v6534_v57  ;;  %v6646_v57 = vor.u32 %v7337_v23, %v6645_v22  ;;  %v6510_v22 = vor.u32 %v7299_v7, %v6507_v10  ;;  %v7236_v23 = vld [vmem:[#allocation3 + $0x244] sm:$0xf]  ;;  %v6149_v7 = vld [vmem:[#allocation3 + $0x168] sm:$0xf] }
 0x676   :  { %4443 = vmatpush.bf16.msrb.mxu1 %v6758_v32  ;;  %4405 = vmatpush.bf16.msra.mxu2 %v6058_v35  ;;  %v6846_v32 = vor.u32 %v7383_v25, %v6843_v29  ;;  %v6146_v35 = vor.u32 %v7208_v27, %v6143_v28  ;;  %v7292_v29 = vld [vmem:[#allocation3 + $0x404] sm:$0xf] }
 0x677   :  { %4418 = vmatpush.bf16.msra.mxu3 %v6282_v38  ;;  %v6370_v38 = vor.u32 %v7264_v61, %v6367_v51  ;;  %v7173_v51 = vld [vmem:[#allocation3 + $0x4c] sm:$0xf] }
 0x678   :  { %4431 = vmatpush.bf16.msra.mxu0 %v6506_v2  ;;  %v6594_v2 = vor.u32 %v7320_v33, %v6591_v34  ;;  %v7229_v34 = vld [vmem:[#allocation3 + $0x20c] sm:$0xf] }
 0x67a   :  { %4444 = vmatpush.bf16.msrb.mxu1 %v6730_v52  ;;  %4406 = vmatpush.bf16.msra.mxu2 %v6030_v5  ;;  %v6818_v52 = vor.u32 %v7376_v36, %v6815_v37  ;;  %v6118_v5 = vor.u32 %v7201_v39, %v6115_v40  ;;  %v6451_v39 = vld [vmem:[#allocation3 + $0x3e4] sm:$0xf0] }
 0x67b   :  { %4419 = vmatpush.bf16.msra.mxu3 %v6254_v26  ;;  %v6342_v26 = vor.u32 %v7257_v41, %v6339_v11  ;;  %v7166_v11 = vld [vmem:[#allocation3 + $0x14] sm:$0xf] }
 0x67c   :  { %4432 = vmatpush.bf16.msra.mxu0 %v6478_v46  ;;  %v6566_v46 = vor.u32 %v7313_v8, %v6563_v9  ;;  %v6675_v8 = vld [vmem:[#allocation3 + $0x5a4] sm:$0xf0] }
 0x67e   :  { %4445 = vmatpush.bf16.msrb.mxu1 %v6702_v49  ;;  %4407 = vmatpush.bf16.msra.mxu2 %v6002_v18  ;;  %v6790_v49 = vor.u32 %v7369_v42, %v6787_v43  ;;  %v7362_v18 = vld [vmem:[#allocation3 + $0x634] sm:$0xf]  ;;  %v6199_v43 = vld [vmem:[#allocation3 + $0x1ec] sm:$0xf0] }
 0x67f   :  { %4420 = vmatpush.bf16.msra.mxu3 %v6226_v63  ;;  %v6059_v63 = vld [vmem:[#allocation3 + $0xd4] sm:$0xf0]  ;;  %v7222_v42 = vld [vmem:[#allocation3 + $0x1d4] sm:$0xf] }
 0x680   :  { %4433 = vmatpush.bf16.msra.mxu0 %v6450_v6  ;;  %v6762_v6 = vor.u32 %v7362_v18, %v6759_v19  ;;  %v6062_v13 = vor.u32 %v7187_v30, %v6059_v63  ;;  %v6625_v30 = vld [vmem:[#allocation3 + $0x520] sm:$0xf]  ;;  %v7331_v63 = vld [vmem:[#allocation3 + $0x538] sm:$0xf0] }
 0x682   :  { %4446 = vmatpush.bf16.msrb.mxu1 %v6674_v14  ;;  %4408 = vmatpush.bf16.msra.mxu2 %v5974_v21  ;;  %v7355_v14 = vld [vmem:[#allocation3 + $0x5fc] sm:$0xf]  ;;  %v7180_v21 = vld [vmem:[#allocation3 + $0x84] sm:$0xf] }
 0x683   :  { %4421 = vmatpush.bf16.msra.mxu3 %v6198_v48  ;;  %v6255_v48 = vld [vmem:[#allocation3 + $0x25c] sm:$0xf0]  ;;  %v6734_v25 = vor.u32 %v7355_v14, %v6731_v16  ;;  %v6034_v28 = vor.u32 %v7180_v21, %v6031_v0  ;;  %v7212_v16 = vld [vmem:[#allocation3 + $0x180] sm:$0xf0]  ;;  %v7387_v21 = vld [vmem:[#allocation3 + $0x6f8] sm:$0xf0] }
 0x684   :  { %4434 = vmatpush.bf16.msra.mxu0 %v6422_v54  ;;  %v3027_v54 = vperm.slane %v8057_v20, 0  ;;  %v6258_v61 = vor.u32 %v7236_v23, %v6255_v48  ;;  %v6373_v23 = vld [vmem:[#allocation3 + $0x328] sm:$0xf]  ;;  %v7268_v48 = vld [vmem:[#allocation3 + $0x340] sm:$0xf0] }
 0x685   :  { %4409 = vmatmul.bf16.vlgmr.msra.gmra.mxu2 %v8017_v12 }
 0x686   :  { %4453 = vmatpush.bf16.msrb.mxu2 %v6174_v24  ;;  %4447 = vmatpush.bf16.msrb.mxu1 %v6646_v57  ;;  %v4228_v24 = vpop.f32.mrf.mxu0  ;;  %v4241_v27 = vpop.f32.mrf.mxu1  ;;  %v6703_v57 = vld [vmem:[#allocation3 + $0x5dc] sm:$0xf0] }
 0x687   :  { %4466 = vmatpush.bf16.msrb.mxu3 %v6398_v58  ;;  %4435 = vmatmul.bf16.vlgmr.msra.gmra.mxu0 %v8027_v62  ;;  %v6479_v58 = vld [vmem:[#allocation3 + $0x41c] sm:$0xf0] }
 0x688   :  { %4479 = vmatpush.bf16.msrb.mxu0 %v6622_v50  ;;  %4422 = vmatmul.bf16.vlgmr.msra.gmra.mxu3 %v8022_v17  ;;  %v7348_v50 = vld [vmem:[#allocation3 + $0x5c4] sm:$0xf]  ;;  %v6482_v33 = vor.u32 %v7292_v29, %v6479_v58  ;;  %v4202_v36 = vpop.f32.mrf.mxu2  ;;  %v6597_v58 = vld [vmem:[#allocation3 + $0x4e8] sm:$0xf] }
 0x689   :  { %4448 = vmatmul.bf16.vlgmr.msrb.gmra.mxu1 %v8032_v59  ;;  %v6706_v37 = vor.u32 %v7348_v50, %v6703_v57  ;;  %v4203_v40 = vadd.f32 %v4202_v36, %v3027_v54  ;;  %v7324_v54 = vld [vmem:[#allocation3 + $0x500] sm:$0xf0]  ;;  %v6121_v50 = vld [vmem:[#allocation3 + $0x130] sm:$0xf]  ;;  %v6374_v57 = vor.u32 %v7268_v48, %v6373_v23  ;;  %v3028_v23 = vperm.slane %v8057_v20, 1 }
 0x68a   :  { %4492 = vmatpush.bf16.msra.mxu1 %v6846_v32  ;;  %4454 = vmatpush.bf16.msrb.mxu2 %v6146_v35  ;;  %v6003_v32 = vld [vmem:[#allocation3 + $0x64] sm:$0xf0]  ;;  %v6569_v36 = vld [vmem:[#allocation3 + $0x4b0] sm:$0xf] }
 0x68b   :  { %4467 = vmatpush.bf16.msrb.mxu3 %v6370_v38  ;;  %v6227_v35 = vld [vmem:[#allocation3 + $0x224] sm:$0xf0]  ;;  %v7285_v38 = vld [vmem:[#allocation3 + $0x3cc] sm:$0xf]  ;;  %v6006_v41 = vor.u32 %v7173_v51, %v6003_v32  ;;  %v7380_v32 = vld [vmem:[#allocation3 + $0x6c0] sm:$0xf0] }
 0x68c   :  { %4480 = vmatpush.bf16.msrb.mxu0 %v6594_v2  ;;  %v4215_v2 = vpop.f32.mrf.mxu3  ;;  %v6230_v9 = vor.u32 %v7229_v34, %v6227_v35  ;;  %v6454_v44 = vor.u32 %v7285_v38, %v6451_v39  ;;  %v6821_v51 = vld [vmem:[#allocation3 + $0x6a8] sm:$0xf]  ;;  %v6345_v34 = vld [vmem:[#allocation3 + $0x2f0] sm:$0xf]  ;;  %v7261_v35 = vld [vmem:[#allocation3 + $0x308] sm:$0xf0] }
 0x68d   :  { %v6822_v39 = vor.u32 %v7380_v32, %v6821_v51  ;;  %v7352_v51 = vld [vmem:[#allocation3 + $0x5e0] sm:$0xf0] }
 0x68e   :  { %4493 = vmatpush.bf16.msra.mxu1 %v6818_v52  ;;  %4455 = vmatpush.bf16.msrb.mxu2 %v6118_v5  ;;  %v7341_v52 = vld [vmem:[#allocation3 + $0x58c] sm:$0xf]  ;;  %v5975_v5 = vld [vmem:[#allocation3 + $0x2c] sm:$0xf0]  ;;  %v4230_v47 = vpop.f32.mrf.mxu0  ;;  %v4243_v19 = vpop.f32.mrf.mxu1 }
 0x68f   :  { %4468 = vmatpush.bf16.msrb.mxu3 %v6342_v26  ;;  %v4216_v26 = vadd.f32 %v4215_v2, %v4203_v40  ;;  %v6093_v40 = vld [vmem:[#allocation3 + $0xf8] sm:$0xf]  ;;  %v6346_v2 = vor.u32 %v7261_v35, %v6345_v34  ;;  %v7247_v19 = vld [vmem:[#allocation3 + $0x298] sm:$0xf0]  ;;  %v7233_v34 = vld [vmem:[#allocation3 + $0x228] sm:$0xf0] }
 0x690   :  { %4481 = vmatpush.bf16.msrb.mxu0 %v6566_v46  ;;  %v7219_v46 = vld [vmem:[#allocation3 + $0x1b8] sm:$0xf0]  ;;  %v4204_v0 = vpop.f32.mrf.mxu2 }
 0x691   :  { %v4229_v18 = vadd.f32 %v4228_v24, %v4216_v26  ;;  %v6178_v3 = vor.u32 %v7219_v46, %v6177_v45  ;;  %v6541_v26 = vld [vmem:[#allocation3 + $0x478] sm:$0xf] }
 0x692   :  { %4494 = vmatpush.bf16.msra.mxu1 %v6790_v49  ;;  %4456 = vmatpush.bf16.msrb.mxu2 %v6090_v56  ;;  %v6678_v49 = vor.u32 %v7341_v52, %v6675_v8  ;;  %v6423_v56 = vld [vmem:[#allocation3 + $0x3ac] sm:$0xf0]  ;;  %v7373_v52 = vld [vmem:[#allocation3 + $0x688] sm:$0xf0] }
 0x693   :  { %4469 = vmatpush.bf16.msrb.mxu3 %v6314_v60  ;;  %v5978_v60 = vor.u32 %v7166_v11, %v5975_v5  ;;  %v4242_v10 = vadd.f32 %v4241_v27, %v4229_v18  ;;  %v6426_v14 = vor.u32 %v7278_v55, %v6423_v56  ;;  %v6150_v27 = vor.u32 %v7212_v16, %v6149_v7  ;;  %v6793_v11 = vld [vmem:[#allocation3 + $0x670] sm:$0xf]  ;;  %v6317_v5 = vld [vmem:[#allocation3 + $0x2b8] sm:$0xf]  ;;  %v7366_v55 = vld [vmem:[#allocation3 + $0x650] sm:$0xf0] }
 0x694   :  { %4482 = vmatpush.bf16.msrb.mxu0 %v6538_v1  ;;  %v6202_v1 = vor.u32 %v7222_v42, %v6199_v43  ;;  %v7254_v42 = vld [vmem:[#allocation3 + $0x2d0] sm:$0xf0]  ;;  %v6794_v46 = vor.u32 %v7373_v52, %v6793_v11  ;;  %v6289_v18 = vld [vmem:[#allocation3 + $0x280] sm:$0xf]  ;;  %v6261_v7 = vld [vmem:[#allocation3 + $0x248] sm:$0xf] }
 0x695   :  { %v6851_v24 = vmul.f32 -1.442695, %v4242_v10  ;;  %v6318_v47 = vor.u32 %v7254_v42, %v6317_v5  ;;  %v6737_v10 = vld [vmem:[#allocation3 + $0x600] sm:$0xf]  ;;  %v7240_v16 = vld [vmem:[#allocation3 + $0x260] sm:$0xf0] }
 0x696   :  { %4495 = vmatpush.bf16.msra.mxu1 %v6762_v6  ;;  %4457 = vmatpush.bf16.msrb.mxu2 %v6062_v13  ;;  %v6647_v6 = vld [vmem:[#allocation3 + $0x56c] sm:$0xf0]  ;;  %v6402_v13 = vor.u32 %v7275_v53, %v6401_v31  ;;  %v6065_v31 = vld [vmem:[#allocation3 + $0xc0] sm:$0xf]  ;;  %v6765_v53 = vld [vmem:[#allocation3 + $0x638] sm:$0xf] }
 0x697   :  { %4470 = vmatpush.bf16.msrb.mxu3 %v6286_v15  ;;  %v6849_v15 = vld [vmem:[#allocation3 + $0x6e0] sm:$0xf]  ;;  %v6650_v29 = vor.u32 %v7334_v4, %v6647_v6  ;;  %7402 = vpow2.f32 %v6851_v24  ;;  %v7184_v4 = vld [vmem:[#allocation3 + $0xa0] sm:$0xf0]  ;;  %v6290_v6 = vor.u32 %v7247_v19, %v6289_v18  ;;  %v5981_v11 = vld [vmem:[#allocation3 + $0x18] sm:$0xf] }
 0x698   :  { %4483 = vmatpush.bf16.msrb.mxu0 %v6510_v22  ;;  %v6626_v22 = vor.u32 %v7331_v63, %v6625_v30  ;;  %v7303_v30 = vld [vmem:[#allocation3 + $0x458] sm:$0xf0]  ;;  %v7170_v52 = vld [vmem:[#allocation3 + $0x30] sm:$0xf0]  ;;  %v6681_v42 = vld [vmem:[#allocation3 + $0x590] sm:$0xf] }
 0x699   :  { %v5982_v19 = vor.u32 %v7170_v52, %v5981_v11 }
 0x69a   :  { %4496 = vmatpush.bf16.msra.mxu1 %v6734_v25  ;;  %4458 = vmatpush.bf16.msrb.mxu2 %v6034_v28  ;;  %v4217_v25 = vpop.f32.mrf.mxu3  ;;  %v6850_v28 = vor.u32 %v7387_v21, %v6849_v15  ;;  %v6485_v15 = vld [vmem:[#allocation3 + $0x408] sm:$0xf]  ;;  %v7296_v21 = vld [vmem:[#allocation3 + $0x420] sm:$0xf0] }
 0x69b   :  { %4471 = vmatpush.bf16.msrb.mxu3 %v6258_v61  ;;  %v7205_v61 = vld [vmem:[#allocation3 + $0x148] sm:$0xf0] }
 0x69c   :  { %4484 = vmatpush.bf16.msrb.mxu0 %v6482_v33  ;;  %v6598_v33 = vor.u32 %v7324_v54, %v6597_v58  ;;  %v6122_v38 = vor.u32 %v7205_v61, %v6121_v50  ;;  %v6009_v58 = vld [vmem:[#allocation3 + $0x50] sm:$0xf]  ;;  %v7177_v54 = vld [vmem:[#allocation3 + $0x68] sm:$0xf0]  ;;  %v6262_v50 = vor.u32 %v7240_v16, %v6261_v7  ;;  %v6709_v61 = vld [vmem:[#allocation3 + $0x5c8] sm:$0xf] }
 0x69d   :  { %v7403_v8 = vpop.eup %7402 }
 0x69e   :  { %4497 = vmatpush.bf16.msra.mxu1 %v6706_v37  ;;  %4459 = vmatpush.bf16.msrb.mxu2 %v6006_v41  ;;  %v7317_v37 = vld [vmem:[#allocation3 + $0x4c8] sm:$0xf0]  ;;  %v7198_v41 = vld [vmem:[#allocation3 + $0x110] sm:$0xf0]  ;;  %v8064_v43 = vadd.f32 1.0, %v7403_v8 }
 0x69f   :  { %4472 = vmatpush.bf16.msrb.mxu3 %v6230_v9  ;;  %v6570_v9 = vor.u32 %v7317_v37, %v6569_v36  ;;  %v6094_v45 = vor.u32 %v7198_v41, %v6093_v40  ;;  %v6457_v36 = vld [vmem:[#allocation3 + $0x3d0] sm:$0xf]  ;;  %v7289_v37 = vld [vmem:[#allocation3 + $0x3e8] sm:$0xf0]  ;;  %v6710_v41 = vor.u32 %v7352_v51, %v6709_v61 }
 0x6a0   :  { %4485 = vmatpush.bf16.msrb.mxu0 %v6454_v44  ;;  %v7310_v44 = vld [vmem:[#allocation3 + $0x490] sm:$0xf0]  ;;  %7404 = vrcp.f32 %v8064_v43  ;;  %vm4590_vm4 = vweird.f32 %v8064_v43 }
 0x6a1   :  { %v6542_v56 = vor.u32 %v7310_v44, %v6541_v26  ;;  %v7345_v26 = vld [vmem:[#allocation3 + $0x5a8] sm:$0xf0] }
 0x6a2   :  { %4498 = vmatpush.bf16.msra.mxu1 %v6678_v49  ;;  %4460 = vmatpush.bf16.msrb.mxu2 %v5978_v60  ;;  %v7191_v49 = vld [vmem:[#allocation3 + $0xd8] sm:$0xf0]  ;;  %v6513_v60 = vld [vmem:[#allocation3 + $0x440] sm:$0xf] }
 0x6a3   :  { %4473 = vmatpush.bf16.msrb.mxu3 %v6202_v1  ;;  %v6066_v63 = vor.u32 %v7191_v49, %v6065_v31  ;;  %v6766_v1 = vor.u32 %v7366_v55, %v6765_v53  ;;  %v6205_v31 = vld [vmem:[#allocation3 + $0x1d8] sm:$0xf]  ;;  %v7282_v55 = vld [vmem:[#allocation3 + $0x3b0] sm:$0xf0] }
 0x6a4   :  { %4486 = vmatpush.bf16.msrb.mxu0 %v6426_v14  ;;  %v6514_v14 = vor.u32 %v7303_v30, %v6513_v60  ;;  %v4280_v0 = vpop.f32.mrf.mxu0  ;;  %v6429_v53 = vld [vmem:[#allocation3 + $0x398] sm:$0xf]  ;;  %v6682_v60 = vor.u32 %v7345_v26, %v6681_v42 }
 0x6a5   :  { %4461 = vmatmul.bf16.vlgmr.msrb.gmra.mxu2 %v8017_v12 }
 0x6a6   :  { %4505 = vmatpush.bf16.msra.mxu2 %v6178_v3  ;;  %4499 = vmatpush.bf16.msra.mxu1 %v6650_v29  ;;  %v6037_v3 = vld [vmem:[#allocation3 + $0x88] sm:$0xf]  ;;  %v4293_v48 = vpop.f32.mrf.mxu1 }
 0x6a7   :  { %4518 = vmatpush.bf16.msra.mxu3 %v6402_v13  ;;  %4487 = vmatmul.bf16.vlgmr.msrb.gmra.mxu0 %v8027_v62  ;;  %v7359_v13 = vld [vmem:[#allocation3 + $0x618] sm:$0xf0]  ;;  %v6038_v25 = vor.u32 %v7184_v4, %v6037_v3  ;;  %v7338_v3 = vld [vmem:[#allocation3 + $0x570] sm:$0xf0] }
 0x6a8   :  { %4531 = vmatpush.bf16.msra.mxu0 %v6626_v22  ;;  %4474 = vmatmul.bf16.vlgmr.msrb.gmra.mxu3 %v8022_v17  ;;  %v7405_v22 = vpop.eup %7404  ;;  %v6738_v29 = vor.u32 %v7359_v13, %v6737_v10  ;;  %v4254_v35 = vpop.f32.mrf.mxu2 }
 0x6a9   :  { %4500 = vmatmul.bf16.vlgmr.msra.gmra.mxu1 %v8032_v59  ;;  %v4586_v24 = vmul.f32 %v7405_v22, %v8064_v43  ;;  %vm4591_vm5 = vweird.f32 %v7405_v22 }
 0x6aa   :  { %4506 = vmatpush.bf16.msra.mxu2 %v6150_v27  ;;  %4544 = vmatpush.bf16.msrb.mxu1 %v6850_v28  ;;  %v6233_v27 = vld [vmem:[#allocation3 + $0x210] sm:$0xf]  ;;  %v4596_v28 = vand.u32 2147483648, %v8064_v43  ;;  %vm8075_vm6 = vmor %vm4590_vm4, %vm4591_vm5 }
 0x6ab   :  { %4519 = vmatpush.bf16.msra.mxu3 %v6374_v57  ;;  %v6486_v57 = vor.u32 %v7296_v21, %v6485_v15  ;;  %v4587_v32 = vsub.f32 1.0, %v4586_v24  ;;  %v6234_v5 = vor.u32 %v7233_v34, %v6233_v27 }
 0x6ac   :  { %4532 = vmatpush.bf16.msra.mxu0 %v6598_v33  ;;  %v4594_v33 = vand.u32 2147483647, %v8064_v43  ;;  %v4282_v49 = vpop.f32.mrf.mxu0 }
 0x6ad   :  { %v4588_v40 = vmul.f32 %v7405_v22, %v4587_v32 }
 0x6ae   :  { %4507 = vmatpush.bf16.msra.mxu2 %v6122_v38  ;;  %4545 = vmatpush.bf16.msrb.mxu1 %v6822_v39  ;;  %v4255_v38 = vadd.f32 %v4254_v35, %v3028_v23  ;;  %v4267_v39 = vpop.f32.mrf.mxu3  ;;  %vm4595_vm7 = vcmp.eq.f32.partialorder %v4594_v33, 8.507059e+37 }
 0x6af   :  { %4520 = vmatpush.bf16.msra.mxu3 %v6346_v2  ;;  %v6010_v2 = vor.u32 %v7177_v54, %v6009_v58 }
 0x6b0   :  { %4533 = vmatpush.bf16.msra.mxu0 %v6570_v9  ;;  %v4597_v9 = vor.u32 1.1754944e-38, %v4596_v28  ;;  %v4268_v44 = vadd.f32 %v4267_v39, %v4255_v38  ;;  %v4256_v7 = vpop.f32.mrf.mxu2 }
 0x6b2   :  { %4508 = vmatpush.bf16.msra.mxu2 %v6094_v45  ;;  %4546 = vmatpush.bf16.msrb.mxu1 %v6794_v46  ;;  %v4589_v45 = vadd.f32 %v7405_v22, %v4588_v40  ;;  %v6458_v46 = vor.u32 %v7289_v37, %v6457_v36  ;;  %v4281_v43 = vadd.f32 %v4280_v0, %v4268_v44  ;;  %v3030_v40 = vperm.slane %v8057_v20, 3 }
 0x6b3   :  { %4521 = vmatpush.bf16.msra.mxu3 %v6318_v47  ;;  %v7226_v47 = vld [vmem:[#allocation3 + $0x1f0] sm:$0xf0] }
 0x6b4   :  { %4534 = vmatpush.bf16.msra.mxu0 %v6542_v56  ;;  %v4295_v56 = vpop.f32.mrf.mxu1  ;;  %v4593_v18 = vsel %vm8075_vm6, %v7405_v22, %v4589_v45  ;;  %v4294_v4 = vadd.f32 %v4293_v48, %v4281_v43  ;;  %v3029_v22 = vperm.slane %v8057_v20, 2 }
 0x6b5   :  { %v4598_v30 = vsel %vm4595_vm7, %v4597_v9, %v4593_v18 }
 0x6b6   :  { %4509 = vmatpush.bf16.msra.mxu2 %v6066_v63  ;;  %4547 = vmatpush.bf16.msrb.mxu1 %v6766_v1  ;;  %v6206_v63 = vor.u32 %v7226_v47, %v6205_v31  ;;  %v6653_v1 = vld [vmem:[#allocation3 + $0x558] sm:$0xf]  ;;  %4690 = vst [vmem:[#allocation8] sm:$0xff] %v4598_v30  ;;  %v6852_v10 = vmul.f32 -1.442695, %v4294_v4  ;;  %v4269_v13 = vpop.f32.mrf.mxu3 }
 0x6b7   :  { %4522 = vmatpush.bf16.msra.mxu3 %v6290_v6  ;;  %v6430_v6 = vor.u32 %v7282_v55, %v6429_v53 }
 0x6b8   :  { %4535 = vmatpush.bf16.msra.mxu0 %v6514_v14  ;;  %v6654_v14 = vor.u32 %v7338_v3, %v6653_v1  ;;  %7406 = vpow2.f32 %v6852_v10  ;;  %v3031_v3 = vperm.slane %v8057_v20, 4 }
 0x6ba   :  { %4510 = vmatpush.bf16.msra.mxu2 %v6038_v25  ;;  %4548 = vmatpush.bf16.msrb.mxu1 %v6738_v29 }
 0x6bb   :  { %4523 = vmatpush.bf16.msra.mxu3 %v6262_v50 }
 0x6bc   :  { %4536 = vmatpush.bf16.msra.mxu0 %v6486_v57 }
 0x6be   :  { %4511 = vmatpush.bf16.msra.mxu2 %v6010_v2  ;;  %4549 = vmatpush.bf16.msrb.mxu1 %v6710_v41  ;;  %v7407_v16 = vpop.eup %7406 }
 0x6bf   :  { %4524 = vmatpush.bf16.msra.mxu3 %v6234_v5  ;;  %v4579_v15 = vadd.f32 1.0, %v7407_v16 }
 0x6c0   :  { %4537 = vmatpush.bf16.msra.mxu0 %v6458_v46 }
 0x6c1   :  { %7408 = vrcp.f32 %v4579_v15  ;;  %v4611_v24 = vand.u32 2147483648, %v4579_v15  ;;  %vm4605_vm8 = vweird.f32 %v4579_v15 }
 0x6c2   :  { %4512 = vmatpush.bf16.msra.mxu2 %v5982_v19  ;;  %4550 = vmatpush.bf16.msrb.mxu1 %v6682_v60 }
 0x6c3   :  { %4525 = vmatpush.bf16.msra.mxu3 %v6206_v63  ;;  %v4612_v54 = vor.u32 1.1754944e-38, %v4611_v24 }
 0x6c4   :  { %4538 = vmatpush.bf16.msra.mxu0 %v6430_v6  ;;  %v4332_v21 = vpop.f32.mrf.mxu0 }
 0x6c5   :  { %4513 = vmatmul.bf16.vlgmr.msra.gmra.mxu2 %v8017_v12  ;;  %v4609_v12 = vand.u32 2147483647, %v4579_v15 }
 0x6c6   :  { %4526 = vmatmul.bf16.vlgmr.msra.gmra.mxu3 %v8022_v17  ;;  %4551 = vmatpush.bf16.msrb.mxu1 %v6654_v14  ;;  %v4345_v23 = vpop.f32.mrf.mxu1 }
 0x6c7   :  { %4539 = vmatmul.bf16.vlgmr.msra.gmra.mxu0 %v8027_v62  ;;  %v7409_v0 = vpop.eup %7408  ;;  %vm4610_vm11 = vcmp.eq.f32.partialorder %v4609_v12, 8.507059e+37 }
 0x6c8   :  { %v4601_v48 = vmul.f32 %v7409_v0, %v4579_v15  ;;  %vm4606_vm9 = vweird.f32 %v7409_v0  ;;  %v4306_v17 = vpop.f32.mrf.mxu2 }
 0x6c9   :  { %4552 = vmatmul.bf16.vlgmr.msrb.gmra.mxu1 %v8032_v59  ;;  %v4307_v29 = vadd.f32 %v4306_v17, %v3029_v22  ;;  %vm4607_vm10 = vmor %vm4605_vm8, %vm4606_vm9 }
 0x6ca   :  { %v4602_v25 = vsub.f32 1.0, %v4601_v48 }
 0x6cb   :  { %v4319_v58 = vpop.f32.mrf.mxu3 }
 0x6cc   :  { %v4603_v62 = vmul.f32 %v7409_v0, %v4602_v25  ;;  %v4320_v59 = vadd.f32 %v4319_v58, %v4307_v29  ;;  %v4334_v28 = vpop.f32.mrf.mxu0 }
 0x6cd   :  { %v3032_v28 = vperm.slane %v8057_v20, 5 }
 0x6ce   :  { %v4604_v27 = vadd.f32 %v7409_v0, %v4603_v62  ;;  %v4333_v50 = vadd.f32 %v4332_v21, %v4320_v59  ;;  %v4347_v57 = vpop.f32.mrf.mxu1 }
 0x6d0   :  { %v4608_v61 = vsel %vm4607_vm10, %v7409_v0, %v4604_v27  ;;  %v4346_v32 = vadd.f32 %v4345_v23, %v4333_v50  ;;  %v4308_v33 = vpop.f32.mrf.mxu2 }
 0x6d1   :  { %v4613_v51 = vsel %vm4610_vm11, %v4612_v54, %v4608_v61 }
 0x6d2   :  { %4691 = vst [vmem:[#allocation8 + $0x8] sm:$0xff] %v4613_v51  ;;  %v6853_v34 = vmul.f32 -1.442695, %v4346_v32 }
 0x6d3   :  { %v4321_v35 = vpop.f32.mrf.mxu3 }
 0x6d4   :  { %7410 = vpow2.f32 %v6853_v34 }
 0x6da   :  { %v7411_v36 = vpop.eup %7410 }
 0x6db   :  { %v4580_v37 = vadd.f32 1.0, %v7411_v36 }
 0x6dd   :  { %7412 = vrcp.f32 %v4580_v37  ;;  %v4626_v11 = vand.u32 2147483648, %v4580_v37  ;;  %vm4620_vm12 = vweird.f32 %v4580_v37  ;;  %v4624_v8 = vand.u32 2147483647, %v4580_v37 }
 0x6df   :  { %v4627_v44 = vor.u32 1.1754944e-38, %v4626_v11  ;;  %vm4625_vm15 = vcmp.eq.f32.partialorder %v4624_v8, 8.507059e+37 }
 0x6e3   :  { %v7413_v39 = vpop.eup %7412 }
 0x6e4   :  { %v4384_v38 = vpop.f32.mrf.mxu0  ;;  %v4616_v41 = vmul.f32 %v7413_v39, %v4580_v37  ;;  %vm4621_vm13 = vweird.f32 %v7413_v39 }
 0x6e5   :  { %vm4622_vm14 = vmor %vm4620_vm12, %vm4621_vm13 }
 0x6e6   :  { %v4397_v2 = vpop.f32.mrf.mxu1  ;;  %v4617_v52 = vsub.f32 1.0, %v4616_v41 }
 0x6e8   :  { %v4358_v9 = vpop.f32.mrf.mxu2  ;;  %v4618_v26 = vmul.f32 %v7413_v39, %v4617_v52 }
 0x6e9   :  { %v4359_v5 = vadd.f32 %v4358_v9, %v3030_v40 }
 0x6ea   :  { %v4619_v46 = vadd.f32 %v7413_v39, %v4618_v26 }
 0x6eb   :  { %v4371_v42 = vpop.f32.mrf.mxu3 }
 0x6ec   :  { %v4372_v45 = vadd.f32 %v4371_v42, %v4359_v5  ;;  %v4386_v31 = vpop.f32.mrf.mxu0  ;;  %v4623_v53 = vsel %vm4622_vm14, %v7413_v39, %v4619_v46 }
 0x6ed   :  { %v4628_v55 = vsel %vm4625_vm15, %v4627_v44, %v4623_v53 }
 0x6ee   :  { %v4385_v47 = vadd.f32 %v4384_v38, %v4372_v45  ;;  %v4399_v49 = vpop.f32.mrf.mxu1  ;;  %4692 = vst [vmem:[#allocation8 + $0x10] sm:$0xff] %v4628_v55 }
 0x6ef   :  { %v3033_v49 = vperm.slane %v8057_v20, 6 }
 0x6f0   :  { %v4398_v43 = vadd.f32 %v4397_v2, %v4385_v47  ;;  %v4360_v56 = vpop.f32.mrf.mxu2 }
 0x6f2   :  { %v6854_v18 = vmul.f32 -1.442695, %v4398_v43 }
 0x6f3   :  { %v4373_v19 = vpop.f32.mrf.mxu3 }
 0x6f4   :  { %7414 = vpow2.f32 %v6854_v18 }
 0x6fa   :  { %v7415_v60 = vpop.eup %7414 }
 0x6fb   :  { %v4581_v30 = vadd.f32 1.0, %v7415_v60 }
 0x6fd   :  { %7416 = vrcp.f32 %v4581_v30  ;;  %v4641_v7 = vand.u32 2147483648, %v4581_v30  ;;  %vm4635_vm0 = vweird.f32 %v4581_v30  ;;  %v4639_v13 = vand.u32 2147483647, %v4581_v30 }
 0x6ff   :  { %v4642_v0 = vor.u32 1.1754944e-38, %v4641_v7  ;;  %vm4640_vm3 = vcmp.eq.f32.partialorder %v4639_v13, 8.507059e+37 }
 0x703   :  { %v7417_v1 = vpop.eup %7416 }
 0x704   :  { %v4436_v63 = vpop.f32.mrf.mxu0  ;;  %v4631_v6 = vmul.f32 %v7417_v1, %v4581_v30  ;;  %vm4636_vm1 = vweird.f32 %v7417_v1 }
 0x705   :  { %vm4637_vm2 = vmor %vm4635_vm0, %vm4636_vm1 }
 0x706   :  { %v4449_v4 = vpop.f32.mrf.mxu1  ;;  %v4632_v10 = vsub.f32 1.0, %v4631_v6 }
 0x708   :  { %v4410_v14 = vpop.f32.mrf.mxu2  ;;  %v4633_v21 = vmul.f32 %v7417_v1, %v4632_v10 }
 0x709   :  { %v4411_v16 = vadd.f32 %v4410_v14, %v3031_v3 }
 0x70a   :  { %v4634_v23 = vadd.f32 %v7417_v1, %v4633_v21 }
 0x70b   :  { %v4423_v15 = vpop.f32.mrf.mxu3 }
 0x70c   :  { %v4424_v22 = vadd.f32 %v4423_v15, %v4411_v16  ;;  %v4438_v48 = vpop.f32.mrf.mxu0  ;;  %v4638_v12 = vsel %vm4637_vm2, %v7417_v1, %v4634_v23 }
 0x70d   :  { %v4643_v17 = vsel %vm4640_vm3, %v4642_v0, %v4638_v12 }
 0x70e   :  { %v4437_v24 = vadd.f32 %v4436_v63, %v4424_v22  ;;  %v4451_v25 = vpop.f32.mrf.mxu1  ;;  %4693 = vst [vmem:[#allocation8 + $0x18] sm:$0xff] %v4643_v17 }
 0x710   :  { %v4450_v29 = vadd.f32 %v4449_v4, %v4437_v24  ;;  %v4412_v58 = vpop.f32.mrf.mxu2 }
 0x712   :  { %v6855_v62 = vmul.f32 -1.442695, %v4450_v29 }
 0x713   :  { %v4425_v54 = vpop.f32.mrf.mxu3 }
 0x714   :  { %7418 = vpow2.f32 %v6855_v62 }
 0x71a   :  { %v7419_v59 = vpop.eup %7418 }
 0x71b   :  { %v4582_v27 = vadd.f32 1.0, %v7419_v59 }
 0x71d   :  { %7420 = vrcp.f32 %v4582_v27  ;;  %vm4650_vm4 = vweird.f32 %v4582_v27  ;;  %v4656_v32 = vand.u32 2147483648, %v4582_v27  ;;  %v4654_v35 = vand.u32 2147483647, %v4582_v27 }
 0x71f   :  { %v4657_v40 = vor.u32 1.1754944e-38, %v4656_v32  ;;  %vm4655_vm7 = vcmp.eq.f32.partialorder %v4654_v35, 8.507059e+37 }
 0x723   :  { %v7421_v57 = vpop.eup %7420 }
 0x724   :  { %v4488_v50 = vpop.f32.mrf.mxu0  ;;  %v4646_v51 = vmul.f32 %v7421_v57, %v4582_v27  ;;  %vm4651_vm5 = vweird.f32 %v7421_v57 }
 0x725   :  { %vm4652_vm6 = vmor %vm4650_vm4, %vm4651_vm5 }
 0x726   :  { %v4501_v61 = vpop.f32.mrf.mxu1  ;;  %v4647_v34 = vsub.f32 1.0, %v4646_v51 }
 0x728   :  { %v4462_v33 = vpop.f32.mrf.mxu2  ;;  %v4648_v38 = vmul.f32 %v7421_v57, %v4647_v34 }
 0x729   :  { %v4463_v36 = vadd.f32 %v4462_v33, %v3032_v28 }
 0x72a   :  { %v4649_v2 = vadd.f32 %v7421_v57, %v4648_v38 }
 0x72b   :  { %v4475_v37 = vpop.f32.mrf.mxu3 }
 0x72c   :  { %v4476_v39 = vadd.f32 %v4475_v37, %v4463_v36  ;;  %v4490_v11 = vpop.f32.mrf.mxu0  ;;  %v4653_v8 = vsel %vm4652_vm6, %v7421_v57, %v4649_v2 }
 0x72d   :  { %v4658_v5 = vsel %vm4655_vm7, %v4657_v40, %v4653_v8 }
 0x72e   :  { %v4489_v41 = vadd.f32 %v4488_v50, %v4476_v39  ;;  %v4503_v52 = vpop.f32.mrf.mxu1  ;;  %4694 = vst [vmem:[#allocation8 + $0x20] sm:$0xff] %v4658_v5 }
 0x730   :  { %v4502_v9 = vadd.f32 %v4501_v61, %v4489_v41  ;;  %v4464_v42 = vpop.f32.mrf.mxu2 }
 0x732   :  { %v6856_v26 = vmul.f32 -1.442695, %v4502_v9 }
 0x733   :  { %v4477_v44 = vpop.f32.mrf.mxu3 }
 0x734   :  { %7422 = vpow2.f32 %v6856_v26 }
 0x73a   :  { %v7423_v45 = vpop.eup %7422 }
 0x73b   :  { %v4583_v46 = vadd.f32 1.0, %v7423_v45 }
 0x73d   :  { %7424 = vrcp.f32 %v4583_v46  ;;  %v4671_v43 = vand.u32 2147483648, %v4583_v46  ;;  %vm4665_vm8 = vweird.f32 %v4583_v46  ;;  %v4669_v18 = vand.u32 2147483647, %v4583_v46 }
 0x73f   :  { %v4672_v1 = vor.u32 1.1754944e-38, %v4671_v43  ;;  %vm4670_vm11 = vcmp.eq.f32.partialorder %v4669_v18, 8.507059e+37 }
 0x743   :  { %v7425_v47 = vpop.eup %7424 }
 0x744   :  { %v4540_v31 = vpop.f32.mrf.mxu0  ;;  %v4661_v53 = vmul.f32 %v7425_v47, %v4583_v46  ;;  %vm4666_vm9 = vweird.f32 %v7425_v47 }
 0x745   :  { %vm4667_vm10 = vmor %vm4665_vm8, %vm4666_vm9 }
 0x746   :  { %v4553_v55 = vpop.f32.mrf.mxu1  ;;  %v4662_v56 = vsub.f32 1.0, %v4661_v53 }
 0x748   :  { %v4514_v19 = vpop.f32.mrf.mxu2  ;;  %v4663_v63 = vmul.f32 %v7425_v47, %v4662_v56 }
 0x749   :  { %v4515_v60 = vadd.f32 %v4514_v19, %v3033_v49  ;;  %v4527_v30 = vpop.f32.mrf.mxu3 }
 0x74a   :  { %v4664_v4 = vadd.f32 %v7425_v47, %v4663_v63 }
 0x74b   :  { %v4528_v3 = vadd.f32 %v4527_v30, %v4515_v60 }
 0x74c   :  { %v4542_v6 = vpop.f32.mrf.mxu0  ;;  %v4668_v10 = vsel %vm4667_vm10, %v7425_v47, %v4664_v4 }
 0x74d   :  { %v4541_v7 = vadd.f32 %v4540_v31, %v4528_v3  ;;  %v4673_v13 = vsel %vm4670_vm11, %v4672_v1, %v4668_v10 }
 0x74e   :  { %v4555_v20 = vpop.f32.mrf.mxu1  ;;  %4695 = vst [vmem:[#allocation8 + $0x28] sm:$0xff] %v4673_v13 }
 0x74f   :  { %v4554_v14 = vadd.f32 %v4553_v55, %v4541_v7 }
 0x750   :  { %v4516_v16 = vpop.f32.mrf.mxu2 }
 0x751   :  { %v6857_v15 = vmul.f32 -1.442695, %v4554_v14  ;;  %v4529_v21 = vpop.f32.mrf.mxu3 }
 0x753   :  { %7426 = vpow2.f32 %v6857_v15 }
 0x759   :  { %v7427_v0 = vpop.eup %7426 }
 0x75a   :  { %v4584_v22 = vadd.f32 1.0, %v7427_v0 }
 0x75c   :  { %7428 = vrcp.f32 %v4584_v22  ;;  %v4686_v25 = vand.u32 2147483648, %v4584_v22  ;;  %v4684_v17 = vand.u32 2147483647, %v4584_v22  ;;  %vm4680_vm13 = vweird.f32 %v4584_v22 }
 0x75e   :  { %v4687_v58 = vor.u32 1.1754944e-38, %v4686_v25  ;;  %vm4685_vm15 = vcmp.eq.f32.partialorder %v4684_v17, 8.507059e+37 }
 0x762   :  { %v7429_v23 = vpop.eup %7428 }
 0x763   :  { %v4676_v48 = vmul.f32 %v7429_v23, %v4584_v22  ;;  %vm4681_vm12 = vweird.f32 %v7429_v23 }
 0x764   :  { %vm4682_vm14 = vmor %vm4680_vm13, %vm4681_vm12 }
 0x765   :  { %v4677_v24 = vsub.f32 1.0, %v4676_v48 }
 0x767   :  { %v4678_v12 = vmul.f32 %v7429_v23, %v4677_v24 }
 0x769   :  { %v4679_v29 = vadd.f32 %v7429_v23, %v4678_v12 }
 0x76b   :  { %v4683_v62 = vsel %vm4682_vm14, %v7429_v23, %v4679_v29 }
 0x76c   :  { %v4688_v54 = vsel %vm4685_vm15, %v4687_v58, %v4683_v62 }
 0x76d   :  { %4696 = vst [vmem:[#allocation8 + $0x30] sm:$0xff] %v4688_v54 }
 0x76e   :  { %4707 = dma.vmem_to_hbm [thread:$0]  %s4703_s0, 896, %s4705_s22, [#allocation7]  }
 0x76f   :  { %7508 = dma.done.wait [#allocation7], 896  }
 0x770   :  { %7509 = vsyncadd [#allocation7], 4294966400 }
 0x771   :  { %4716 = vsyncpa [#allocation6], 1 }
 0x772   :  { %4717 = vsyncpa [#allocation7], 1 }
 0x773   :  { %4718 = vsyncmov [#allocation4] }
 0x776   :  { %s4719_s11 = vpop.sfrf %4718 }
 0x777   :  { %p6858_p0 = scmp.ne.s32.totalorder %s4719_s11, 0 }
 0x779   :  { %4723 = shalt.err (%p6858_p0)  }
 0x77a   :  { %4725 = vsyncmov [#allocation4 + $0x1] }
 0x77d   :  { %s4726_s19 = vpop.sfrf %4725 }
 0x77e   :  { %p6859_p1 = scmp.ne.s32.totalorder %s4726_s19, 0 }
 0x780   :  { %4730 = shalt.err (%p6859_p1)  }

</bundles_post_ra>
